<compile_context>
chip_gen: v5e
topology: v5e:2x2
jax: 0.10.0
libtpu: 0.0.40
codegen_flags: <defaults>
</compile_context>

<pallas_src>
import functools

import jax
import jax.numpy as jnp
from jax import lax
from jax.experimental import pallas as pl
from jax.experimental.pallas import tpu as pltpu

NOISE_STD = 0.01
NOISE_PROB = 0.1

_LANE = 128
_TARGET_BLOCK_BYTES = 2 * 1024 * 1024  # ~2 MiB per f32 block; double-buffered in+out
                                       # stays well under VMEM on v5e/v6e/v7x.

# 32-bit mixing constants (unsigned).
_PHI = 0x9E3779B1
_MIX1 = 0x85EBCA6B
_MIX2 = 0xC2B2AE35
_SALT = 0x9E3779B9
_INV_2POW24 = float(1.0 / (1 << 24))


def _mix32(x):
    """Murmur3-style finalizer on uint32 arrays (counter-based stateless RNG)."""
    x = x ^ (x >> 16)
    x = x * jnp.uint32(_MIX1)
    x = x ^ (x >> 13)
    x = x * jnp.uint32(_MIX2)
    x = x ^ (x >> 16)
    return x


def _random_noise_kernel(seed_ref, x_ref, o_ref, *, noise_std, noise_prob,
                         width, block_rows):
    x = x_ref[...]
    if x.dtype != jnp.float32:
        x = x.astype(jnp.float32)

    if noise_std > 0.0 or noise_prob > 0.0:
        # Global linear element index of this block -> two independent hash streams.
        row = lax.broadcasted_iota(jnp.int32, x.shape, 0)
        col = lax.broadcasted_iota(jnp.int32, x.shape, 1)
        gidx = (pl.program_id(0) * block_rows + row) * width + col
        seed_u = seed_ref[0].astype(jnp.uint32)
        h1 = _mix32(gidx.astype(jnp.uint32) * jnp.uint32(_PHI) + seed_u)
        h2 = _mix32(h1 ^ jnp.uint32(_SALT))

    if noise_std > 0.0:
        # Box-Muller from the low 24 bits of each stream.
        u1 = ((h1 & jnp.uint32(0x00FFFFFF)).astype(jnp.int32).astype(jnp.float32)
              + 1.0) * _INV_2POW24                                   # (0, 1]: log-safe
        u2 = ((h2 & jnp.uint32(0x00FFFFFF)).astype(jnp.int32).astype(jnp.float32)
              * _INV_2POW24)                                          # [0, 1)
        z = jnp.sqrt(-2.0 * jnp.log(u1)) * jnp.cos((2.0 * jnp.pi) * u2)
        x = x + noise_std * z

    if noise_prob > 0.0:
        # Flip test from the spare top 8 bits of each stream (16-bit resolution,
        # prob quantized to multiples of 1/65536 -- fine for augmentation).
        hi = (((h1 >> 24) << 8) | (h2 >> 24)).astype(jnp.int32)
        thresh = int(round(noise_prob * 65536.0))
        x = jnp.where(hi < jnp.int32(thresh), 1.0 - x, x)

    x = jnp.clip(x, 0.0, 1.0)
    o_ref[...] = x.astype(o_ref.dtype)


def random_noise_3d(voxels, seed, *, noise_std=NOISE_STD, noise_prob=NOISE_PROB):
    """Apply RandomNoise3D to a voxel grid of arbitrary shape (values in [0, 1])."""
    orig_shape = voxels.shape
    orig_dtype = voxels.dtype
    n = voxels.size

    # Widest lane-dense width (multiple of 128) that divides n -> no padding copy
    # in the common case, fewer grid steps / DMA descriptors.
    width = _LANE
    for cand in (4096, 2048, 1024, 512, 256, 128):
        if n % cand == 0:
            width = cand
            break

    flat = voxels.reshape(-1)
    n_pad = (-n) % width
    if n_pad:
        flat = jnp.pad(flat, (0, n_pad))  # only materialized when really needed
    rows = (n + n_pad) // width
    x2d = flat.reshape(rows, width)

    # ~2 MiB per block; rows multiple of 8 unless the whole array fits one block.
    target_rows = max(8, (_TARGET_BLOCK_BYTES // (width * 4)) // 8 * 8)
    block_rows = rows if rows <= target_rows else target_rows
    grid = (pl.cdiv(rows, block_rows),)

    seed_arr = jnp.asarray([seed], dtype=jnp.int32)

    kernel = functools.partial(
        _random_noise_kernel,
        noise_std=float(noise_std),
        noise_prob=float(noise_prob),
        width=width,
        block_rows=block_rows,
    )

    grid_spec = pltpu.PrefetchScalarGridSpec(
        num_scalar_prefetch=1,
        grid=grid,
        in_specs=[pl.BlockSpec((block_rows, width), lambda i, seed: (i, 0))],
        out_specs=pl.BlockSpec((block_rows, width), lambda i, seed: (i, 0)),
    )

    out2d = pl.pallas_call(
        kernel,
        out_shape=jax.ShapeDtypeStruct((rows, width), orig_dtype),
        grid_spec=grid_spec,
        compiler_params=pltpu.CompilerParams(
            dimension_semantics=("parallel",),   # blocks are independent -> megacore
        ),
    )(seed_arr, x2d)

    if n_pad:
        return out2d.reshape(-1)[:n].reshape(orig_shape)
    return out2d.reshape(orig_shape)


if __name__ == "__main__":
    key = jax.random.PRNGKey(0)
    # Small voxel grid: (batch=2, depth=4, height=16, width=16), values in [0, 1].
    voxels = jax.random.uniform(key, (2, 4, 16, 16), dtype=jnp.float32)

    out = random_noise_3d(voxels, seed=1234)
    out = jax.block_until_ready(out)

    # Basic sanity checks of the forward-pass contract.
    assert out.shape == voxels.shape
    assert out.dtype == voxels.dtype
    assert bool(jnp.all(out >= 0.0)) and bool(jnp.all(out <= 1.0))
    # Noise should actually change the values.
    assert bool(jnp.any(jnp.abs(out - voxels) > 1e-6))

    print("KERNEL_OK")
</pallas_src>

<mosaic_0001>
module attributes {stable_mosaic.version = 11 : i64} {
  func.func @_random_noise_kernel(%arg0: i32, %arg1: memref<1xi32, #tpu.memory_space<smem>>, %arg2: memref<1x2048xf32, #tpu.memory_space<vmem>>, %arg3: memref<1x2048xf32, #tpu.memory_space<vmem>>) attributes {dimension_semantics = [#tpu.dimension_semantics<parallel>], iteration_bounds = array<i64: 1>, scalar_prefetch = 1 : i64, scratch_operands = 0 : i64, tpu.core_type = #tpu.core_type<tc>, window_params = [{transform_indices = @transform_0, window_bounds = array<i64: 1, 2048>}, {transform_indices = @transform_1, window_bounds = array<i64: 1, 2048>}]} {
    %c0 = arith.constant 0 : index
    %c0_0 = arith.constant 0 : index
    %0 = vector.load %arg2[%c0, %c0_0] : memref<1x2048xf32, #tpu.memory_space<vmem>>, vector<1x2048xf32>
    %1 = tpu.iota {dimensions = array<i32: 0>} : vector<1x2048xi32>
    %2 = tpu.iota {dimensions = array<i32: 1>} : vector<1x2048xi32>
    %c1_i32 = arith.constant 1 : i32
    %3 = arith.muli %arg0, %c1_i32 : i32
    %4 = vector.broadcast %3 : i32 to vector<1x2048xi32>
    %5 = arith.addi %4, %1 : vector<1x2048xi32>
    %c2048_i32 = arith.constant 2048 : i32
    %6 = vector.broadcast %c2048_i32 : i32 to vector<1x2048xi32>
    %7 = arith.muli %5, %6 : vector<1x2048xi32>
    %8 = arith.addi %7, %2 : vector<1x2048xi32>
    %c0_1 = arith.constant 0 : index
    %9 = memref.load %arg1[%c0_1] : memref<1xi32, #tpu.memory_space<smem>>
    %c-1640531535_i32 = arith.constant -1640531535 : i32
    %10 = vector.broadcast %c-1640531535_i32 : i32 to vector<1x2048xi32>
    %11 = arith.muli %8, %10 : vector<1x2048xi32>
    %12 = vector.broadcast %9 : i32 to vector<1x2048xi32>
    %13 = arith.addi %11, %12 : vector<1x2048xi32>
    %c16_i32 = arith.constant 16 : i32
    %14 = vector.broadcast %c16_i32 : i32 to vector<1x2048xi32>
    %15 = arith.shrui %13, %14 : vector<1x2048xi32>
    %16 = arith.xori %13, %15 : vector<1x2048xi32>
    %c-2048144789_i32 = arith.constant -2048144789 : i32
    %17 = vector.broadcast %c-2048144789_i32 : i32 to vector<1x2048xi32>
    %18 = arith.muli %16, %17 : vector<1x2048xi32>
    %c13_i32 = arith.constant 13 : i32
    %19 = vector.broadcast %c13_i32 : i32 to vector<1x2048xi32>
    %20 = arith.shrui %18, %19 : vector<1x2048xi32>
    %21 = arith.xori %18, %20 : vector<1x2048xi32>
    %c-1028477387_i32 = arith.constant -1028477387 : i32
    %22 = vector.broadcast %c-1028477387_i32 : i32 to vector<1x2048xi32>
    %23 = arith.muli %21, %22 : vector<1x2048xi32>
    %c16_i32_2 = arith.constant 16 : i32
    %24 = vector.broadcast %c16_i32_2 : i32 to vector<1x2048xi32>
    %25 = arith.shrui %23, %24 : vector<1x2048xi32>
    %26 = arith.xori %23, %25 : vector<1x2048xi32>
    %c-1640531527_i32 = arith.constant -1640531527 : i32
    %27 = vector.broadcast %c-1640531527_i32 : i32 to vector<1x2048xi32>
    %28 = arith.xori %26, %27 : vector<1x2048xi32>
    %c16_i32_3 = arith.constant 16 : i32
    %29 = vector.broadcast %c16_i32_3 : i32 to vector<1x2048xi32>
    %30 = arith.shrui %28, %29 : vector<1x2048xi32>
    %31 = arith.xori %28, %30 : vector<1x2048xi32>
    %c-2048144789_i32_4 = arith.constant -2048144789 : i32
    %32 = vector.broadcast %c-2048144789_i32_4 : i32 to vector<1x2048xi32>
    %33 = arith.muli %31, %32 : vector<1x2048xi32>
    %c13_i32_5 = arith.constant 13 : i32
    %34 = vector.broadcast %c13_i32_5 : i32 to vector<1x2048xi32>
    %35 = arith.shrui %33, %34 : vector<1x2048xi32>
    %36 = arith.xori %33, %35 : vector<1x2048xi32>
    %c-1028477387_i32_6 = arith.constant -1028477387 : i32
    %37 = vector.broadcast %c-1028477387_i32_6 : i32 to vector<1x2048xi32>
    %38 = arith.muli %36, %37 : vector<1x2048xi32>
    %c16_i32_7 = arith.constant 16 : i32
    %39 = vector.broadcast %c16_i32_7 : i32 to vector<1x2048xi32>
    %40 = arith.shrui %38, %39 : vector<1x2048xi32>
    %41 = arith.xori %38, %40 : vector<1x2048xi32>
    %c16777215_i32 = arith.constant 16777215 : i32
    %42 = vector.broadcast %c16777215_i32 : i32 to vector<1x2048xi32>
    %43 = arith.andi %26, %42 : vector<1x2048xi32>
    %44 = arith.sitofp %43 : vector<1x2048xi32> to vector<1x2048xf32>
    %cst = arith.constant 1.000000e+00 : f32
    %45 = vector.broadcast %cst : f32 to vector<1x2048xf32>
    %46 = arith.addf %44, %45 : vector<1x2048xf32>
    %cst_8 = arith.constant 5.96046448E-8 : f32
    %47 = vector.broadcast %cst_8 : f32 to vector<1x2048xf32>
    %48 = arith.mulf %46, %47 : vector<1x2048xf32>
    %c16777215_i32_9 = arith.constant 16777215 : i32
    %49 = vector.broadcast %c16777215_i32_9 : i32 to vector<1x2048xi32>
    %50 = arith.andi %41, %49 : vector<1x2048xi32>
    %51 = arith.sitofp %50 : vector<1x2048xi32> to vector<1x2048xf32>
    %cst_10 = arith.constant 5.96046448E-8 : f32
    %52 = vector.broadcast %cst_10 : f32 to vector<1x2048xf32>
    %53 = arith.mulf %51, %52 : vector<1x2048xf32>
    %54 = math.log %48 : vector<1x2048xf32>
    %cst_11 = arith.constant -2.000000e+00 : f32
    %55 = vector.broadcast %cst_11 : f32 to vector<1x2048xf32>
    %56 = arith.mulf %55, %54 : vector<1x2048xf32>
    %57 = math.sqrt %56 : vector<1x2048xf32>
    %cst_12 = arith.constant 6.28318548 : f32
    %58 = vector.broadcast %cst_12 : f32 to vector<1x2048xf32>
    %59 = arith.mulf %58, %53 : vector<1x2048xf32>
    %60 = math.cos %59 : vector<1x2048xf32>
    %61 = arith.mulf %57, %60 : vector<1x2048xf32>
    %cst_13 = arith.constant 0.00999999977 : f32
    %62 = vector.broadcast %cst_13 : f32 to vector<1x2048xf32>
    %63 = arith.mulf %62, %61 : vector<1x2048xf32>
    %64 = arith.addf %0, %63 : vector<1x2048xf32>
    %c24_i32 = arith.constant 24 : i32
    %65 = vector.broadcast %c24_i32 : i32 to vector<1x2048xi32>
    %66 = arith.shrui %26, %65 : vector<1x2048xi32>
    %c8_i32 = arith.constant 8 : i32
    %67 = vector.broadcast %c8_i32 : i32 to vector<1x2048xi32>
    %68 = arith.shli %66, %67 : vector<1x2048xi32>
    %c24_i32_14 = arith.constant 24 : i32
    %69 = vector.broadcast %c24_i32_14 : i32 to vector<1x2048xi32>
    %70 = arith.shrui %41, %69 : vector<1x2048xi32>
    %71 = arith.ori %68, %70 : vector<1x2048xi32>
    %c6554_i32 = arith.constant 6554 : i32
    %72 = vector.broadcast %c6554_i32 : i32 to vector<1x2048xi32>
    %73 = arith.cmpi slt, %71, %72 : vector<1x2048xi32>
    %cst_15 = arith.constant 1.000000e+00 : f32
    %74 = vector.broadcast %cst_15 : f32 to vector<1x2048xf32>
    %75 = arith.subf %74, %64 : vector<1x2048xf32>
    %76 = arith.select %73, %75, %64 : vector<1x2048xi1>, vector<1x2048xf32>
    %cst_16 = arith.constant 0.000000e+00 : f32
    %cst_17 = arith.constant 1.000000e+00 : f32
    %77 = vector.broadcast %cst_16 : f32 to vector<1x2048xf32>
    %78 = arith.maximumf %77, %76 : vector<1x2048xf32>
    %79 = vector.broadcast %cst_17 : f32 to vector<1x2048xf32>
    %80 = arith.minimumf %79, %78 : vector<1x2048xf32>
    %c0_18 = arith.constant 0 : index
    %c0_19 = arith.constant 0 : index
    %81 = vector.load %arg3[%c0_18, %c0_19] : memref<1x2048xf32, #tpu.memory_space<vmem>>, vector<1x2048xf32>
    tpu.vector_store %arg3[%c0_18, %c0_19], %80 {strides = array<i32>} : memref<1x2048xf32, #tpu.memory_space<vmem>>, vector<1x2048xf32>,
    return
  }
  func.func @transform_0(%arg0: i32, %arg1: memref<1xi32, #tpu.memory_space<smem>>) -> (i32, i32) {
    %c0_i32 = arith.constant 0 : i32
    %c0_i32_0 = arith.constant 0 : i32
    return %arg0, %c0_i32 : i32, i32
  }
  func.func @transform_1(%arg0: i32, %arg1: memref<1xi32, #tpu.memory_space<smem>>) -> (i32, i32) {
    %c0_i32 = arith.constant 0 : i32
    %c0_i32_0 = arith.constant 0 : i32
    return %arg0, %c0_i32 : i32, i32
  }
}

</mosaic_0001>

<bundles_post_ra>
// kernel: tpu_custom_call.1
= control target key start
LH: loop header
LB: loop body
LE: loop exit
PB: predicated region body
PF: predicated region fallthrough
CT: control target
= control target key end

     0   :  { %8 = vsyncpa [#allocation5], 0  ;;  %s7345_s0 = inlined_call_operand.<no memory space> [shape: s32[1], index: 0, kind: input, shape index: {}]   ;;  %s7346_s1 = inlined_call_operand.hbm [shape: f32[1,2048], index: 1, kind: input, shape index: {}]   ;;  %s7347_s2 = inlined_call_operand.hbm [shape: f32[1,2048], index: 2, kind: output, shape index: {}]  }
   0x1   :  { %9 = vsyncpa [#allocation6], 0  ;;  %s15_s11 = sshll.u32 %s7346_s1, 4  ;;  %s3726_s12 = smov [#allocation4]   ;;  %s16_s11 = int_to_ptr.hbm [resolvable:$true] %s15_s11 }
   0x2   :  { %s17_s13 = sshll.u32 %s3726_s12, 4  ;;  %s18_s13 = int_to_ptr.vmem [resolvable:$true] %s17_s13 }
   0x3   :  { %20 = dma.hbm_to_vmem [thread:$0]  %s16_s11, 256, %s18_s13, [#allocation5]  }
   0x4   :  { %3722 = dma.done.wait [#allocation5], 256  }
   0x5   :  { %3723 = vsyncadd [#allocation5], 4294967040  ;;  %v27_v0 = vlaneseq  ;;  %v82_v14 = vstv %s7345_s0  ;;  %s3734_s0 = smov [#allocation7]   ;;  %s3543_s18 = sshll.u32 %s7347_s2, 4  ;;  %s3544_s18 = int_to_ptr.hbm [resolvable:$true] %s3543_s18 }
   0x6   :  { %s3541_s15 = sshll.u32 %s3734_s0, 4  ;;  %s3542_s15 = int_to_ptr.vmem [resolvable:$true] %s3541_s15 }
   0x7   :  { %v28_v1 = vshrl.u32 %v27_v0, 7  ;;  %v30_v2 = vand.u32 127, %v27_v0 }
   0x9   :  { %v31_v3 = vadd.s32 128, %v30_v2  ;;  %v48_v4 = vmul.u32 2048, %v28_v1  ;;  %v32_v5 = vadd.s32 256, %v30_v2  ;;  %v33_v6 = vadd.s32 384, %v30_v2 }
   0xa   :  { %v34_v7 = vadd.s32 512, %v30_v2  ;;  %v35_v8 = vadd.s32 640, %v30_v2  ;;  %v36_v9 = vadd.s32 768, %v30_v2  ;;  %v37_v10 = vadd.s32 896, %v30_v2 }
   0xb   :  { %v38_v11 = vadd.s32 1024, %v30_v2  ;;  %v39_v12 = vadd.s32 1152, %v30_v2  ;;  %v40_v13 = vadd.s32 1280, %v30_v2  ;;  %v41_v15 = vadd.s32 1408, %v30_v2 }
   0xc   :  { %v42_v16 = vadd.s32 1536, %v30_v2  ;;  %v49_v17 = vadd.s32 %v48_v4, %v30_v2  ;;  %v50_v18 = vadd.s32 %v48_v4, %v31_v3  ;;  %v43_v19 = vadd.s32 1664, %v30_v2 }
   0xd   :  { %v51_v20 = vadd.s32 %v48_v4, %v32_v5  ;;  %v52_v21 = vadd.s32 %v48_v4, %v33_v6  ;;  %v53_v22 = vadd.s32 %v48_v4, %v34_v7  ;;  %v44_v23 = vadd.s32 1792, %v30_v2 }
   0xe   :  { %v54_v24 = vadd.s32 %v48_v4, %v35_v8  ;;  %v55_v25 = vadd.s32 %v48_v4, %v36_v9  ;;  %v56_v26 = vadd.s32 %v48_v4, %v37_v10  ;;  %v45_v27 = vadd.s32 1920, %v30_v2 }
   0xf   :  { %v57_v28 = vadd.s32 %v48_v4, %v38_v11  ;;  %v58_v29 = vadd.s32 %v48_v4, %v39_v12  ;;  %v59_v30 = vadd.s32 %v48_v4, %v40_v13  ;;  %v60_v31 = vadd.s32 %v48_v4, %v41_v15 }
  0x10   :  { %v61_v32 = vadd.s32 %v48_v4, %v42_v16  ;;  %v66_v33 = vmul.u32 2654435761, %v49_v17  ;;  %v67_v34 = vmul.u32 2654435761, %v50_v18  ;;  %v62_v35 = vadd.s32 %v48_v4, %v43_v19 }
  0x11   :  { %v68_v36 = vmul.u32 2654435761, %v51_v20  ;;  %v69_v37 = vmul.u32 2654435761, %v52_v21  ;;  %v70_v38 = vmul.u32 2654435761, %v53_v22  ;;  %v63_v39 = vadd.s32 %v48_v4, %v44_v23 }
  0x12   :  { %v71_v40 = vmul.u32 2654435761, %v54_v24  ;;  %v72_v41 = vmul.u32 2654435761, %v55_v25  ;;  %v73_v42 = vmul.u32 2654435761, %v56_v26  ;;  %v64_v43 = vadd.s32 %v48_v4, %v45_v27 }
  0x13   :  { %v74_v44 = vmul.u32 2654435761, %v57_v28  ;;  %v75_v45 = vmul.u32 2654435761, %v58_v29  ;;  %v76_v46 = vmul.u32 2654435761, %v59_v30  ;;  %v83_v49 = vadd.s32 %v82_v14, %v66_v33 }
  0x14   :  { %v77_v47 = vmul.u32 2654435761, %v60_v31  ;;  %v78_v48 = vmul.u32 2654435761, %v61_v32  ;;  %v84_v50 = vadd.s32 %v82_v14, %v67_v34  ;;  %v79_v51 = vmul.u32 2654435761, %v62_v35 }
  0x15   :  { %v85_v52 = vadd.s32 %v82_v14, %v68_v36  ;;  %v86_v53 = vadd.s32 %v82_v14, %v69_v37  ;;  %v87_v54 = vadd.s32 %v82_v14, %v70_v38  ;;  %v80_v55 = vmul.u32 2654435761, %v63_v39 }
  0x16   :  { %v88_v56 = vadd.s32 %v82_v14, %v71_v40  ;;  %v89_v57 = vadd.s32 %v82_v14, %v72_v41  ;;  %v90_v58 = vadd.s32 %v82_v14, %v73_v42  ;;  %v81_v59 = vmul.u32 2654435761, %v64_v43 }
  0x17   :  { %v91_v60 = vadd.s32 %v82_v14, %v74_v44  ;;  %v92_v61 = vadd.s32 %v82_v14, %v75_v45  ;;  %v93_v62 = vadd.s32 %v82_v14, %v76_v46  ;;  %v94_v63 = vadd.s32 %v82_v14, %v77_v47 }
  0x18   :  { %v95_v0 = vadd.s32 %v82_v14, %v78_v48  ;;  %v99_v1 = vshrl.u32 %v83_v49, 16  ;;  %v100_v2 = vshrl.u32 %v84_v50, 16  ;;  %v96_v3 = vadd.s32 %v82_v14, %v79_v51 }
  0x19   :  { %v101_v4 = vshrl.u32 %v85_v52, 16  ;;  %v102_v5 = vshrl.u32 %v86_v53, 16  ;;  %v103_v6 = vshrl.u32 %v87_v54, 16  ;;  %v97_v7 = vadd.s32 %v82_v14, %v80_v55 }
  0x1a   :  { %v104_v8 = vshrl.u32 %v88_v56, 16  ;;  %v105_v9 = vshrl.u32 %v89_v57, 16  ;;  %v106_v10 = vshrl.u32 %v90_v58, 16  ;;  %v98_v11 = vadd.s32 %v82_v14, %v81_v59 }
  0x1b   :  { %v107_v12 = vshrl.u32 %v91_v60, 16  ;;  %v108_v13 = vshrl.u32 %v92_v61, 16  ;;  %v109_v15 = vshrl.u32 %v93_v62, 16  ;;  %v110_v16 = vshrl.u32 %v94_v63, 16 }
  0x1c   :  { %v111_v17 = vshrl.u32 %v95_v0, 16  ;;  %v115_v18 = vxor.u32 %v99_v1, %v83_v49  ;;  %v116_v19 = vxor.u32 %v100_v2, %v84_v50  ;;  %v112_v20 = vshrl.u32 %v96_v3, 16 }
  0x1d   :  { %v117_v21 = vxor.u32 %v101_v4, %v85_v52  ;;  %v118_v22 = vxor.u32 %v102_v5, %v86_v53  ;;  %v119_v23 = vxor.u32 %v103_v6, %v87_v54  ;;  %v113_v24 = vshrl.u32 %v97_v7, 16 }
  0x1e   :  { %v120_v25 = vxor.u32 %v104_v8, %v88_v56  ;;  %v121_v26 = vxor.u32 %v105_v9, %v89_v57  ;;  %v122_v27 = vxor.u32 %v106_v10, %v90_v58  ;;  %v114_v28 = vshrl.u32 %v98_v11, 16 }
  0x1f   :  { %v123_v29 = vxor.u32 %v107_v12, %v91_v60  ;;  %v124_v30 = vxor.u32 %v108_v13, %v92_v61  ;;  %v125_v31 = vxor.u32 %v109_v15, %v93_v62  ;;  %v126_v14 = vxor.u32 %v110_v16, %v94_v63 }
  0x20   :  { %v127_v32 = vxor.u32 %v111_v17, %v95_v0  ;;  %v131_v33 = vmul.u32 2246822507, %v115_v18  ;;  %v132_v34 = vmul.u32 2246822507, %v116_v19  ;;  %v128_v35 = vxor.u32 %v112_v20, %v96_v3 }
  0x21   :  { %v133_v36 = vmul.u32 2246822507, %v117_v21  ;;  %v134_v37 = vmul.u32 2246822507, %v118_v22  ;;  %v135_v38 = vmul.u32 2246822507, %v119_v23  ;;  %v129_v39 = vxor.u32 %v113_v24, %v97_v7 }
  0x22   :  { %v136_v40 = vmul.u32 2246822507, %v120_v25  ;;  %v137_v41 = vmul.u32 2246822507, %v121_v26  ;;  %v138_v42 = vmul.u32 2246822507, %v122_v27  ;;  %v130_v43 = vxor.u32 %v114_v28, %v98_v11 }
  0x23   :  { %v139_v44 = vmul.u32 2246822507, %v123_v29  ;;  %v140_v45 = vmul.u32 2246822507, %v124_v30  ;;  %v141_v46 = vmul.u32 2246822507, %v125_v31 }
  0x24   :  { %v142_v47 = vmul.u32 2246822507, %v126_v14  ;;  %v143_v48 = vmul.u32 2246822507, %v127_v32  ;;  %v147_v49 = vshrl.u32 %v131_v33, 13  ;;  %v148_v51 = vshrl.u32 %v132_v34, 13 }
  0x25   :  { %v144_v50 = vmul.u32 2246822507, %v128_v35  ;;  %v149_v52 = vshrl.u32 %v133_v36, 13  ;;  %v150_v53 = vshrl.u32 %v134_v37, 13  ;;  %v145_v54 = vmul.u32 2246822507, %v129_v39 }
  0x26   :  { %v151_v55 = vshrl.u32 %v135_v38, 13  ;;  %v152_v56 = vshrl.u32 %v136_v40, 13  ;;  %v153_v57 = vshrl.u32 %v137_v41, 13  ;;  %v146_v58 = vmul.u32 2246822507, %v130_v43 }
  0x27   :  { %v154_v59 = vshrl.u32 %v138_v42, 13  ;;  %v155_v60 = vshrl.u32 %v139_v44, 13  ;;  %v156_v61 = vshrl.u32 %v140_v45, 13  ;;  %v157_v62 = vshrl.u32 %v141_v46, 13 }
  0x28   :  { %v158_v63 = vshrl.u32 %v142_v47, 13  ;;  %v159_v0 = vshrl.u32 %v143_v48, 13  ;;  %v163_v1 = vxor.u32 %v147_v49, %v131_v33  ;;  %v160_v2 = vshrl.u32 %v144_v50, 13 }
  0x29   :  { %v164_v3 = vxor.u32 %v148_v51, %v132_v34  ;;  %v165_v4 = vxor.u32 %v149_v52, %v133_v36  ;;  %v166_v5 = vxor.u32 %v150_v53, %v134_v37  ;;  %v161_v6 = vshrl.u32 %v145_v54, 13 }
  0x2a   :  { %v167_v7 = vxor.u32 %v151_v55, %v135_v38  ;;  %v168_v8 = vxor.u32 %v152_v56, %v136_v40  ;;  %v169_v9 = vxor.u32 %v153_v57, %v137_v41  ;;  %v162_v10 = vshrl.u32 %v146_v58, 13 }
  0x2b   :  { %v170_v11 = vxor.u32 %v154_v59, %v138_v42  ;;  %v171_v12 = vxor.u32 %v155_v60, %v139_v44  ;;  %v172_v13 = vxor.u32 %v156_v61, %v140_v45  ;;  %v173_v15 = vxor.u32 %v157_v62, %v141_v46 }
  0x2c   :  { %v174_v16 = vxor.u32 %v158_v63, %v142_v47  ;;  %v175_v17 = vxor.u32 %v159_v0, %v143_v48  ;;  %v179_v18 = vmul.u32 3266489909, %v163_v1  ;;  %v176_v19 = vxor.u32 %v160_v2, %v144_v50 }
  0x2d   :  { %v180_v20 = vmul.u32 3266489909, %v164_v3  ;;  %v181_v21 = vmul.u32 3266489909, %v165_v4  ;;  %v182_v22 = vmul.u32 3266489909, %v166_v5  ;;  %v177_v23 = vxor.u32 %v161_v6, %v145_v54 }
  0x2e   :  { %v183_v24 = vmul.u32 3266489909, %v167_v7  ;;  %v184_v25 = vmul.u32 3266489909, %v168_v8  ;;  %v185_v26 = vmul.u32 3266489909, %v169_v9  ;;  %v178_v27 = vxor.u32 %v162_v10, %v146_v58 }
  0x2f   :  { %v186_v28 = vmul.u32 3266489909, %v170_v11  ;;  %v187_v29 = vmul.u32 3266489909, %v171_v12  ;;  %v188_v30 = vmul.u32 3266489909, %v172_v13 }
  0x30   :  { %v189_v31 = vmul.u32 3266489909, %v173_v15  ;;  %v190_v14 = vmul.u32 3266489909, %v174_v16  ;;  %v191_v32 = vmul.u32 3266489909, %v175_v17 }
  0x31   :  { %v192_v33 = vmul.u32 3266489909, %v176_v19  ;;  %v195_v34 = vshrl.u32 %v179_v18, 16  ;;  %v196_v35 = vshrl.u32 %v180_v20, 16  ;;  %v197_v36 = vshrl.u32 %v181_v21, 16 }
  0x32   :  { %v193_v37 = vmul.u32 3266489909, %v177_v23  ;;  %v198_v38 = vshrl.u32 %v182_v22, 16  ;;  %v199_v39 = vshrl.u32 %v183_v24, 16  ;;  %v200_v40 = vshrl.u32 %v184_v25, 16 }
  0x33   :  { %v194_v41 = vmul.u32 3266489909, %v178_v27  ;;  %v201_v42 = vshrl.u32 %v185_v26, 16  ;;  %v202_v43 = vshrl.u32 %v186_v28, 16  ;;  %v203_v44 = vshrl.u32 %v187_v29, 16 }
  0x34   :  { %v204_v45 = vshrl.u32 %v188_v30, 16  ;;  %v205_v46 = vshrl.u32 %v189_v31, 16  ;;  %v206_v47 = vshrl.u32 %v190_v14, 16  ;;  %v207_v48 = vshrl.u32 %v191_v32, 16 }
  0x35   :  { %v208_v49 = vshrl.u32 %v192_v33, 16  ;;  %v3756_v50 = vxor.u32 %v195_v34, %v179_v18  ;;  %v3758_v51 = vxor.u32 %v196_v35, %v180_v20  ;;  %v3760_v52 = vxor.u32 %v197_v36, %v181_v21 }
  0x36   :  { %v209_v53 = vshrl.u32 %v193_v37, 16  ;;  %v3762_v54 = vxor.u32 %v198_v38, %v182_v22  ;;  %v3764_v55 = vxor.u32 %v199_v39, %v183_v24  ;;  %v3766_v56 = vxor.u32 %v200_v40, %v184_v25 }
  0x37   :  { %7495 = vst [vmem:[#allocation10_spill] sm:$0xff] %v3756_v50  ;;  %v210_v57 = vshrl.u32 %v194_v41, 16  ;;  %v3768_v58 = vxor.u32 %v201_v42, %v185_v26  ;;  %v3770_v59 = vxor.u32 %v202_v43, %v186_v28  ;;  %v3772_v60 = vxor.u32 %v203_v44, %v187_v29 }
  0x38   :  { %7496 = vst [vmem:[#allocation11_spill] sm:$0xff] %v3758_v51  ;;  %v3774_v61 = vxor.u32 %v204_v45, %v188_v30  ;;  %v3776_v62 = vxor.u32 %v205_v46, %v189_v31  ;;  %v3778_v63 = vxor.u32 %v206_v47, %v190_v14  ;;  %v3780_v0 = vxor.u32 %v207_v48, %v191_v32 }
  0x39   :  { %7497 = vst [vmem:[#allocation12_spill] sm:$0xff] %v3760_v52  ;;  %v3782_v1 = vxor.u32 %v208_v49, %v192_v33  ;;  %v227_v2 = vxor.u32 2654435769, %v3756_v50  ;;  %v228_v3 = vxor.u32 2654435769, %v3758_v51  ;;  %v3787_v5 = vxor.u32 %v209_v53, %v193_v37 }
  0x3a   :  { %7498 = vst [vmem:[#allocation13_spill] sm:$0xff] %v3762_v54  ;;  %v229_v4 = vxor.u32 2654435769, %v3760_v52  ;;  %v230_v6 = vxor.u32 2654435769, %v3762_v54  ;;  %v3792_v9 = vxor.u32 %v210_v57, %v194_v41 }
  0x3b   :  { %7499 = vst [vmem:[#allocation14_spill] sm:$0xff] %v3764_v55  ;;  %v231_v7 = vxor.u32 2654435769, %v3764_v55  ;;  %v232_v8 = vxor.u32 2654435769, %v3766_v56  ;;  %v243_v19 = vshrl.u32 %v227_v2, 16 }
  0x3c   :  { %7500 = vst [vmem:[#allocation15_spill] sm:$0xff] %v3766_v56  ;;  %v233_v10 = vxor.u32 2654435769, %v3768_v58  ;;  %v234_v11 = vxor.u32 2654435769, %v3770_v59  ;;  %v244_v21 = vshrl.u32 %v228_v3, 16 }
  0x3d   :  { %7501 = vst [vmem:[#allocation16_spill] sm:$0xff] %v3768_v58  ;;  %v235_v12 = vxor.u32 2654435769, %v3772_v60  ;;  %v236_v13 = vxor.u32 2654435769, %v3774_v61  ;;  %v245_v22 = vshrl.u32 %v229_v4, 16  ;;  %v259_v34 = vxor.u32 %v243_v19, %v227_v2 }
  0x3e   :  { %7502 = vst [vmem:[#allocation17_spill] sm:$0xff] %v3770_v59  ;;  %v237_v15 = vxor.u32 2654435769, %v3776_v62  ;;  %v238_v16 = vxor.u32 2654435769, %v3778_v63  ;;  %v246_v23 = vshrl.u32 %v230_v6, 16  ;;  %v260_v36 = vxor.u32 %v244_v21, %v228_v3 }
  0x3f   :  { %7503 = vst [vmem:[#allocation18_spill] sm:$0xff] %v3772_v60  ;;  %v239_v17 = vxor.u32 2654435769, %v3780_v0  ;;  %v240_v18 = vxor.u32 2654435769, %v3782_v1  ;;  %v247_v25 = vshrl.u32 %v231_v7, 16  ;;  %v261_v37 = vxor.u32 %v245_v22, %v229_v4 }
  0x40   :  { %7504 = vst [vmem:[#allocation19_spill] sm:$0xff] %v3774_v61  ;;  %v241_v20 = vxor.u32 2654435769, %v3787_v5  ;;  %v242_v24 = vxor.u32 2654435769, %v3792_v9  ;;  %v248_v26 = vshrl.u32 %v232_v8, 16  ;;  %v262_v38 = vxor.u32 %v246_v23, %v230_v6 }
  0x41   :  { %7505 = vst [vmem:[#allocation20_spill] sm:$0xff] %v3776_v62  ;;  %v249_v27 = vshrl.u32 %v233_v10, 16  ;;  %v250_v28 = vshrl.u32 %v234_v11, 16  ;;  %v251_v29 = vshrl.u32 %v235_v12, 16  ;;  %v252_v30 = vshrl.u32 %v236_v13, 16 }
  0x42   :  { %7506 = vst [vmem:[#allocation21_spill] sm:$0xff] %v3778_v63  ;;  %v253_v31 = vshrl.u32 %v237_v15, 16  ;;  %v254_v14 = vshrl.u32 %v238_v16, 16  ;;  %v255_v32 = vshrl.u32 %v239_v17, 16  ;;  %v256_v33 = vshrl.u32 %v240_v18, 16 }
  0x43   :  { %7507 = vst [vmem:[#allocation22_spill] sm:$0xff] %v3780_v0  ;;  %v257_v35 = vshrl.u32 %v241_v20, 16  ;;  %v258_v39 = vshrl.u32 %v242_v24, 16  ;;  %v263_v40 = vxor.u32 %v247_v25, %v231_v7  ;;  %v264_v41 = vxor.u32 %v248_v26, %v232_v8 }
  0x44   :  { %7508 = vst [vmem:[#allocation23_spill] sm:$0xff] %v3782_v1  ;;  %v265_v42 = vxor.u32 %v249_v27, %v233_v10  ;;  %v266_v43 = vxor.u32 %v250_v28, %v234_v11  ;;  %v267_v44 = vxor.u32 %v251_v29, %v235_v12  ;;  %v268_v45 = vxor.u32 %v252_v30, %v236_v13 }
  0x45   :  { %7509 = vst [vmem:[#allocation24_spill] sm:$0xff] %v3787_v5  ;;  %v269_v46 = vxor.u32 %v253_v31, %v237_v15  ;;  %v270_v47 = vxor.u32 %v254_v14, %v238_v16  ;;  %v271_v48 = vxor.u32 %v255_v32, %v239_v17  ;;  %v272_v49 = vxor.u32 %v256_v33, %v240_v18 }
  0x46   :  { %7510 = vst [vmem:[#allocation25_spill] sm:$0xff] %v3792_v9  ;;  %v275_v53 = vmul.u32 2246822507, %v259_v34  ;;  %v273_v57 = vxor.u32 %v257_v35, %v241_v20  ;;  %v276_v9 = vmul.u32 2246822507, %v260_v36  ;;  %v274_v19 = vxor.u32 %v258_v39, %v242_v24 }
  0x47   :  { %v277_v5 = vmul.u32 2246822507, %v261_v37  ;;  %v278_v2 = vmul.u32 2246822507, %v262_v38  ;;  %v279_v3 = vmul.u32 2246822507, %v263_v40 }
  0x48   :  { %v280_v4 = vmul.u32 2246822507, %v264_v41  ;;  %v281_v6 = vmul.u32 2246822507, %v265_v42  ;;  %v282_v21 = vmul.u32 2246822507, %v266_v43 }
  0x49   :  { %v283_v7 = vmul.u32 2246822507, %v267_v44  ;;  %v284_v8 = vmul.u32 2246822507, %v268_v45  ;;  %v285_v10 = vmul.u32 2246822507, %v269_v46 }
  0x4a   :  { %v286_v11 = vmul.u32 2246822507, %v270_v47  ;;  %v287_v12 = vmul.u32 2246822507, %v271_v48  ;;  %v288_v13 = vmul.u32 2246822507, %v272_v49 }
  0x4b   :  { %v289_v15 = vmul.u32 2246822507, %v273_v57  ;;  %v291_v16 = vshrl.u32 %v275_v53, 13  ;;  %v290_v17 = vmul.u32 2246822507, %v274_v19  ;;  %v292_v18 = vshrl.u32 %v276_v9, 13 }
  0x4c   :  { %v293_v22 = vshrl.u32 %v277_v5, 13  ;;  %v294_v20 = vshrl.u32 %v278_v2, 13  ;;  %v295_v23 = vshrl.u32 %v279_v3, 13  ;;  %v296_v25 = vshrl.u32 %v280_v4, 13 }
  0x4d   :  { %v297_v26 = vshrl.u32 %v281_v6, 13  ;;  %v298_v24 = vshrl.u32 %v282_v21, 13  ;;  %v299_v27 = vshrl.u32 %v283_v7, 13  ;;  %v300_v28 = vshrl.u32 %v284_v8, 13 }
  0x4e   :  { %v301_v29 = vshrl.u32 %v285_v10, 13  ;;  %v302_v30 = vshrl.u32 %v286_v11, 13  ;;  %v303_v31 = vshrl.u32 %v287_v12, 13  ;;  %v304_v14 = vshrl.u32 %v288_v13, 13 }
  0x4f   :  { %v305_v32 = vshrl.u32 %v289_v15, 13  ;;  %v307_v33 = vxor.u32 %v291_v16, %v275_v53  ;;  %v306_v34 = vshrl.u32 %v290_v17, 13  ;;  %v308_v35 = vxor.u32 %v292_v18, %v276_v9 }
  0x50   :  { %v309_v36 = vxor.u32 %v293_v22, %v277_v5  ;;  %v310_v37 = vxor.u32 %v294_v20, %v278_v2  ;;  %v311_v38 = vxor.u32 %v295_v23, %v279_v3  ;;  %v312_v39 = vxor.u32 %v296_v25, %v280_v4 }
  0x51   :  { %v313_v40 = vxor.u32 %v297_v26, %v281_v6  ;;  %v314_v41 = vxor.u32 %v298_v24, %v282_v21  ;;  %v315_v42 = vxor.u32 %v299_v27, %v283_v7  ;;  %v316_v43 = vxor.u32 %v300_v28, %v284_v8 }
  0x52   :  { %v317_v44 = vxor.u32 %v301_v29, %v285_v10  ;;  %v318_v45 = vxor.u32 %v302_v30, %v286_v11  ;;  %v319_v46 = vxor.u32 %v303_v31, %v287_v12  ;;  %v320_v47 = vxor.u32 %v304_v14, %v288_v13 }
  0x53   :  { %v321_v48 = vxor.u32 %v305_v32, %v289_v15  ;;  %v323_v49 = vmul.u32 3266489909, %v307_v33  ;;  %v3804_v57 = vxor.u32 %v306_v34, %v290_v17  ;;  %v324_v19 = vmul.u32 3266489909, %v308_v35 }
  0x54   :  { %v325_v53 = vmul.u32 3266489909, %v309_v36  ;;  %v326_v16 = vmul.u32 3266489909, %v310_v37  ;;  %v327_v9 = vmul.u32 3266489909, %v311_v38 }
  0x55   :  { %v328_v5 = vmul.u32 3266489909, %v312_v39  ;;  %v329_v2 = vmul.u32 3266489909, %v313_v40  ;;  %v330_v3 = vmul.u32 3266489909, %v314_v41 }
  0x56   :  { %v331_v4 = vmul.u32 3266489909, %v315_v42  ;;  %v332_v6 = vmul.u32 3266489909, %v316_v43  ;;  %v333_v21 = vmul.u32 3266489909, %v317_v44 }
  0x57   :  { %v334_v7 = vmul.u32 3266489909, %v318_v45  ;;  %v335_v8 = vmul.u32 3266489909, %v319_v46  ;;  %v336_v10 = vmul.u32 3266489909, %v320_v47 }
  0x58   :  { %v337_v11 = vmul.u32 3266489909, %v321_v48  ;;  %v7352_v12 = vmul.u32 3266489909, %v3804_v57  ;;  %v339_v13 = vshrl.u32 %v323_v49, 16  ;;  %v340_v15 = vshrl.u32 %v324_v19, 16 }
  0x59   :  { %v341_v17 = vshrl.u32 %v325_v53, 16  ;;  %v342_v18 = vshrl.u32 %v326_v16, 16  ;;  %v343_v22 = vshrl.u32 %v327_v9, 16  ;;  %v344_v20 = vshrl.u32 %v328_v5, 16 }
  0x5a   :  { %v345_v23 = vshrl.u32 %v329_v2, 16  ;;  %v346_v25 = vshrl.u32 %v330_v3, 16  ;;  %v347_v26 = vshrl.u32 %v331_v4, 16  ;;  %v348_v24 = vshrl.u32 %v332_v6, 16 }
  0x5b   :  { %v349_v27 = vshrl.u32 %v333_v21, 16  ;;  %v350_v28 = vshrl.u32 %v334_v7, 16  ;;  %v351_v29 = vshrl.u32 %v335_v8, 16  ;;  %v352_v30 = vshrl.u32 %v336_v10, 16 }
  0x5c   :  { %v353_v31 = vshrl.u32 %v337_v11, 16  ;;  %v3809_v14 = vshrl.u32 %v7352_v12, 16  ;;  %v3811_v32 = vxor.u32 %v339_v13, %v323_v49  ;;  %v3813_v33 = vxor.u32 %v340_v15, %v324_v19 }
  0x5d   :  { %v3815_v34 = vxor.u32 %v341_v17, %v325_v53  ;;  %v3817_v35 = vxor.u32 %v342_v18, %v326_v16  ;;  %v3819_v36 = vxor.u32 %v343_v22, %v327_v9  ;;  %v3821_v37 = vxor.u32 %v344_v20, %v328_v5  ;;  %v7527_v17 = vld [vmem:[#allocation25_spill] sm:$0xff] }
  0x5e   :  { %7511 = vst [vmem:[#allocation26_spill] sm:$0xff] %v3811_v32  ;;  %v3823_v38 = vxor.u32 %v345_v23, %v329_v2  ;;  %v3825_v39 = vxor.u32 %v346_v25, %v330_v3  ;;  %v3827_v40 = vxor.u32 %v347_v26, %v331_v4  ;;  %v3829_v41 = vxor.u32 %v348_v24, %v332_v6 }
  0x5f   :  { %7512 = vst [vmem:[#allocation27_spill] sm:$0xff] %v3813_v33  ;;  %v3831_v42 = vxor.u32 %v349_v27, %v333_v21  ;;  %v371_v43 = vand.u32 16777215, %v3756_v50  ;;  %v3834_v44 = vxor.u32 %v350_v28, %v334_v7  ;;  %v372_v45 = vand.u32 16777215, %v3758_v51 }
  0x60   :  { %7513 = vst [vmem:[#allocation28_spill] sm:$0xff] %v3815_v34  ;;  %v373_v46 = vand.u32 16777215, %v3760_v52  ;;  %v374_v47 = vand.u32 16777215, %v3762_v54  ;;  %v3839_v48 = vxor.u32 %v351_v29, %v335_v8  ;;  %v3844_v16 = vxor.u32 %v352_v30, %v336_v10  ;;  %v7526_v8 = vld [vmem:[#allocation24_spill] sm:$0xff] }
  0x61   :  { %7514 = vst [vmem:[#allocation29_spill] sm:$0xff] %v3817_v35  ;;  %v375_v49 = vand.u32 16777215, %v3764_v55  ;;  %v376_v19 = vand.u32 16777215, %v3766_v56  ;;  %v3849_v3 = vxor.u32 %v353_v31, %v337_v11  ;;  %v387_v10 = vcvt.s32.f32 %v371_v43 }
  0x62   :  { %7515 = vst [vmem:[#allocation30_spill] sm:$0xff] %v3819_v36  ;;  %v377_v53 = vand.u32 16777215, %v3768_v58  ;;  %v378_v9 = vand.u32 16777215, %v3770_v59  ;;  %v388_v22 = vcvt.s32.f32 %v372_v45  ;;  %v389_v20 = vcvt.s32.f32 %v373_v46 }
  0x63   :  { %7516 = vst [vmem:[#allocation31_spill] sm:$0xff] %v3821_v37  ;;  %v379_v5 = vand.u32 16777215, %v3772_v60  ;;  %v380_v2 = vand.u32 16777215, %v3774_v61  ;;  %v390_v23 = vcvt.s32.f32 %v374_v47  ;;  %v391_v11 = vcvt.s32.f32 %v375_v49 }
  0x64   :  { %7517 = vst [vmem:[#allocation32_spill] sm:$0xff] %v3823_v38  ;;  %v381_v4 = vand.u32 16777215, %v3776_v62  ;;  %v382_v6 = vand.u32 16777215, %v3778_v63  ;;  %v392_v25 = vcvt.s32.f32 %v376_v19  ;;  %v393_v26 = vcvt.s32.f32 %v377_v53 }
  0x65   :  { %7518 = vst [vmem:[#allocation33_spill] sm:$0xff] %v3825_v39  ;;  %v383_v21 = vand.u32 16777215, %v3780_v0  ;;  %v384_v7 = vand.u32 16777215, %v3782_v1  ;;  %v394_v24 = vcvt.s32.f32 %v378_v9  ;;  %v395_v27 = vcvt.s32.f32 %v379_v5 }
  0x66   :  { %7519 = vst [vmem:[#allocation34_spill] sm:$0xff] %v3827_v40  ;;  %v385_v13 = vand.u32 16777215, %v7526_v8  ;;  %v435_v15 = vand.u32 16777215, %v3811_v32  ;;  %v396_v28 = vcvt.s32.f32 %v380_v2  ;;  %v397_v29 = vcvt.s32.f32 %v381_v4 }
  0x67   :  { %7520 = vst [vmem:[#allocation35_spill] sm:$0xff] %v3829_v41  ;;  %v386_v18 = vand.u32 16777215, %v7527_v17  ;;  %v398_v30 = vcvt.s32.f32 %v382_v6  ;;  %v399_v31 = vcvt.s32.f32 %v383_v21  ;;  %v400_v12 = vcvt.s32.f32 %v384_v7 }
  0x68   :  { %7521 = vst [vmem:[#allocation36_spill] sm:$0xff] %v3831_v42  ;;  %v401_v1 = vcvt.s32.f32 %v385_v13  ;;  %v451_v8 = vcvt.s32.f32 %v435_v15  ;;  %v403_v0 = vadd.f32 1.0, %v387_v10  ;;  %v404_v32 = vadd.f32 1.0, %v388_v22 }
  0x69   :  { %7522 = vst [vmem:[#allocation37_spill] sm:$0xff] %v3834_v44  ;;  %v402_v43 = vcvt.s32.f32 %v386_v18  ;;  %v405_v63 = vadd.f32 1.0, %v389_v20  ;;  %v406_v17 = vadd.f32 1.0, %v390_v23  ;;  %v407_v45 = vadd.f32 1.0, %v391_v11 }
  0x6a   :  { %7523 = vst [vmem:[#allocation38_spill] sm:$0xff] %v3839_v48  ;;  %v408_v46 = vadd.f32 1.0, %v392_v25  ;;  %v409_v47 = vadd.f32 1.0, %v393_v26  ;;  %v410_v49 = vadd.f32 1.0, %v394_v24  ;;  %v411_v19 = vadd.f32 1.0, %v395_v27 }
  0x6b   :  { %7524 = vst [vmem:[#allocation39_spill] sm:$0xff] %v3844_v16  ;;  %v412_v53 = vadd.f32 1.0, %v396_v28  ;;  %v413_v9 = vadd.f32 1.0, %v397_v29  ;;  %v414_v5 = vadd.f32 1.0, %v398_v30  ;;  %v415_v2 = vadd.f32 1.0, %v399_v31 }
  0x6c   :  { %7525 = vst [vmem:[#allocation40_spill] sm:$0xff] %v3849_v3  ;;  %v416_v4 = vadd.f32 1.0, %v400_v12  ;;  %v467_v6 = vmul.f32 5.9604645e-08, %v451_v8  ;;  %v417_v21 = vadd.f32 1.0, %v401_v1  ;;  %v418_v7 = vadd.f32 1.0, %v402_v43 }
  0x6d   :  { %v419_v13 = vmul.f32 5.9604645e-08, %v403_v0  ;;  %v420_v15 = vmul.f32 5.9604645e-08, %v404_v32  ;;  %v421_v18 = vmul.f32 5.9604645e-08, %v405_v63  ;;  %v422_v10 = vmul.f32 5.9604645e-08, %v406_v17 }
  0x6e   :  { %v423_v22 = vmul.f32 5.9604645e-08, %v407_v45  ;;  %v424_v20 = vmul.f32 5.9604645e-08, %v408_v46  ;;  %v425_v23 = vmul.f32 5.9604645e-08, %v409_v47  ;;  %v3858_v11 = vmul.f32 5.9604645e-08, %v410_v49 }
  0x6f   :  { %v3860_v25 = vmul.f32 5.9604645e-08, %v411_v19  ;;  %v3862_v26 = vmul.f32 5.9604645e-08, %v412_v53  ;;  %v3864_v24 = vmul.f32 5.9604645e-08, %v413_v9  ;;  %v3866_v27 = vmul.f32 5.9604645e-08, %v414_v5 }
  0x70   :  { %v3868_v12 = vmul.f32 5.9604645e-08, %v415_v2  ;;  %v3870_v1 = vmul.f32 6.2831855, %v467_v6  ;;  %v3872_v0 = vmul.f32 5.9604645e-08, %v416_v4  ;;  %v3874_v63 = vmul.f32 5.9604645e-08, %v417_v21 }
  0x71   :  { %v3876_v32 = vmul.f32 5.9604645e-08, %v418_v7  ;;  %v436_v8 = vand.u32 16777215, %v3813_v33  ;;  %v7529_v17 = vmul.u32 3266489909, %v3804_v57  ;;  %3610 = vlog2.f32 %v419_v13 }
  0x72   :  { %7528 = vst [vmem:[#allocation41_spill] sm:$0xff] %v3870_v1  ;;  %v437_v29 = vand.u32 16777215, %v3815_v34  ;;  %v438_v30 = vand.u32 16777215, %v3817_v35  ;;  %v742_v57 = vand.u32 2139095040, %v3870_v1  ;;  %3612 = vlog2.f32 %v420_v15 }
  0x73   :  { %v3882_v28 = vxor.u32 %v3809_v14, %v7529_v17  ;;  %v439_v31 = vand.u32 16777215, %v3819_v36  ;;  %v440_v43 = vand.u32 16777215, %v3821_v37  ;;  %v441_v45 = vand.u32 16777215, %v3823_v38 }
  0x74   :  { %v442_v46 = vand.u32 16777215, %v3825_v39  ;;  %v443_v47 = vand.u32 16777215, %v3827_v40  ;;  %v444_v49 = vand.u32 16777215, %v3829_v41  ;;  %v452_v9 = vcvt.s32.f32 %v436_v8 }
  0x75   :  { %7530 = vst [vmem:[#allocation42_spill] sm:$0xff] %v3882_v28  ;;  %v445_v14 = vand.u32 16777215, %v3831_v42  ;;  %v446_v19 = vand.u32 16777215, %v3834_v44  ;;  %v453_v6 = vcvt.s32.f32 %v437_v29  ;;  %v454_v21 = vcvt.s32.f32 %v438_v30 }
  0x76   :  { %v447_v53 = vand.u32 16777215, %v3839_v48  ;;  %v448_v5 = vand.u32 16777215, %v3844_v16  ;;  %v449_v2 = vand.u32 16777215, %v3849_v3  ;;  %v455_v7 = vcvt.s32.f32 %v439_v31 }
  0x77   :  { %v450_v4 = vand.u32 16777215, %v3882_v28  ;;  %v456_v17 = vcvt.s32.f32 %v440_v43  ;;  %v457_v13 = vcvt.s32.f32 %v441_v45  ;;  %v458_v41 = vcvt.s32.f32 %v442_v46  ;;  %v3611_v8 = vpop.eup %3610 }
  0x78   :  { %v459_v40 = vcvt.s32.f32 %v443_v47  ;;  %v460_v39 = vcvt.s32.f32 %v444_v49  ;;  %v743_v42 = vshrl.u32 %v742_v57, 23  ;;  %v461_v38 = vcvt.s32.f32 %v445_v14  ;;  %v3613_v14 = vpop.eup %3612 }
  0x79   :  { %v462_v44 = vcvt.s32.f32 %v446_v19  ;;  %v463_v37 = vcvt.s32.f32 %v447_v53  ;;  %v464_v48 = vcvt.s32.f32 %v448_v5  ;;  %v465_v16 = vcvt.s32.f32 %v449_v2 }
  0x7a   :  { %v466_v36 = vcvt.s32.f32 %v450_v4  ;;  %3614 = vlog2.f32 %v421_v18  ;;  %v468_v3 = vmul.f32 5.9604645e-08, %v452_v9  ;;  %v469_v28 = vmul.f32 5.9604645e-08, %v453_v6 }
  0x7b   :  { %v470_v29 = vmul.f32 5.9604645e-08, %v454_v21  ;;  %3616 = vlog2.f32 %v422_v10  ;;  %v471_v30 = vmul.f32 5.9604645e-08, %v455_v7  ;;  %v472_v31 = vmul.f32 5.9604645e-08, %v456_v17 }
  0x7c   :  { %3618 = vlog2.f32 %v423_v22  ;;  %v3553_v43 = vadd.s32 4294967169, %v743_v42  ;;  %v473_v45 = vmul.f32 5.9604645e-08, %v457_v13  ;;  %v474_v46 = vmul.f32 5.9604645e-08, %v458_v41 }
  0x7d   :  { %v475_v47 = vmul.f32 5.9604645e-08, %v459_v40  ;;  %3620 = vlog2.f32 %v424_v20  ;;  %v476_v49 = vmul.f32 5.9604645e-08, %v460_v39  ;;  %v477_v57 = vmul.f32 5.9604645e-08, %v461_v38 }
  0x7e   :  { %v484_v15 = vmul.f32 0.6931472, %v3611_v8  ;;  %3622 = vlog2.f32 %v425_v23  ;;  %v478_v19 = vmul.f32 5.9604645e-08, %v462_v44  ;;  %v479_v53 = vmul.f32 5.9604645e-08, %v463_v37 }
  0x7f   :  { %3624 = vlog2.f32 %v3858_v11  ;;  %v749_v18 = vadd.s32 1, %v3553_v43  ;;  %v480_v10 = vmul.f32 5.9604645e-08, %v464_v48  ;;  %v481_v5 = vmul.f32 5.9604645e-08, %v465_v16 }
  0x80   :  { %v3615_v9 = vpop.eup %3614  ;;  %v482_v2 = vmul.f32 5.9604645e-08, %v466_v36  ;;  %v3900_v22 = vmul.f32 6.2831855, %v468_v3  ;;  %v3902_v41 = vmul.f32 6.2831855, %v469_v28  ;;  %3626 = vlog2.f32 %v3860_v25 }
  0x81   :  { %v3617_v42 = vpop.eup %3616  ;;  %v3904_v40 = vmul.f32 6.2831855, %v470_v29  ;;  %v3906_v38 = vmul.f32 6.2831855, %v471_v30  ;;  %v486_v20 = vmul.f32 0.6931472, %v3613_v14  ;;  %3628 = vlog2.f32 %v3862_v26 }
  0x82   :  { %7531 = vst [vmem:[#allocation43_spill] sm:$0xff] %v3900_v22  ;;  %v3619_v39 = vpop.eup %3618  ;;  %v3909_v37 = vmul.f32 -2.0, %v484_v15  ;;  %v3911_v44 = vmul.f32 6.2831855, %v472_v31  ;;  %v3914_v36 = vmul.f32 6.2831855, %v473_v45  ;;  %3630 = vlog2.f32 %v3864_v24 }
  0x83   :  { %7532 = vst [vmem:[#allocation44_spill] sm:$0xff] %v3902_v41  ;;  %v3621_v48 = vpop.eup %3620  ;;  %v3916_v16 = vmul.f32 6.2831855, %v474_v46  ;;  %vm750_vm0 = vcmp.gt.s32.totalorder %v749_v18, 0  ;;  %v3919_v23 = vmul.f32 6.2831855, %v475_v47  ;;  %3632 = vlog2.f32 %v3866_v27 }
  0x84   :  { %7533 = vst [vmem:[#allocation45_spill] sm:$0xff] %v3904_v40  ;;  %v3623_v3 = vpop.eup %3622  ;;  %v3921_v11 = vmul.f32 6.2831855, %v476_v49  ;;  %v3923_v25 = vmul.f32 6.2831855, %v477_v57  ;;  %v751_v21 = vsel %vm750_vm0, %v749_v18, 0  ;;  %3634 = vrsqrt.f32 %v3909_v37 }
  0x85   :  { %7534 = vst [vmem:[#allocation46_spill] sm:$0xff] %v3906_v38  ;;  %v3625_v28 = vpop.eup %3624  ;;  %v3926_v6 = vmul.f32 6.2831855, %v478_v19  ;;  %v3928_v26 = vmul.f32 6.2831855, %v479_v53  ;;  %v3931_v13 = vmul.f32 -2.0, %v486_v20  ;;  %3636 = vlog2.f32 %v3868_v12 }
  0x86   :  { %7535 = vst [vmem:[#allocation47_spill] sm:$0xff] %v3911_v44  ;;  %v488_v7 = vmul.f32 0.6931472, %v3615_v9  ;;  %v490_v17 = vmul.f32 0.6931472, %v3617_v42  ;;  %v753_v29 = vand.u32 31, %v751_v21  ;;  %v3627_v30 = vpop.eup %3626  ;;  %3638 = vlog2.f32 %v3872_v0 }
  0x87   :  { %7536 = vst [vmem:[#allocation48_spill] sm:$0xff] %v3914_v36  ;;  %v492_v24 = vmul.f32 0.6931472, %v3619_v39  ;;  %v494_v8 = vmul.f32 0.6931472, %v3621_v48  ;;  %v3629_v46 = vpop.eup %3628  ;;  %3640 = vlog2.f32 %v3874_v63  ;;  %vm538_vm6 = vcmp.eq.f32.partialorder %v3909_v37, inf }
  0x88   :  { %7537 = vst [vmem:[#allocation49_spill] sm:$0xff] %v3916_v16  ;;  %v496_v31 = vmul.f32 0.6931472, %v3623_v3  ;;  %v498_v43 = vmul.f32 0.6931472, %v3625_v28  ;;  %v3631_v57 = vpop.eup %3630  ;;  %v3944_v15 = vmul.f32 -2.0, %v488_v7  ;;  %3642 = vrsqrt.f32 %v3931_v13 }
  0x89   :  { %7538 = vst [vmem:[#allocation50_spill] sm:$0xff] %v3919_v23  ;;  %v3935_v45 = vmul.f32 6.2831855, %v480_v10  ;;  %v3938_v47 = vmul.f32 6.2831855, %v481_v5  ;;  %v3946_v14 = vmul.f32 -2.0, %v490_v17  ;;  %v3633_v18 = vpop.eup %3632  ;;  %3644 = vlog2.f32 %v3876_v32 }
  0x8a   :  { %7539 = vst [vmem:[#allocation51_spill] sm:$0xff] %v3921_v11  ;;  %v3940_v27 = vmul.f32 6.2831855, %v482_v2  ;;  %v3948_v19 = vsub.s32 32, %v753_v29  ;;  %v3950_v12 = vmul.f32 -2.0, %v492_v24  ;;  %v3952_v53 = vmul.f32 -2.0, %v494_v8  ;;  %v3960_v2 = vpop.eup %3634 }
  0x8b   :  { %7540 = vst [vmem:[#allocation52_spill] sm:$0xff] %v3923_v25  ;;  %v500_v9 = vmul.f32 0.6931472, %v3627_v30  ;;  %v502_v10 = vmul.f32 0.6931472, %v3629_v46  ;;  %v3956_v5 = vmul.f32 -2.0, %v496_v31  ;;  %v3637_v39 = vpop.eup %3636  ;;  %3646 = vrsqrt.f32 %v3944_v15 }
  0x8c   :  { %7541 = vst [vmem:[#allocation53_spill] sm:$0xff] %v3926_v6  ;;  %v3958_v63 = vmul.f32 -2.0, %v498_v43  ;;  %v504_v42 = vmul.f32 0.6931472, %v3631_v57  ;;  %v7381_v20 = vmov 2102212464   ;;  %v3639_v7 = vpop.eup %3638  ;;  %3648 = vrsqrt.f32 %v3946_v14 }
  0x8d   :  { %7542 = vst [vmem:[#allocation54_spill] sm:$0xff] %v3928_v26  ;;  %v765_v48 = vshll.u32 %v7381_v20, %v753_v29  ;;  %v7386_v3 = vmov 920167782   ;;  %v3968_v17 = vshrl.u32 %v751_v21, 5  ;;  %v3641_v24 = vpop.eup %3640  ;;  %v532_v8 = vmul.f32 %v3960_v2, %v3909_v37 }
  0x8e   :  { %7543 = vst [vmem:[#allocation55_spill] sm:$0xff] %v3935_v45  ;;  %v766_v28 = vshrl.u32 %v7386_v3, %v3948_v19  ;;  %v7369_v32 = vmov 683565275   ;;  %v7376_v31 = vmov 2475754826   ;;  %v3975_v0 = vpop.eup %3642  ;;  %v763_v49 = vshrl.u32 %v7381_v20, %v3948_v19 }
  0x8f   :  { %7544 = vst [vmem:[#allocation56_spill] sm:$0xff] %v3938_v47  ;;  %v756_v30 = vshll.u32 %v7369_v32, %v753_v29  ;;  %v759_v43 = vshll.u32 %v7376_v31, %v753_v29  ;;  %v7379_v46 = vmov 2131351028   ;;  %v757_v4 = vshrl.u32 %v7376_v31, %v3948_v19  ;;  %v3645_v62 = vpop.eup %3644 }
  0x90   :  { %7545 = vst [vmem:[#allocation57_spill] sm:$0xff] %v3940_v27  ;;  %v762_v57 = vshll.u32 %v7379_v46, %v753_v29  ;;  %v760_v21 = vshrl.u32 %v7379_v46, %v3948_v19  ;;  %3650 = vrsqrt.f32 %v3950_v12  ;;  %v767_v32 = vor.u32 %v766_v28, %v765_v48 }
  0x91   :  { %7546 = vst [vmem:[#allocation58_spill] sm:$0xff] %v3958_v63  ;;  %v768_v35 = vshll.u32 %v7386_v3, %v753_v29  ;;  %v7384_v34 = vmov 1326507024   ;;  %v3987_v61 = vmul.f32 -2.0, %v500_v9  ;;  %v7547_v60 = vand.u32 2147483647, %v3870_v1  ;;  %v3993_v20 = vpop.eup %3646 }
  0x92   :  { %v769_v33 = vshrl.u32 %v7384_v34, %v3948_v19  ;;  %vm774_vm1 = vcmp.lt.s32.totalorder %v3968_v17, 4  ;;  %v506_v59 = vmul.f32 0.6931472, %v3633_v18  ;;  %v3995_v48 = vmul.f32 -2.0, %v502_v10  ;;  %v4000_v34 = vpop.eup %3648 }
  0x93   :  { %v746_v46 = vand.u32 8388607, %v7547_v60  ;;  %v544_v29 = vmul.f32 %v3975_v0, %v3931_v13  ;;  %v896_v28 = vand.u32 2139095040, %v3900_v22  ;;  %v533_v9 = vmul.f32 %v3960_v2, %v532_v8 }
  0x94   :  { %v4003_v31 = vor.u32 %v757_v4, %v756_v30  ;;  %v4005_v3 = vor.u32 %v760_v21, %v759_v43  ;;  %v4007_v60 = vor.u32 %v763_v49, %v762_v57  ;;  %v770_v58 = vor.u32 %v769_v33, %v768_v35 }
  0x95   :  { %vm7426_vm2 = vcmp.lt.s32.totalorder %v3968_v17, 1  ;;  %vm7425_vm3 = vcmp.lt.s32.totalorder %v3968_v17, 3  ;;  %v780_v18 = vsel %vm774_vm1, %v767_v32, 920167782  ;;  %v556_v10 = vmul.f32 %v3993_v20, %v3944_v15 }
  0x96   :  { %3652 = vrsqrt.f32 %v3952_v53  ;;  %v747_v8 = vor.u32 8388608, %v746_v46  ;;  %v897_v4 = vshrl.u32 %v896_v28, 23  ;;  %v4016_v30 = vpop.eup %3650  ;;  %v508_v43 = vmul.f32 0.6931472, %v3637_v39 }
  0x97   :  { %v510_v49 = vmul.f32 0.6931472, %v3639_v7  ;;  %v4018_v57 = vmul.f32 -2.0, %v504_v42  ;;  %v545_v33 = vmul.f32 %v3975_v0, %v544_v29  ;;  %v568_v35 = vmul.f32 %v4000_v34, %v3946_v14 }
  0x98   :  { %vm7424_vm4 = vcmp.lt.s32.totalorder %v3968_v17, 2  ;;  %v779_v21 = vsel %vm7426_vm2, %v4003_v31, %v4005_v3  ;;  %v781_v46 = vsel %vm7425_vm3, %v4007_v60, %v780_v18  ;;  %v4031_v39 = vmul.f32 -2.0, %v506_v59 }
  0x99   :  { %7548 = vst [vmem:[#allocation59_spill] sm:$0xff] %v4018_v57  ;;  %v534_v42 = vmul.f32 0.5, %v533_v9  ;;  %v784_v29 = vsel %vm774_vm1, %v770_v58, 1326507024  ;;  %v557_v28 = vmul.f32 %v3993_v20, %v556_v10  ;;  %v580_v56 = vmul.f32 %v4016_v30, %v3950_v12 }
  0x9a   :  { %7549 = vst [vmem:[#allocation60_spill] sm:$0xff] %v4031_v39  ;;  %v4039_v55 = vshll.u32 %v747_v8, 8  ;;  %v3556_v54 = vadd.s32 4294967169, %v897_v4  ;;  %v512_v52 = vmul.f32 0.6931472, %v3641_v24  ;;  %v546_v51 = vmul.f32 0.5, %v545_v33 }
  0x9b   :  { %3654 = vrsqrt.f32 %v3956_v5  ;;  %v4044_v59 = vsel %vm7424_vm4, %v779_v21, %v781_v46  ;;  %v4048_v18 = vmul.f32 -2.0, %v508_v43  ;;  %v569_v58 = vmul.f32 %v4000_v34, %v568_v35 }
  0x9c   :  { %7550 = vst [vmem:[#allocation61_spill] sm:$0xff] %v4039_v55  ;;  %v4046_v9 = vpop.eup %3652  ;;  %v783_v10 = vsel %vm7426_vm2, %v4005_v3, %v4007_v60  ;;  %v785_v24 = vsel %vm7425_vm3, %v767_v32, %v784_v29  ;;  %v514_v8 = vmul.f32 0.6931472, %v3645_v62  ;;  %v535_v4 = vsub.f32 1.5, %v534_v42 }
  0x9d   :  { %7551 = vst [vmem:[#allocation62_spill] sm:$0xff] %v4048_v18  ;;  %3656 = vrsqrt.f32 %v3958_v63  ;;  %v903_v33 = vadd.s32 1, %v3556_v54  ;;  %v558_v21 = vmul.f32 0.5, %v557_v28  ;;  %v581_v46 = vmul.f32 %v4016_v30, %v580_v56 }
  0x9e   :  { %v788_v43 = vand.u32 65535, %v4039_v55  ;;  %v547_v7 = vsub.f32 1.5, %v546_v51  ;;  %v592_v50 = vmul.f32 %v4046_v9, %v3952_v53  ;;  %v4065_v27 = vsel %vm7424_vm4, %v783_v10, %v785_v24 }
  0x9f   :  { %vm904_vm5 = vcmp.gt.s32.totalorder %v903_v33, 0  ;;  %v4067_v62 = vmul.f32 -2.0, %v510_v49  ;;  %v570_v32 = vmul.f32 0.5, %v569_v58  ;;  %v4072_v29 = vmul.f32 -2.0, %v512_v52 }
  0xa0   :  { %v905_v42 = vsel %vm904_vm5, %v903_v33, 0  ;;  %v4074_v28 = vmul.f32 -2.0, %v514_v8  ;;  %v536_v47 = vmul.f32 %v3960_v2, %v535_v4  ;;  %v812_v49 = vand.u32 65535, %v4044_v59 }
  0xa1   :  { %7552 = vst [vmem:[#allocation63_spill] sm:$0xff] %v4067_v62  ;;  %v4070_v56 = vpop.eup %3654  ;;  %v907_v35 = vand.u32 31, %v905_v42  ;;  %v7555_v58 = vshrl.u32 %v4044_v59, 16  ;;  %v548_v52 = vmul.f32 %v3975_v0, %v547_v7  ;;  %v559_v54 = vsub.f32 1.5, %v558_v21 }
  0xa2   :  { %7553 = vst [vmem:[#allocation64_spill] sm:$0xff] %v4072_v29  ;;  %v4087_v8 = vmul.f32 0.5, %v581_v46  ;;  %v593_v51 = vmul.f32 %v4046_v9, %v592_v50  ;;  %v571_v45 = vsub.f32 1.5, %v570_v32  ;;  %v604_v2 = vmul.f32 %v4070_v56, %v3956_v5 }
  0xa3   :  { %7554 = vst [vmem:[#allocation65_spill] sm:$0xff] %v4074_v28  ;;  %v4082_v24 = vmul.u32 %v7555_v58, %v788_v43  ;;  %v4084_v33 = vpop.eup %3656  ;;  %3658 = vrsqrt.f32 %v3987_v61  ;;  %v789_v58 = vshrl.u32 %v4039_v55, 16  ;;  %v790_v26 = vand.u32 65535, %v4065_v27 }
  0xa4   :  { %v4097_v0 = vsub.s32 32, %v907_v35  ;;  %v537_v7 = vmul.f32 %v536_v47, %v3909_v37  ;;  %v7557_v50 = vshrl.u32 %v4065_v27, 16  ;;  %v814_v46 = vmul.u32 %v812_v49, %v788_v43 }
  0xa5   :  { %v818_v32 = vshll.u32 %v4082_v24, 16  ;;  %v4107_v10 = vmul.f32 %v548_v52, %v3931_v13  ;;  %v560_v4 = vmul.f32 %v3993_v20, %v559_v54  ;;  %v583_v6 = vsub.f32 1.5, %v4087_v8 }
  0xa6   :  { %7556 = vst [vmem:[#allocation66_spill] sm:$0xff] %v4097_v0  ;;  %v4102_v21 = vmul.u32 %v7557_v50, %v788_v43  ;;  %v4111_v25 = vmul.f32 0.5, %v593_v51  ;;  %v4114_v47 = vmul.f32 %v4000_v34, %v571_v45  ;;  %v4117_v50 = vmul.f32 %v4070_v56, %v604_v2 }
  0xa7   :  { %v4121_v11 = vmul.f32 %v4084_v33, %v3958_v63  ;;  %v792_v52 = vmul.u32 %v790_v26, %v788_v43  ;;  %v4124_v16 = vmul.u32 %v812_v49, %v789_v58  ;;  %v7558_v20 = vmov 2102212464  }
  0xa8   :  { %v919_v54 = vshll.u32 %v7558_v20, %v907_v35  ;;  %v7559_v51 = vmov 920167782   ;;  %v4129_v36 = vmul.u32 %v790_v26, %v789_v58  ;;  %v796_v34 = vshll.u32 %v4102_v21, 16 }
  0xa9   :  { %v920_v8 = vshrl.u32 %v7559_v51, %v4097_v0  ;;  %vm4132_vm7 = vc.u32 %v814_v46, %v818_v32  ;;  %v4136_v2 = vshrl.u32 %v905_v42, 5  ;;  %v4138_v44 = vpop.eup %3658  ;;  %vm540_vm8 = vcmp.eq.f32.partialorder %v3909_v37, 0.0 }
  0xaa   :  { %vm550_vm9 = vcmp.eq.f32.partialorder %v3931_v13, inf  ;;  %v7562_v43 = vmov 683565275   ;;  %v7563_v23 = vmov 2475754826   ;;  %v922_v28 = vshll.u32 %v7559_v51, %v907_v35 }
  0xab   :  { %v910_v49 = vshll.u32 %v7562_v43, %v907_v35  ;;  %v913_v1 = vshll.u32 %v7563_v23, %v907_v35  ;;  %v7564_v26 = vmov 2131351028   ;;  %v911_v40 = vshrl.u32 %v7563_v23, %v4097_v0 }
  0xac   :  { %v916_v38 = vshll.u32 %v7564_v26, %v907_v35  ;;  %v914_v42 = vshrl.u32 %v7564_v26, %v4097_v0  ;;  %v917_v29 = vshrl.u32 %v7558_v20, %v4097_v0  ;;  %v7565_v62 = vmov 1326507024  }
  0xad   :  { %v923_v18 = vshrl.u32 %v7565_v62, %v4097_v0  ;;  %vm562_vm10 = vcmp.eq.f32.partialorder %v3944_v15, inf  ;;  %v7566_v39 = vshrl.u32 %v4044_v59, 16  ;;  %v7567_v57 = vand.u32 2147483647, %v3900_v22 }
  0xae   :  { %v921_v51 = vor.u32 %v920_v8, %v919_v54  ;;  %vm552_vm11 = vcmp.eq.f32.partialorder %v3931_v13, 0.0  ;;  %v798_v23 = vshll.u32 %v4129_v36, 16  ;;  %v4162_v55 = vadd.s32 %v818_v32, %v814_v46 }
  0xaf   :  { %v817_v63 = vmul.u32 %v7566_v39, %v789_v58  ;;  %v900_v35 = vand.u32 8388607, %v7567_v57  ;;  %vm928_vm12 = vcmp.lt.s32.totalorder %v4136_v2, 4  ;;  %vm800_vm13 = vc.u32 %v792_v52, %v796_v34 }
  0xb0   :  { %v802_v0 = vadd.s32 %v796_v34, %v792_v52  ;;  %v7427_v20 = vmov 0   ;;  %v1050_v57 = vand.u32 2139095040, %v3902_v41  ;;  %vm564_vm14 = vcmp.eq.f32.partialorder %v3944_v15, 0.0 }
  0xb1   :  { %v823_v39 = vsel %vm4132_vm7, 1, %v7427_v20  ;;  %v4170_v59 = vor.u32 %v911_v40, %v910_v49  ;;  %v4172_v54 = vor.u32 %v914_v42, %v913_v1  ;;  %v4174_v8 = vor.u32 %v917_v29, %v916_v38 }
  0xb2   :  { %v924_v46 = vor.u32 %v923_v18, %v922_v28  ;;  %v7568_v32 = vshrl.u32 %v4065_v27, 16  ;;  %vm925_vm15 = vcmp.lt.s32.totalorder %v4136_v2, 1  ;;  %vm927_vm0 = vcmp.lt.s32.totalorder %v4136_v2, 3 }
  0xb3   :  { %v934_v52 = vsel %vm928_vm12, %v921_v51, 920167782  ;;  %v539_v40 = vsel %vm538_vm6, %v3909_v37, %v537_v7  ;;  %v801_v1 = vsel %vm800_vm13, 1, %v7427_v20  ;;  %v7569_v38 = vshll.u32 %v4124_v16, 16 }
  0xb4   :  { %v795_v26 = vmul.u32 %v7568_v32, %v789_v58  ;;  %v901_v18 = vor.u32 8388608, %v900_v35  ;;  %v561_v27 = vmul.f32 %v560_v4, %v3944_v15  ;;  %vm574_vm7 = vcmp.eq.f32.partialorder %v3946_v14, inf }
  0xb5   :  { %vm826_vm5 = vc.u32 %v4162_v55, %v7569_v38  ;;  %vm804_vm4 = vc.u32 %v802_v0, %v798_v23  ;;  %v825_v29 = vadd.s32 %v823_v39, %v817_v63  ;;  %v1051_v28 = vshrl.u32 %v1050_v57, 23 }
  0xb6   :  { %vm586_vm3 = vcmp.eq.f32.partialorder %v3950_v12, inf  ;;  %vm926_vm2 = vcmp.lt.s32.totalorder %v4136_v2, 2  ;;  %v933_v58 = vsel %vm925_vm15, %v4170_v59, %v4172_v54  ;;  %v935_v7 = vsel %vm927_vm0, %v4174_v8, %v934_v52 }
  0xb7   :  { %v938_v4 = vsel %vm928_vm12, %v924_v46, 1326507024  ;;  %v584_v23 = vmul.f32 %v4016_v30, %v583_v6  ;;  %v595_v63 = vsub.f32 1.5, %v4111_v25  ;;  %v803_v0 = vadd.s32 %v801_v1, %v795_v26 }
  0xb8   :  { %v827_v34 = vsel %vm826_vm5, 1, %v7427_v20  ;;  %v7570_v45 = vand.u32 2147483648, %v3909_v37  ;;  %v551_v42 = vsel %vm550_vm9, %v3931_v13, %v4107_v10  ;;  %v805_v35 = vsel %vm804_vm4, 1, %v7427_v20 }
  0xb9   :  { %v4216_v39 = vshll.u32 %v901_v18, 8  ;;  %vm576_vm6 = vcmp.eq.f32.partialorder %v3946_v14, 0.0  ;;  %v606_v25 = vmul.f32 0.5, %v4117_v50  ;;  %v4222_v6 = vsel %vm926_vm2, %v933_v58, %v935_v7 }
  0xba   :  { %v4209_v49 = vsel %vm540_vm8, %v7570_v45, %v539_v40  ;;  %v937_v37 = vsel %vm925_vm15, %v4172_v54, %v4174_v8  ;;  %v939_v30 = vsel %vm927_vm0, %v921_v51, %v938_v4  ;;  %v563_v10 = vsel %vm562_vm10, %v3944_v15, %v561_v27 }
  0xbb   :  { %7571 = vst [vmem:[#allocation67_spill] sm:$0xff] %v4209_v49  ;;  %vm588_vm4 = vcmp.eq.f32.partialorder %v3950_v12, 0.0  ;;  %v819_v50 = vshrl.u32 %v4082_v24, 16  ;;  %v829_v26 = vadd.s32 %v827_v34, %v825_v29  ;;  %v3559_v57 = vadd.s32 4294967169, %v1051_v28 }
  0xbc   :  { %v7572_v46 = vand.u32 2147483648, %v3931_v13  ;;  %v573_v52 = vmul.f32 %v4114_v47, %v3946_v14  ;;  %v797_v51 = vshrl.u32 %v4102_v21, 16  ;;  %v807_v40 = vadd.s32 %v805_v35, %v803_v0 }
  0xbd   :  { %v585_v1 = vmul.f32 %v584_v23, %v3950_v12  ;;  %v4247_v38 = vsel %vm926_vm2, %v937_v37, %v939_v30  ;;  %v942_v24 = vand.u32 65535, %v4216_v39  ;;  %v967_v18 = vshrl.u32 %v4222_v6, 16 }
  0xbe   :  { %v4239_v32 = vsel %vm552_vm11, %v7572_v46, %v551_v42  ;;  %v7574_v13 = vand.u32 2147483648, %v3944_v15  ;;  %v596_v47 = vmul.f32 %v4046_v9, %v595_v63  ;;  %v607_v21 = vsub.f32 1.5, %v606_v25 }
  0xbf   :  { %7573 = vst [vmem:[#allocation68_spill] sm:$0xff] %v4239_v32  ;;  %v617_v29 = vmul.f32 %v4084_v33, %v4121_v11  ;;  %vm598_vm8 = vcmp.eq.f32.partialorder %v3952_v53, inf  ;;  %v755_v28 = vshrl.u32 %v7562_v43, %v3948_v19  ;;  %v821_v58 = vshrl.u32 %v4124_v16, 16 }
  0xc0   :  { %v4255_v27 = vsel %vm564_vm14, %v7574_v13, %v563_v10  ;;  %v830_v7 = vadd.s32 %v829_v26, %v819_v50  ;;  %v1057_v4 = vadd.s32 1, %v3559_v57  ;;  %vm610_vm9 = vcmp.eq.f32.partialorder %v3956_v5, inf }
  0xc1   :  { %7575 = vst [vmem:[#allocation69_spill] sm:$0xff] %v4255_v27  ;;  %v776_v15 = vsel %vm774_vm1, %v4007_v60, 2102212464  ;;  %v799_v9 = vshrl.u32 %v4129_v36, 16  ;;  %v808_v23 = vadd.s32 %v807_v40, %v797_v51  ;;  %v945_v11 = vshrl.u32 %v4247_v38, 16 }
  0xc2   :  { %v575_v63 = vsel %vm574_vm7, %v3946_v14, %v573_v52  ;;  %v943_v19 = vshrl.u32 %v4216_v39, 16  ;;  %v966_v0 = vand.u32 65535, %v4222_v6  ;;  %v4275_v34 = vmul.u32 %v967_v18, %v942_v24 }
  0xc3   :  { %v587_v45 = vsel %vm586_vm3, %v3950_v12, %v585_v1  ;;  %vm600_vm1 = vcmp.eq.f32.partialorder %v3952_v53, 0.0  ;;  %v608_v36 = vmul.f32 %v4070_v56, %v607_v21  ;;  %v618_v60 = vmul.f32 0.5, %v617_v29 }
  0xc4   :  { %v628_v42 = vmul.f32 %v4138_v44, %v3987_v61  ;;  %vm7576_vm10 = vcmp.lt.s32.totalorder %v3968_v17, 1  ;;  %vm7577_vm11 = vcmp.lt.s32.totalorder %v3968_v17, 3  ;;  %v831_v6 = vadd.s32 %v830_v7, %v821_v58 }
  0xc5   :  { %v775_v35 = vsel %vm7576_vm10, %v755_v28, %v4003_v31  ;;  %v777_v25 = vsel %vm7577_vm11, %v4005_v3, %v776_v15  ;;  %vm1058_vm13 = vcmp.gt.s32.totalorder %v1057_v4, 0  ;;  %vm612_vm3 = vcmp.eq.f32.partialorder %v3956_v5, 0.0  ;;  %v7584_v15 = vld [vmem:[#allocation61_spill] sm:$0xff] }
  0xc6   :  { %v4291_v37 = vadd.s32 %v808_v23, %v799_v9  ;;  %v7578_v56 = vshll.u32 %v4124_v16, 16  ;;  %v944_v10 = vand.u32 65535, %v4247_v38  ;;  %v4299_v50 = vmul.u32 %v945_v11, %v942_v24 }
  0xc7   :  { %v7579_v31 = vand.u32 2147483648, %v3946_v14  ;;  %v968_v26 = vmul.u32 %v966_v0, %v942_v24  ;;  %v4307_v57 = vmul.u32 %v966_v0, %v943_v19  ;;  %v972_v46 = vshll.u32 %v4275_v34, 16 }
  0xc8   :  { %v4296_v30 = vadd.s32 %v4162_v55, %v7578_v56  ;;  %v7581_v16 = vand.u32 2147483648, %v3950_v12  ;;  %v597_v52 = vmul.f32 %v596_v47, %v3952_v53  ;;  %v629_v51 = vmul.f32 %v4138_v44, %v628_v42 }
  0xc9   :  { %v4305_v3 = vsel %vm576_vm6, %v7579_v31, %v575_v63  ;;  %v1059_v40 = vsel %vm1058_vm13, %v1057_v4, 0  ;;  %v609_v14 = vmul.f32 %v608_v36, %v3956_v5  ;;  %v619_v1 = vsub.f32 1.5, %v618_v60 }
  0xca   :  { %7580 = vst [vmem:[#allocation70_spill] sm:$0xff] %v4305_v3  ;;  %v4314_v55 = vsel %vm588_vm4, %v7581_v16, %v587_v45  ;;  %vm7583_vm14 = vcmp.lt.s32.totalorder %v3968_v17, 2  ;;  %v835_v13 = vadd.s32 1, %v831_v6  ;;  %vm834_vm5 = vc.u32 %v4291_v37, %v4296_v30 }
  0xcb   :  { %7582 = vst [vmem:[#allocation71_spill] sm:$0xff] %v4314_v55  ;;  %v778_v38 = vsel %vm7583_vm14, %v775_v35, %v777_v25  ;;  %v946_v21 = vmul.u32 %v944_v10, %v942_v24  ;;  %v4323_v29 = vmul.u32 %v944_v10, %v943_v19  ;;  %v950_v12 = vshll.u32 %v4299_v50, 16 }
  0xcc   :  { %v7429_v47 = vshll.u32 %v4307_v57, 16  ;;  %vm976_vm7 = vc.u32 %v968_v26, %v972_v46  ;;  %v4327_v28 = vadd.s32 %v972_v46, %v968_v26  ;;  %v4329_v58 = vand.u32 31, %v1059_v40 }
  0xcd   :  { %v599_v17 = vsel %vm598_vm8, %v3952_v53, %v597_v52  ;;  %v630_v7 = vmul.f32 0.5, %v629_v51  ;;  %3660 = vrsqrt.f32 %v3995_v48  ;;  %v611_v24 = vsel %vm610_vm9, %v3956_v5, %v609_v14  ;;  %v7590_v52 = vld [vmem:[#allocation58_spill] sm:$0xff]  ;;  %v7591_v14 = vld [vmem:[#allocation60_spill] sm:$0xff] }
  0xce   :  { %v832_v9 = vmul.u32 %v7584_v15, %v778_v38  ;;  %v836_v23 = vsel %vm834_vm5, %v835_v13, %v831_v6  ;;  %v971_v63 = vmul.u32 %v967_v18, %v943_v19  ;;  %v952_v0 = vshll.u32 %v4323_v29, 16  ;;  %v7587_v6 = vld [vmem:[#allocation59_spill] sm:$0xff] }
  0xcf   :  { %vm954_vm6 = vc.u32 %v946_v21, %v950_v12  ;;  %v956_v45 = vadd.s32 %v950_v12, %v946_v21  ;;  %v977_v36 = vsel %vm976_vm7, 1, %v7427_v20  ;;  %v7585_v60 = vand.u32 2147483648, %v3952_v53  ;;  %v7593_v21 = vld [vmem:[#allocation62_spill] sm:$0xff] }
  0xd0   :  { %v620_v35 = vmul.f32 %v4084_v33, %v619_v1  ;;  %vm980_vm4 = vc.u32 %v4327_v28, %v7429_v47  ;;  %v4353_v18 = vsub.s32 32, %v4329_v58  ;;  %3662 = vrsqrt.f32 %v7587_v6 }
  0xd1   :  { %v4346_v42 = vsel %vm600_vm1, %v7585_v60, %v599_v17  ;;  %v949_v10 = vmul.u32 %v945_v11, %v943_v19  ;;  %v7588_v53 = vand.u32 2147483648, %v3956_v5  ;;  %v4364_v33 = vadd.s32 %v836_v23, %v832_v9 }
  0xd2   :  { %7586 = vst [vmem:[#allocation61_spill] sm:$0xff] %v4346_v42  ;;  %v955_v26 = vsel %vm954_vm6, 1, %v7427_v20  ;;  %v979_v46 = vadd.s32 %v977_v36, %v971_v63  ;;  %vm622_vm8 = vcmp.eq.f32.partialorder %v7590_v52, inf  ;;  %v631_v51 = vsub.f32 1.5, %v630_v7 }
  0xd3   :  { %v4362_v31 = vsel %vm612_vm3, %v7588_v53, %v611_v24  ;;  %v4367_v16 = vpop.eup %3660  ;;  %3664 = vrsqrt.f32 %v7591_v14  ;;  %vm958_vm9 = vc.u32 %v956_v45, %v952_v0  ;;  %v981_v11 = vsel %vm980_vm4, 1, %v7427_v20 }
  0xd4   :  { %7589 = vst [vmem:[#allocation59_spill] sm:$0xff] %v4362_v31  ;;  %v621_v19 = vmul.f32 %v620_v35, %v7590_v52  ;;  %v7592_v1 = vmov 920167782   ;;  %v1077_v13 = vshrl.u32 %v7565_v62, %v4353_v18  ;;  %3666 = vrsqrt.f32 %v7593_v21 }
  0xd5   :  { %v1076_v38 = vshll.u32 %v7592_v1, %v4329_v58  ;;  %v957_v12 = vadd.s32 %v955_v26, %v949_v10  ;;  %v7430_v17 = vand.u32 2147483647, %v3902_v41  ;;  %v4380_v7 = vshrl.u32 %v1059_v40, 5 }
  0xd6   :  { %v838_v24 = vadd.s32 536870912, %v4364_v33  ;;  %v959_v15 = vsel %vm958_vm9, 1, %v7427_v20  ;;  %v973_v9 = vshrl.u32 %v4275_v34, 16  ;;  %v983_v23 = vadd.s32 %v981_v11, %v979_v46  ;;  %v4385_v63 = vpop.eup %3662 }
  0xd7   :  { %vm624_vm1 = vcmp.eq.f32.partialorder %v7590_v52, 0.0  ;;  %v7594_v0 = vmov 2475754826   ;;  %v7595_v36 = vmov 2131351028   ;;  %v632_v53 = vmul.f32 %v4138_v44, %v631_v51  ;;  %v7599_v44 = vld [vmem:[#allocation66_spill] sm:$0xff] }
  0xd8   :  { %v1067_v45 = vshll.u32 %v7594_v0, %v4329_v58  ;;  %v1068_v60 = vshrl.u32 %v7595_v36, %v4353_v18  ;;  %v1070_v40 = vshll.u32 %v7595_v36, %v4329_v58  ;;  %v7596_v35 = vmov 2102212464  }
  0xd9   :  { %v1071_v10 = vshrl.u32 %v7596_v35, %v4353_v18  ;;  %v1073_v34 = vshll.u32 %v7596_v35, %v4329_v58  ;;  %v1074_v26 = vshrl.u32 %v7592_v1, %v4353_v18  ;;  %v1078_v46 = vor.u32 %v1077_v13, %v1076_v38  ;;  %v4401_v11 = vpop.eup %3664 }
  0xda   :  { %7597 = vst [vmem:[#allocation58_spill] sm:$0xff] %v4401_v11  ;;  %v951_v5 = vshrl.u32 %v4299_v50, 16  ;;  %v961_v56 = vadd.s32 %v959_v15, %v957_v12  ;;  %v1054_v25 = vand.u32 8388607, %v7430_v17  ;;  %vm1082_vm10 = vcmp.lt.s32.totalorder %v4380_v7, 4  ;;  %v4412_v31 = vpop.eup %3666 }
  0xdb   :  { %v4407_v20 = vshrl.u32 %v838_v24, 30  ;;  %v909_v51 = vshrl.u32 %v7562_v43, %v7599_v44  ;;  %v975_v4 = vshrl.u32 %v4307_v57, 16  ;;  %v984_v47 = vadd.s32 %v983_v23, %v973_v9  ;;  %7600 = vst [vmem:[#allocation66_spill] sm:$0xff] %v4412_v31 }
  0xdc   :  { %v1064_v38 = vshll.u32 %v7562_v43, %v4329_v58  ;;  %v1065_v50 = vshrl.u32 %v7594_v0, %v4353_v18  ;;  %v4418_v13 = vor.u32 %v1068_v60, %v1067_v45  ;;  %v4420_v12 = vor.u32 %v1071_v10, %v1070_v40  ;;  %v7601_v40 = vld [vmem:[#allocation63_spill] sm:$0xff] }
  0xdd   :  { %7598 = vst [vmem:[#allocation72_spill] sm:$0xff] %v4407_v20  ;;  %vm634_vm11 = vcmp.eq.f32.partialorder %v3987_v61, inf  ;;  %v1075_v24 = vor.u32 %v1074_v26, %v1073_v34  ;;  %vm1079_vm13 = vcmp.lt.s32.totalorder %v4380_v7, 1  ;;  %vm1081_vm3 = vcmp.lt.s32.totalorder %v4380_v7, 3 }
  0xde   :  { %v1092_v15 = vsel %vm1082_vm10, %v1078_v46, 1326507024  ;;  %v953_v58 = vshrl.u32 %v4323_v29, 16  ;;  %v962_v23 = vadd.s32 %v961_v56, %v951_v5  ;;  %v1055_v44 = vor.u32 8388608, %v1054_v25 }
  0xdf   :  { %v623_v45 = vsel %vm622_vm8, %v7590_v52, %v621_v19  ;;  %v640_v60 = vmul.f32 %v4367_v16, %v3995_v48  ;;  %3668 = vrsqrt.f32 %v7601_v40  ;;  %v930_v10 = vsel %vm928_vm12, %v4174_v8, 2102212464 }
  0xe0   :  { %v4438_v34 = vor.u32 %v1065_v50, %v1064_v38  ;;  %vm1080_vm14 = vcmp.lt.s32.totalorder %v4380_v7, 2  ;;  %v1091_v29 = vsel %vm1079_vm13, %v4418_v13, %v4420_v12  ;;  %v1093_v25 = vsel %vm1081_vm3, %v1075_v24, %v1092_v15 }
  0xe1   :  { %vm636_vm5 = vcmp.eq.f32.partialorder %v3987_v61, 0.0  ;;  %v840_v56 = vshll.u32 %v4407_v20, 30  ;;  %v929_v8 = vsel %vm925_vm15, %v909_v51, %v4170_v59  ;;  %v985_v19 = vadd.s32 %v984_v47, %v975_v4 }
  0xe2   :  { %v1088_v5 = vsel %vm1082_vm10, %v1075_v24, 920167782  ;;  %v931_v26 = vsel %vm927_vm0, %v4172_v54, %v930_v10  ;;  %v4457_v46 = vadd.s32 %v962_v23, %v953_v58  ;;  %v7603_v38 = vshll.u32 %v4307_v57, 16  ;;  %v7608_v24 = vld [vmem:[#allocation64_spill] sm:$0xff] }
  0xe3   :  { %v4464_v15 = vshll.u32 %v1055_v44, 8  ;;  %v7605_v17 = vand.u32 2147483648, %v7590_v52  ;;  %v641_v47 = vmul.f32 %v4367_v16, %v640_v60  ;;  %v652_v54 = vmul.f32 %v4385_v63, %v7587_v6  ;;  %v7609_v60 = vld [vmem:[#allocation45_spill] sm:$0xff] }
  0xe4   :  { %7602 = vst [vmem:[#allocation73_spill] sm:$0xff] %v4457_v46  ;;  %v4462_v50 = vadd.s32 %v4327_v28, %v7603_v38  ;;  %v4477_v4 = vsel %vm1080_vm14, %v1091_v29, %v1093_v25  ;;  %v633_v57 = vmul.f32 %v632_v53, %v3987_v61  ;;  %v1087_v52 = vsel %vm1079_vm13, %v4438_v34, %v4418_v13 }
  0xe5   :  { %v4470_v59 = vsel %vm624_vm1, %v7605_v17, %v623_v45  ;;  %v1089_v17 = vsel %vm1081_vm3, %v4420_v12, %v1088_v5  ;;  %v4488_v51 = vpop.eup %3668  ;;  %3670 = vrsqrt.f32 %v7608_v24  ;;  %v4492_v58 = vsub.s32 %v4364_v33, %v840_v56 }
  0xe6   :  { %7604 = vst [vmem:[#allocation74_spill] sm:$0xff] %v4462_v50  ;;  %v932_v53 = vsel %vm926_vm2, %v929_v8, %v931_v26  ;;  %v989_v23 = vadd.s32 1, %v985_v19  ;;  %vm988_vm12 = vc.u32 %v4457_v46, %v4462_v50  ;;  %v1096_v44 = vand.u32 65535, %v4464_v15 }
  0xe7   :  { %7606 = vst [vmem:[#allocation75_spill] sm:$0xff] %v4470_v59  ;;  %v1099_v45 = vshrl.u32 %v4477_v4, 16  ;;  %v1204_v10 = vand.u32 2139095040, %v7609_v60  ;;  %v642_v29 = vmul.f32 0.5, %v641_v47  ;;  %v653_v25 = vmul.f32 %v4385_v63, %v652_v54  ;;  %v7610_v47 = vld [vmem:[#allocation65_spill] sm:$0xff] }
  0xe8   :  { %7607 = vst [vmem:[#allocation76_spill] sm:$0xff] %v4488_v51  ;;  %v664_v33 = vmul.f32 %v4401_v11, %v7591_v14  ;;  %v1090_v2 = vsel %vm1080_vm14, %v1087_v52, %v1089_v17  ;;  %v635_v56 = vsel %vm634_vm11, %v3987_v61, %v633_v57  ;;  %v676_v8 = vmul.f32 %v4412_v31, %v7593_v21 }
  0xe9   :  { %v986_v5 = vmul.u32 %v4216_v39, %v932_v53  ;;  %v1205_v26 = vshrl.u32 %v1204_v10, 23  ;;  %3672 = vrsqrt.f32 %v7610_v47  ;;  %v843_v54 = vsub.s32 0, %v4492_v58 }
  0xea   :  { %v990_v28 = vsel %vm988_vm12, %v989_v23, %v985_v19  ;;  %vm842_vm2 = vcmp.lt.s32.totalorder %v4492_v58, 0  ;;  %v1098_v52 = vand.u32 65535, %v4477_v4  ;;  %v4517_v17 = vmul.u32 %v1099_v45, %v1096_v44 }
  0xeb   :  { %v1121_v57 = vshrl.u32 %v1090_v2, 16  ;;  %v4519_v9 = vpop.eup %3670  ;;  %v643_v59 = vsub.f32 1.5, %v642_v29  ;;  %v654_v42 = vmul.f32 0.5, %v653_v25  ;;  %v665_v39 = vmul.f32 %v4401_v11, %v664_v33 }
  0xec   :  { %v3562_v53 = vadd.s32 4294967169, %v1205_v26  ;;  %v7611_v10 = vand.u32 2147483648, %v3987_v61  ;;  %v677_v19 = vmul.f32 %v4412_v31, %v676_v8  ;;  %v4529_v23 = vadd.s32 %v990_v28, %v986_v5 }
  0xed   :  { %v1097_v4 = vshrl.u32 %v4464_v15, 16  ;;  %v688_v55 = vmul.f32 %v4488_v51, %v7601_v40  ;;  %v844_v29 = vsel %vm842_vm2, %v843_v54, %v4492_v58  ;;  %v1120_v25 = vand.u32 65535, %v1090_v2 }
  0xee   :  { %v4526_v38 = vsel %vm636_vm5, %v7611_v10, %v635_v56  ;;  %v1211_v33 = vadd.s32 1, %v3562_v53  ;;  %v1100_v3 = vmul.u32 %v1098_v52, %v1096_v44  ;;  %v1104_v61 = vshll.u32 %v4517_v17, 16 }
  0xef   :  { %7612 = vst [vmem:[#allocation77_spill] sm:$0xff] %v4526_v38  ;;  %v4537_v56 = vmul.u32 %v1121_v57, %v1096_v44  ;;  %v4539_v10 = vpop.eup %3672  ;;  %v644_v28 = vmul.f32 %v4367_v16, %v643_v59  ;;  %v655_v8 = vsub.f32 1.5, %v654_v42  ;;  %v4542_v5 = vmul.f32 0.5, %v665_v39 }
  0xf0   :  { %vm1212_vm15 = vcmp.gt.s32.totalorder %v1211_v33, 0  ;;  %v845_v38 = vclz %v844_v29  ;;  %v992_v54 = vadd.s32 536870912, %v4529_v23  ;;  %v4545_v2 = vmul.u32 %v1098_v52, %v1097_v4 }
  0xf1   :  { %v1213_v53 = vsel %vm1212_vm15, %v1211_v33, 0  ;;  %v4547_v26 = vmul.f32 0.5, %v677_v19  ;;  %v4550_v27 = vmul.f32 %v4488_v51, %v688_v55  ;;  %v4552_v32 = vmul.u32 %v1120_v25, %v1097_v4 }
  0xf2   :  { %v1215_v49 = vand.u32 31, %v1213_v53  ;;  %vm1108_vm0 = vc.u32 %v1100_v3, %v1104_v61  ;;  %v1122_v16 = vmul.u32 %v1120_v25, %v1096_v44  ;;  %v1126_v42 = vshll.u32 %v4537_v56, 16 }
  0xf3   :  { %v4557_v39 = vmul.f32 %v644_v28, %v3995_v48  ;;  %v4560_v52 = vmul.f32 %v4385_v63, %v655_v8  ;;  %v4564_v19 = vmul.f32 %v4519_v9, %v7608_v24  ;;  %v3554_v29 = vadd.s32 4294967294, %v845_v38 }
  0xf4   :  { %v4566_v55 = vsub.s32 32, %v1215_v49  ;;  %v4568_v33 = vshrl.u32 %v992_v54, 30  ;;  %v1103_v44 = vmul.u32 %v1099_v45, %v1097_v4  ;;  %v1106_v25 = vshll.u32 %v4545_v2, 16 }
  0xf5   :  { %v7615_v41 = vmov 0   ;;  %v1110_v20 = vadd.s32 %v1104_v61, %v1100_v3  ;;  %v1125_v28 = vmul.u32 %v1121_v57, %v1097_v4  ;;  %vm1130_vm7 = vc.u32 %v1122_v16, %v1126_v42 }
  0xf6   :  { %7613 = vst [vmem:[#allocation78_spill] sm:$0xff] %v4566_v55  ;;  %v1109_v59 = vsel %vm1108_vm0, 1, %v7615_v41  ;;  %v4573_v63 = vadd.s32 %v1126_v42, %v1122_v16  ;;  %v7616_v8 = vand.u32 2147483647, %v7609_v60  ;;  %v1218_v51 = vshll.u32 %v7562_v43, %v1215_v49  ;;  %v7617_v60 = vld [vmem:[#allocation46_spill] sm:$0xff] }
  0xf7   :  { %7614 = vst [vmem:[#allocation79_spill] sm:$0xff] %v4568_v33  ;;  %v1219_v38 = vshrl.u32 %v7594_v0, %v4566_v55  ;;  %v1221_v45 = vshll.u32 %v7594_v0, %v1215_v49  ;;  %v1222_v54 = vshrl.u32 %v7595_v36, %v4566_v55  ;;  %v1227_v3 = vshll.u32 %v7596_v35, %v1215_v49 }
  0xf8   :  { %v1208_v24 = vand.u32 8388607, %v7616_v8  ;;  %v4584_v57 = vshrl.u32 %v1213_v53, 5  ;;  %v1224_v4 = vshll.u32 %v7595_v36, %v1215_v49  ;;  %v1225_v61 = vshrl.u32 %v7596_v35, %v4566_v55 }
  0xf9   :  { %v1228_v16 = vshrl.u32 %v7592_v1, %v4566_v55  ;;  %v1131_v42 = vsel %vm1130_vm7, 1, %v7615_v41  ;;  %v1230_v8 = vshll.u32 %v7592_v1, %v1215_v49  ;;  %v1231_v22 = vshrl.u32 %v7565_v62, %v4566_v55 }
  0xfa   :  { %v1358_v40 = vand.u32 2139095040, %v7617_v60  ;;  %vm3555_vm6 = vcmp.lt.s32.totalorder %v3554_v29, 0  ;;  %v994_v53 = vshll.u32 %v4568_v33, 30  ;;  %vm4597_vm4 = vc.u32 %v1110_v20, %v1106_v25 }
  0xfb   :  { %v7620_v46 = vshll.u32 %v4552_v32, 16  ;;  %v1209_v21 = vor.u32 8388608, %v1208_v24  ;;  %v4604_v31 = vor.u32 %v1219_v38, %v1218_v51  ;;  %v4606_v49 = vor.u32 %v1222_v54, %v1221_v45 }
  0xfc   :  { %v1229_v14 = vor.u32 %v1228_v16, %v1227_v3  ;;  %v1111_v11 = vadd.s32 %v1109_v59, %v1103_v44  ;;  %v1133_v55 = vadd.s32 %v1131_v42, %v1125_v28  ;;  %v4608_v62 = vor.u32 %v1225_v61, %v1224_v4 }
  0xfd   :  { %vm1134_vm8 = vc.u32 %v4573_v63, %v7620_v46  ;;  %vm1233_vm9 = vcmp.lt.s32.totalorder %v4584_v57, 1  ;;  %v1232_v25 = vor.u32 %v1231_v22, %v1230_v8  ;;  %vm1236_vm1 = vcmp.lt.s32.totalorder %v4584_v57, 4 }
  0xfe   :  { %v1135_v20 = vsel %vm1134_vm8, 1, %v7615_v41  ;;  %v1359_v33 = vshrl.u32 %v1358_v40, 23  ;;  %v4614_v46 = vsel %vm3555_vm6, 0, %v3554_v29  ;;  %v4617_v51 = vsub.s32 %v4529_v23, %v994_v53 }
  0xff   :  { %v1113_v24 = vsel %vm4597_vm4, 1, %v7615_v41  ;;  %vm1235_vm11 = vcmp.lt.s32.totalorder %v4584_v57, 3  ;;  %vm1234_vm5 = vcmp.lt.s32.totalorder %v4584_v57, 2  ;;  %v1241_v22 = vsel %vm1233_vm9, %v4604_v31, %v4606_v49 }
 0x100   :  { %v1242_v40 = vsel %vm1236_vm1, %v1229_v14, 920167782  ;;  %v4630_v59 = vshll.u32 %v1209_v21, 8  ;;  %v1105_v23 = vshrl.u32 %v4517_v17, 16  ;;  %v1127_v29 = vshrl.u32 %v4537_v56, 16 }
 0x101   :  { %v1137_v50 = vadd.s32 %v1135_v20, %v1133_v55  ;;  %v1245_v44 = vsel %vm1233_vm9, %v4606_v49, %v4608_v62  ;;  %v1115_v28 = vadd.s32 %v1113_v24, %v1111_v11  ;;  %v1243_v38 = vsel %vm1235_vm11, %v4608_v62, %v1242_v40 }
 0x102   :  { %v1246_v45 = vsel %vm1236_vm1, %v1232_v25, 1326507024  ;;  %v3565_v21 = vadd.s32 4294967169, %v1359_v33  ;;  %v833_v17 = vadd.s32 %v4296_v30, %v4291_v37  ;;  %v853_v56 = vsub.s32 4294967266, %v4614_v46 }
 0x103   :  { %v4648_v55 = vsel %vm1234_vm5, %v1241_v22, %v1243_v38  ;;  %v1247_v11 = vsel %vm1235_vm11, %v1229_v14, %v1246_v45  ;;  %v849_v54 = vsub.s32 32, %v4614_v46  ;;  %v997_v3 = vsub.s32 0, %v4617_v51 }
 0x104   :  { %v1248_v4 = vsel %vm1234_vm5, %v1245_v44, %v1247_v11  ;;  %v1250_v33 = vand.u32 65535, %v4630_v59  ;;  %vm996_vm12 = vcmp.lt.s32.totalorder %v4617_v51, 0  ;;  %v1107_v37 = vshrl.u32 %v4545_v2, 16 }
 0x105   :  { %v1129_v30 = vshrl.u32 %v4552_v32, 16  ;;  %v1138_v61 = vadd.s32 %v1137_v50, %v1127_v29  ;;  %v1116_v16 = vadd.s32 %v1115_v28, %v1105_v23  ;;  %v1253_v42 = vshrl.u32 %v1248_v4, 16 }
 0x106   :  { %v1275_v14 = vshrl.u32 %v4648_v55, 16  ;;  %v1365_v8 = vadd.s32 1, %v3565_v21  ;;  %v667_v53 = vsub.f32 1.5, %v4542_v5  ;;  %v854_v20 = vadd.s32 127, %v853_v56 }
 0x107   :  { %v1063_v25 = vshrl.u32 %v7562_v43, %v4353_v18  ;;  %v1084_v24 = vsel %vm1082_vm10, %v4420_v12, 2102212464  ;;  %vm646_vm2 = vcmp.eq.f32.partialorder %v3995_v48, inf  ;;  %v998_v2 = vsel %vm996_vm12, %v997_v3, %v4617_v51 }
 0x108   :  { %v1252_v22 = vand.u32 65535, %v1248_v4  ;;  %v4669_v40 = vmul.u32 %v1253_v42, %v1250_v33  ;;  %v1274_v23 = vand.u32 65535, %v4648_v55  ;;  %v850_v29 = vshll.u32 %v4492_v58, %v4614_v46 }
 0x109   :  { %v851_v50 = vshrl.u32 %v833_v17, %v849_v54  ;;  %v1139_v44 = vadd.s32 %v1138_v61, %v1129_v30  ;;  %v1251_v18 = vshrl.u32 %v4630_v59, 16  ;;  %v4675_v28 = vadd.s32 %v1116_v16, %v1107_v37 }
 0x10a   :  { %v7621_v12 = vshll.u32 %v4552_v32, 16  ;;  %v4682_v45 = vmul.u32 %v1275_v14, %v1250_v33  ;;  %vm1366_vm10 = vcmp.gt.s32.totalorder %v1365_v8, 0  ;;  %v855_v21 = vshll.u32 %v854_v20, 23 }
 0x10b   :  { %v999_v56 = vclz %v998_v2  ;;  %v1083_v58 = vsel %vm1079_vm13, %v1063_v25, %v4438_v34  ;;  %v1085_v46 = vsel %vm1081_vm3, %v4418_v13, %v1084_v24  ;;  %v1254_v17 = vmul.u32 %v1252_v22, %v1250_v33 }
 0x10c   :  { %v4680_v38 = vadd.s32 %v4573_v63, %v7621_v12  ;;  %v1258_v55 = vshll.u32 %v4669_v40, 16  ;;  %v1276_v32 = vmul.u32 %v1274_v23, %v1250_v33  ;;  %v1280_v63 = vshll.u32 %v4682_v45, 16 }
 0x10d   :  { %v4694_v11 = vmul.f32 %v4539_v10, %v7610_v47  ;;  %v1143_v54 = vadd.s32 1, %v1139_v44  ;;  %v4696_v3 = vmul.u32 %v1274_v23, %v1251_v18  ;;  %v1367_v4 = vsel %vm1366_vm10, %v1365_v8, 0 }
 0x10e   :  { %v1086_v37 = vsel %vm1080_vm14, %v1083_v58, %v1085_v46  ;;  %vm1142_vm13 = vc.u32 %v4675_v28, %v4680_v38  ;;  %v4703_v13 = vmul.u32 %v1252_v22, %v1251_v18  ;;  %v4706_v33 = vmul.f32 0.5, %v4550_v27 }
 0x10f   :  { %v4710_v30 = vmul.f32 %v4519_v9, %v4564_v19  ;;  %v4712_v61 = vor.u32 %v851_v50, %v850_v29  ;;  %v4714_v16 = vor.u32 4788187, %v855_v21  ;;  %v3557_v8 = vadd.s32 4294967294, %v999_v56 }
 0x110   :  { %vm1262_vm3 = vc.u32 %v1254_v17, %v1258_v55  ;;  %vm1284_vm15 = vc.u32 %v1276_v32, %v1280_v63  ;;  %v1369_v7 = vand.u32 31, %v1367_v4  ;;  %v1140_v20 = vmul.u32 %v4464_v15, %v1086_v37 }
 0x111   :  { %v1144_v25 = vsel %vm1142_vm13, %v1143_v54, %v1139_v44  ;;  %v7451_v24 = vshll.u32 %v4696_v3, 16  ;;  %v4718_v2 = vadd.s32 %v1280_v63, %v1276_v32  ;;  %v1257_v27 = vmul.u32 %v1253_v42, %v1251_v18 }
 0x112   :  { %v1260_v22 = vshll.u32 %v4703_v13, 16  ;;  %v1264_v19 = vadd.s32 %v1258_v55, %v1254_v17  ;;  %v1279_v23 = vmul.u32 %v1275_v14, %v1251_v18  ;;  %v4725_v29 = vsel %vm646_vm2, %v3995_v48, %v4557_v39 }
 0x113   :  { %v1263_v50 = vsel %vm1262_vm3, 1, %v7615_v41  ;;  %v1285_v15 = vsel %vm1284_vm15, 1, %v7615_v41  ;;  %v4729_v44 = vsub.s32 32, %v1369_v7  ;;  %v4733_v12 = vmul.f32 %v4560_v52, %v7587_v6 }
 0x114   :  { %vm3558_vm14 = vcmp.lt.s32.totalorder %v3557_v8, 0  ;;  %v4737_v18 = vadd.s32 %v1144_v25, %v1140_v20  ;;  %vm1288_vm0 = vc.u32 %v4718_v2, %v7451_v24  ;;  %v7452_v39 = vand.u32 2147483647, %v7617_v60 }
 0x115   :  { %v4743_v21 = vshrl.u32 %v1367_v4, 5  ;;  %v1265_v56 = vadd.s32 %v1263_v50, %v1257_v27  ;;  %vm1266_vm7 = vc.u32 %v1264_v19, %v1260_v22  ;;  %v1287_v58 = vadd.s32 %v1285_v15, %v1279_v23 }
 0x116   :  { %v1381_v52 = vshll.u32 %v7596_v35, %v1369_v7  ;;  %vm648_vm6 = vcmp.eq.f32.partialorder %v3995_v48, 0.0  ;;  %v1375_v46 = vshll.u32 %v7594_v0, %v1369_v7  ;;  %v1376_v17 = vshrl.u32 %v7595_v36, %v4729_v44 }
 0x117   :  { %v1378_v55 = vshll.u32 %v7595_v36, %v1369_v7  ;;  %v1379_v32 = vshrl.u32 %v7596_v35, %v4729_v44  ;;  %v1289_v63 = vsel %vm1288_vm0, 1, %v7615_v41  ;;  %v1382_v54 = vshrl.u32 %v7592_v1, %v4729_v44 }
 0x118   :  { %v1384_v4 = vshll.u32 %v7592_v1, %v1369_v7  ;;  %v7622_v37 = vmov 1326507024   ;;  %v1267_v25 = vsel %vm1266_vm7, 1, %v7615_v41  ;;  %v1362_v27 = vand.u32 8388607, %v7452_v39 }
 0x119   :  { %v1385_v20 = vshrl.u32 %v7622_v37, %v4729_v44  ;;  %v1372_v22 = vshll.u32 %v7562_v43, %v1369_v7  ;;  %v1373_v19 = vshrl.u32 %v7594_v0, %v4729_v44  ;;  %v1146_v23 = vadd.s32 536870912, %v4737_v18 }
 0x11a   :  { %v1281_v50 = vshrl.u32 %v4682_v45, 16  ;;  %v1383_v15 = vor.u32 %v1382_v54, %v1381_v52  ;;  %vm658_vm4 = vcmp.eq.f32.partialorder %v7587_v6, inf  ;;  %v1291_v14 = vadd.s32 %v1289_v63, %v1287_v58  ;;  %v7623_v52 = vld [vmem:[#allocation78_spill] sm:$0xff] }
 0x11b   :  { %v1386_v24 = vor.u32 %v1385_v20, %v1384_v4  ;;  %v4768_v42 = vor.u32 %v1376_v17, %v1375_v46  ;;  %v4770_v34 = vor.u32 %v1379_v32, %v1378_v55  ;;  %vm1390_vm8 = vcmp.lt.s32.totalorder %v4743_v21, 4  ;;  %v7624_v4 = vld [vmem:[#allocation58_spill] sm:$0xff] }
 0x11c   :  { %v1259_v7 = vshrl.u32 %v4669_v40, 16  ;;  %v1269_v39 = vadd.s32 %v1267_v25, %v1265_v56  ;;  %vm1387_vm12 = vcmp.lt.s32.totalorder %v4743_v21, 1  ;;  %vm1389_vm2 = vcmp.lt.s32.totalorder %v4743_v21, 3 }
 0x11d   :  { %v4777_v45 = vsel %vm3558_vm14, 0, %v3557_v8  ;;  %v1217_v54 = vshrl.u32 %v7562_v43, %v7623_v52  ;;  %v1363_v58 = vor.u32 8388608, %v1362_v27  ;;  %v4781_v46 = vor.u32 %v1373_v19, %v1372_v22  ;;  %v7625_v27 = vld [vmem:[#allocation60_spill] sm:$0xff]  ;;  %v7626_v22 = vld [vmem:[#allocation41_spill] sm:$0xff] }
 0x11e   :  { %v4783_v17 = vshrl.u32 %v1146_v23, 30  ;;  %v1283_v55 = vshrl.u32 %v4696_v3, 16  ;;  %v1396_v40 = vsel %vm1390_vm8, %v1383_v15, 920167782  ;;  %v1400_v56 = vsel %vm1390_vm8, %v1386_v24, 1326507024 }
 0x11f   :  { %vm660_vm10 = vcmp.eq.f32.partialorder %v7587_v6, 0.0  ;;  %v1292_v8 = vadd.s32 %v1291_v14, %v1281_v50  ;;  %vm1388_vm13 = vcmp.lt.s32.totalorder %v4743_v21, 2  ;;  %v1399_v32 = vsel %vm1387_vm12, %v4768_v42, %v4770_v34  ;;  %v7630_v23 = vld [vmem:[#allocation66_spill] sm:$0xff] }
 0x120   :  { %v1401_v63 = vsel %vm1389_vm2, %v1383_v15, %v1400_v56  ;;  %v668_v20 = vmul.f32 %v7624_v4, %v667_v53  ;;  %v713_v24 = vmul.f32 %v4539_v10, %v4694_v11  ;;  %v1261_v25 = vshrl.u32 %v4703_v13, 16 }
 0x121   :  { %v1270_v14 = vadd.s32 %v1269_v39, %v1259_v7  ;;  %vm670_vm3 = vcmp.eq.f32.partialorder %v7625_v27, inf  ;;  %vm741_vm15 = vcmp.lt.s32.totalorder %v7626_v22, 0  ;;  %v1238_v19 = vsel %vm1236_vm1, %v4608_v62, 2102212464 }
 0x122   :  { %v1395_v5 = vsel %vm1387_vm12, %v4781_v46, %v4768_v42  ;;  %v1397_v53 = vsel %vm1389_vm2, %v4770_v34, %v1396_v40  ;;  %v4816_v11 = vshll.u32 %v1363_v58, 8  ;;  %v7627_v13 = vand.u32 2147483648, %v3995_v48 }
 0x123   :  { %v7629_v62 = vsub.f32 1.5, %v4547_v26  ;;  %v1007_v15 = vsub.s32 4294967266, %v4777_v45  ;;  %v4831_v7 = vsel %vm1388_vm13, %v1399_v32, %v1401_v63  ;;  %v7631_v52 = vand.u32 2147483647, %v4714_v16  ;;  %v7634_v63 = vld [vmem:[#allocation62_spill] sm:$0xff] }
 0x124   :  { %v4823_v39 = vsel %vm648_vm6, %v7627_v13, %v4725_v29  ;;  %v7632_v58 = vcvt.s32.f32 %v4712_v61  ;;  %v1148_v56 = vshll.u32 %v4783_v17, 30  ;;  %v1237_v48 = vsel %vm1233_vm9, %v1217_v54, %v4604_v31 }
 0x125   :  { %7628 = vst [vmem:[#allocation78_spill] sm:$0xff] %v4823_v39  ;;  %v680_v50 = vmul.f32 %v7630_v23, %v7629_v62  ;;  %v1293_v26 = vadd.s32 %v1292_v8, %v1283_v55  ;;  %v1239_v29 = vsel %vm1235_vm11, %v4606_v49, %v1238_v19  ;;  %v4844_v4 = vadd.s32 %v1270_v14, %v1261_v25  ;;  %v7638_v49 = vld [vmem:[#allocation73_spill] sm:$0xff]  ;;  %v7639_v55 = vld [vmem:[#allocation74_spill] sm:$0xff] }
 0x126   :  { %v860_v40 = vmul.f32 %v7632_v58, %v7631_v52  ;;  %v7633_v32 = vshll.u32 %v4696_v3, 16  ;;  %v4853_v61 = vsel %vm1388_vm13, %v1395_v5, %v1397_v53  ;;  %vm672_vm1 = vcmp.eq.f32.partialorder %v7625_v27, 0.0 }
 0x127   :  { %vm682_vm9 = vcmp.eq.f32.partialorder %v7634_v63, inf  ;;  %v7635_v31 = vand.u32 2147483647, %v7626_v22  ;;  %v987_v3 = vadd.s32 %v7639_v55, %v7638_v49  ;;  %v1404_v8 = vand.u32 65535, %v4816_v11 }
 0x128   :  { %v4849_v16 = vadd.s32 %v4718_v2, %v7633_v32  ;;  %v1003_v2 = vsub.s32 32, %v4777_v45  ;;  %v1407_v25 = vshrl.u32 %v4831_v7, 16  ;;  %v659_v14 = vsel %vm658_vm4, %v7587_v6, %v4733_v12 }
 0x129   :  { %vm4859_vm14 = vcmp.le.f32.partialorder %v7635_v31, 0.7853982  ;;  %v691_v19 = vsub.f32 1.5, %v4706_v33  ;;  %v702_v5 = vmul.f32 0.5, %v4710_v30  ;;  %v1008_v53 = vadd.s32 127, %v1007_v15 }
 0x12a   :  { %v4875_v13 = vsub.s32 %v4737_v18, %v1148_v56  ;;  %v1240_v62 = vsel %vm1234_vm5, %v1237_v48, %v1239_v29  ;;  %v1297_v23 = vadd.s32 1, %v1293_v26  ;;  %v1429_v52 = vshrl.u32 %v4853_v61, 16 }
 0x12b   :  { %v669_v58 = vmul.f32 %v668_v20, %v7625_v27  ;;  %v861_v32 = vxor.u32 2147483648, %v860_v40  ;;  %v1004_v12 = vshll.u32 %v4617_v51, %v4777_v45  ;;  %vm1296_vm11 = vc.u32 %v4844_v4, %v4849_v16 }
 0x12c   :  { %v1005_v33 = vshrl.u32 %v987_v3, %v1003_v2  ;;  %v1405_v30 = vshrl.u32 %v4816_v11, 16  ;;  %v1406_v18 = vand.u32 65535, %v4831_v7  ;;  %v4887_v15 = vmul.u32 %v1407_v25, %v1404_v8  ;;  %v7643_v2 = vld [vmem:[#allocation76_spill] sm:$0xff] }
 0x12d   :  { %v7640_v57 = vand.u32 2147483648, %v7587_v6  ;;  %vm684_vm5 = vcmp.eq.f32.partialorder %v7634_v63, 0.0  ;;  %v714_v20 = vmul.f32 0.5, %v713_v24  ;;  %v1009_v51 = vshll.u32 %v1008_v53, 23  ;;  %v7642_v24 = vld [vmem:[#allocation63_spill] sm:$0xff] }
 0x12e   :  { %v1294_v45 = vmul.u32 %v4630_v59, %v1240_v62  ;;  %v1151_v48 = vsub.s32 0, %v4875_v13  ;;  %v1298_v29 = vsel %vm1296_vm11, %v1297_v23, %v1293_v26  ;;  %v1428_v31 = vand.u32 65535, %v4853_v61 }
 0x12f   :  { %v4893_v56 = vsel %vm660_vm10, %v7640_v57, %v659_v14  ;;  %v4899_v7 = vmul.u32 %v1429_v52, %v1404_v8  ;;  %v671_v49 = vsel %vm670_vm3, %v7625_v27, %v669_v58  ;;  %v681_v6 = vmul.f32 %v680_v50, %v7634_v63 }
 0x130   :  { %7641 = vst [vmem:[#allocation58_spill] sm:$0xff] %v4893_v56  ;;  %v862_v55 = vsel %vm741_vm15, %v861_v32, %v860_v40  ;;  %vm1150_vm0 = vcmp.lt.s32.totalorder %v4875_v13, 0  ;;  %vm694_vm7 = vcmp.eq.f32.partialorder %v7642_v24, inf  ;;  %v1006_v59 = vor.u32 %v1005_v33, %v1004_v12 }
 0x131   :  { %v1408_v3 = vmul.u32 %v1406_v18, %v1404_v8  ;;  %v4909_v26 = vmul.u32 %v1406_v18, %v1405_v30  ;;  %v1412_v61 = vshll.u32 %v4887_v15, 16  ;;  %v692_v14 = vmul.f32 %v7643_v2, %v691_v19 }
 0x132   :  { %v703_v53 = vsub.f32 1.5, %v702_v5  ;;  %v1010_v62 = vor.u32 4788187, %v1009_v51  ;;  %v4913_v23 = vadd.s32 %v1298_v29, %v1294_v45  ;;  %v1152_v50 = vsel %vm1150_vm0, %v1151_v48, %v4875_v13  ;;  %v7646_v29 = vld [vmem:[#allocation47_spill] sm:$0xff] }
 0x133   :  { %v1430_v58 = vmul.u32 %v1428_v31, %v1404_v8  ;;  %v4916_v40 = vmul.u32 %v1428_v31, %v1405_v30  ;;  %v1434_v32 = vshll.u32 %v4899_v7, 16  ;;  %v7644_v12 = vand.u32 2147483648, %v7625_v27 }
 0x134   :  { %v683_v19 = vsel %vm682_vm9, %v7634_v63, %v681_v6  ;;  %v715_v5 = vsub.f32 1.5, %v714_v20  ;;  %v4931_v18 = vsel %vm4859_vm14, %v7626_v22, %v862_v55  ;;  %vm696_vm6 = vcmp.eq.f32.partialorder %v7642_v24, 0.0 }
 0x135   :  { %v4923_v33 = vsel %vm672_vm1, %v7644_v12, %v671_v49  ;;  %v1013_v8 = vcvt.s32.f32 %v1006_v59  ;;  %v1414_v57 = vshll.u32 %v4909_v26, 16  ;;  %vm1416_vm4 = vc.u32 %v1408_v3, %v1412_v61 }
 0x136   :  { %7645 = vst [vmem:[#allocation60_spill] sm:$0xff] %v4923_v33  ;;  %v1418_v51 = vadd.s32 %v1412_v61, %v1408_v3  ;;  %v1011_v27 = vand.u32 2147483647, %v1010_v62  ;;  %v1153_v45 = vclz %v1152_v50  ;;  %v1300_v48 = vadd.s32 536870912, %v4913_v23  ;;  %v7649_v62 = vld [vmem:[#allocation64_spill] sm:$0xff] }
 0x137   :  { %v1512_v31 = vand.u32 2139095040, %v7646_v29  ;;  %v1411_v49 = vmul.u32 %v1407_v25, %v1405_v30  ;;  %v7453_v20 = vshll.u32 %v4916_v40, 16  ;;  %vm1438_vm10 = vc.u32 %v1430_v58, %v1434_v32 }
 0x138   :  { %v4938_v6 = vadd.s32 %v1434_v32, %v1430_v58  ;;  %v693_v55 = vmul.f32 %v692_v14, %v7642_v24  ;;  %v704_v59 = vmul.f32 %v4519_v9, %v703_v53  ;;  %v1417_v2 = vsel %vm1416_vm4, 1, %v7615_v41 }
 0x139   :  { %v1513_v12 = vshrl.u32 %v1512_v31, 23  ;;  %v7647_v3 = vand.u32 2147483648, %v7634_v63  ;;  %vm706_vm3 = vcmp.eq.f32.partialorder %v7649_v62, inf  ;;  %v4952_v25 = vmul.f32 %v4931_v18, %v4931_v18 }
 0x13a   :  { %vm1420_vm1 = vc.u32 %v1418_v51, %v1414_v57  ;;  %v1433_v50 = vmul.u32 %v1429_v52, %v1405_v30  ;;  %v1014_v14 = vmul.f32 %v1013_v8, %v1011_v27  ;;  %v4954_v58 = vshrl.u32 %v1300_v48, 30 }
 0x13b   :  { %v4947_v61 = vsel %vm684_vm5, %v7647_v3, %v683_v19  ;;  %v1439_v9 = vsel %vm1438_vm10, 1, %v7615_v41  ;;  %v3568_v53 = vadd.s32 4294967169, %v1513_v12  ;;  %v4958_v32 = vmul.f32 %v4539_v10, %v715_v5  ;;  %v7650_v5 = vld [vmem:[#allocation43_spill] sm:$0xff]  ;;  %v7653_v3 = vld [vmem:[#allocation72_spill] sm:$0xff] }
 0x13c   :  { %7648 = vst [vmem:[#allocation41_spill] sm:$0xff] %v4947_v61  ;;  %v3560_v63 = vadd.s32 4294967294, %v1153_v45  ;;  %v1419_v19 = vadd.s32 %v1417_v2, %v1411_v49  ;;  %vm1442_vm9 = vc.u32 %v4938_v6, %v7453_v20  ;;  %v695_v57 = vsel %vm694_vm7, %v7642_v24, %v693_v55 }
 0x13d   :  { %v868_v52 = vmul.f32 -0.001358992, %v4952_v25  ;;  %v1421_v30 = vsel %vm1420_vm1, 1, %v7615_v41  ;;  %v1519_v8 = vadd.s32 1, %v3568_v53  ;;  %v705_v51 = vmul.f32 %v704_v59, %v7649_v62 }
 0x13e   :  { %v875_v10 = vmul.f32 -0.00019511016, %v4952_v25  ;;  %vm895_vm11 = vcmp.lt.s32.totalorder %v7650_v5, 0  ;;  %v1441_v27 = vadd.s32 %v1439_v9, %v1433_v50  ;;  %v1015_v45 = vxor.u32 2147483648, %v1014_v14 }
 0x13f   :  { %v1302_v48 = vshll.u32 %v4954_v58, 30  ;;  %v1443_v31 = vsel %vm1442_vm9, 1, %v7615_v41  ;;  %vm1520_vm5 = vcmp.gt.s32.totalorder %v1519_v8, 0  ;;  %vm3561_vm0 = vcmp.lt.s32.totalorder %v3560_v63, 0 }
 0x140   :  { %v1413_v49 = vshrl.u32 %v4887_v15, 16  ;;  %v1423_v55 = vadd.s32 %v1421_v30, %v1419_v19  ;;  %v1521_v2 = vsel %vm1520_vm5, %v1519_v8, 0  ;;  %v7651_v12 = vand.u32 2147483648, %v7642_v24 }
 0x141   :  { %v863_v53 = vsub.s32 4, %v7653_v3  ;;  %v869_v50 = vadd.f32 0.041655596, %v868_v52  ;;  %v1523_v9 = vand.u32 31, %v1521_v2  ;;  %v876_v20 = vadd.f32 0.008332121, %v875_v10 }
 0x142   :  { %v4978_v59 = vsel %vm696_vm6, %v7651_v12, %v695_v57  ;;  %v7654_v61 = vand.u32 2147483647, %v7650_v5  ;;  %v1435_v15 = vshrl.u32 %v4899_v7, 16  ;;  %v1445_v19 = vadd.s32 %v1443_v31, %v1441_v27 }
 0x143   :  { %7652 = vst [vmem:[#allocation66_spill] sm:$0xff] %v4978_v59  ;;  %v1016_v30 = vsel %vm895_vm11, %v1015_v45, %v1014_v14  ;;  %v4990_v24 = vsel %vm3561_vm0, 0, %v3560_v63  ;;  %v4993_v57 = vsub.s32 %v4913_v23, %v1302_v48  ;;  %v1371_v52 = vshrl.u32 %v7562_v43, %v4729_v44  ;;  %v7657_v63 = vld [vmem:[#allocation79_spill] sm:$0xff] }
 0x144   :  { %vm4983_vm7 = vcmp.le.f32.partialorder %v7654_v61, 0.7853982  ;;  %v1392_v61 = vsel %vm1390_vm8, %v4770_v34, 2102212464  ;;  %v1415_v8 = vshrl.u32 %v4909_v26, 16  ;;  %v1424_v10 = vadd.s32 %v1423_v55, %v1413_v49 }
 0x145   :  { %v5001_v7 = vsub.s32 32, %v1523_v9  ;;  %v5006_v14 = vsel %vm706_vm3, %v7649_v62, %v705_v51  ;;  %v5011_v23 = vsel %vm741_vm15, %v863_v53, %v7653_v3  ;;  %v5014_v44 = vmul.f32 %v869_v50, %v4952_v25 }
 0x146   :  { %v877_v26 = vmul.f32 %v876_v20, %v4952_v25  ;;  %v5021_v27 = vsel %vm4983_vm7, %v7650_v5, %v1016_v30  ;;  %v1437_v51 = vshrl.u32 %v4916_v40, 16  ;;  %v1446_v45 = vadd.s32 %v1445_v19, %v1435_v15 }
 0x147   :  { %v1161_v48 = vsub.s32 4294967266, %v4990_v24  ;;  %vm1304_vm8 = vcmp.lt.s32.totalorder %v4993_v57, 0  ;;  %v1391_v31 = vsel %vm1387_vm12, %v1371_v52, %v4781_v46  ;;  %v1393_v20 = vsel %vm1389_vm2, %v4768_v42, %v1392_v61 }
 0x148   :  { %v1305_v49 = vsub.s32 0, %v4993_v57  ;;  %v5033_v55 = vadd.s32 %v1424_v10, %v1415_v8  ;;  %v1535_v12 = vshll.u32 %v7596_v35, %v1523_v9  ;;  %v1536_v3 = vshrl.u32 %v7592_v1, %v5001_v7 }
 0x149   :  { %v7454_v53 = vand.u32 2147483647, %v7646_v29  ;;  %v5039_v50 = vshrl.u32 %v1521_v2, 5  ;;  %v1538_v15 = vshll.u32 %v7592_v1, %v1523_v9  ;;  %v1539_v46 = vshrl.u32 %v7622_v37, %v5001_v7 }
 0x14a   :  { %v7658_v42 = vshll.u32 %v4916_v40, 16  ;;  %v1447_v30 = vadd.s32 %v1446_v45, %v1437_v51  ;;  %v1526_v52 = vshll.u32 %v7562_v43, %v1523_v9  ;;  %v1529_v61 = vshll.u32 %v7594_v0, %v1523_v9 }
 0x14b   :  { %v1527_v8 = vshrl.u32 %v7594_v0, %v5001_v7  ;;  %v1530_v2 = vshrl.u32 %v7595_v36, %v5001_v7  ;;  %v1532_v10 = vshll.u32 %v7595_v36, %v1523_v9  ;;  %v1533_v34 = vshrl.u32 %v7596_v35, %v5001_v7 }
 0x14c   :  { %v5047_v19 = vadd.s32 %v4938_v6, %v7658_v42  ;;  %v878_v40 = vadd.f32 -0.16666654, %v877_v26  ;;  %v5060_v6 = vmul.f32 %v5021_v27, %v5021_v27  ;;  %v1141_v51 = vadd.s32 %v4680_v38, %v4675_v28 }
 0x14d   :  { %v1537_v45 = vor.u32 %v1536_v3, %v1535_v12  ;;  %vm708_vm12 = vcmp.eq.f32.partialorder %v7649_v62, 0.0  ;;  %v1157_v42 = vsub.s32 32, %v4990_v24  ;;  %v1516_v59 = vand.u32 8388607, %v7454_v53 }
 0x14e   :  { %v1540_v9 = vor.u32 %v1539_v46, %v1538_v15  ;;  %vm1544_vm2 = vcmp.lt.s32.totalorder %v5039_v50, 4  ;;  %v1162_v56 = vadd.s32 127, %v1161_v48  ;;  %v1306_v26 = vsel %vm1304_vm8, %v1305_v49, %v4993_v57  ;;  %v7659_v49 = vld [vmem:[#allocation48_spill] sm:$0xff] }
 0x14f   :  { %v1394_v39 = vsel %vm1388_vm13, %v1391_v31, %v1393_v20  ;;  %v1451_v28 = vadd.s32 1, %v1447_v30  ;;  %vm1450_vm15 = vc.u32 %v5033_v55, %v5047_v19  ;;  %v5076_v38 = vor.u32 %v1527_v8, %v1526_v52 }
 0x150   :  { %v5078_v12 = vor.u32 %v1530_v2, %v1529_v61  ;;  %v5080_v3 = vor.u32 %v1533_v34, %v1532_v10  ;;  %vm1541_vm6 = vcmp.lt.s32.totalorder %v5039_v50, 1  ;;  %vm1543_vm4 = vcmp.lt.s32.totalorder %v5039_v50, 3 }
 0x151   :  { %v1550_v48 = vsel %vm1544_vm2, %v1537_v45, 920167782  ;;  %v1666_v21 = vand.u32 2139095040, %v7659_v49  ;;  %v1307_v31 = vclz %v1306_v26  ;;  %v1448_v20 = vmul.u32 %v4816_v11, %v1394_v39 }
 0x152   :  { %v1517_v15 = vor.u32 8388608, %v1516_v59  ;;  %v1554_v46 = vsel %vm1544_vm2, %v1540_v9, 1326507024  ;;  %v1029_v52 = vmul.f32 -0.00019511016, %v5060_v6  ;;  %v1158_v34 = vshll.u32 %v4875_v13, %v4990_v24 }
 0x153   :  { %v1159_v61 = vshrl.u32 %v1141_v51, %v1157_v42  ;;  %v1452_v8 = vsel %vm1450_vm15, %v1451_v28, %v1447_v30  ;;  %v1163_v2 = vshll.u32 %v1162_v56, 23  ;;  %vm1542_vm13 = vcmp.lt.s32.totalorder %v5039_v50, 2 }
 0x154   :  { %v1549_v10 = vsel %vm1541_vm6, %v5076_v38, %v5078_v12  ;;  %v1551_v11 = vsel %vm1543_vm4, %v5080_v3, %v1550_v48  ;;  %v866_v39 = vsel %vm4859_vm14, 0, %v5011_v23  ;;  %v1553_v13 = vsel %vm1541_vm6, %v5078_v12, %v5080_v3 }
 0x155   :  { %v1555_v56 = vsel %vm1543_vm4, %v1537_v45, %v1554_v46  ;;  %v1667_v59 = vshrl.u32 %v1666_v21, 23  ;;  %v7660_v24 = vsub.s32 4, %v7657_v63  ;;  %v3563_v51 = vadd.s32 4294967294, %v1307_v31 }
 0x156   :  { %v5115_v42 = vadd.s32 %v1452_v8, %v1448_v20  ;;  %v5117_v54 = vshll.u32 %v1517_v15, 8  ;;  %v871_v23 = vadd.f32 -0.4999988, %v5014_v44  ;;  %v879_v9 = vmul.f32 %v878_v40, %v4952_v25 }
 0x157   :  { %v1018_v30 = vsel %vm895_vm11, %v7660_v24, %v7657_v63  ;;  %v1022_v26 = vmul.f32 -0.001358992, %v5060_v6  ;;  %v5124_v45 = vsel %vm1542_vm13, %v1549_v10, %v1551_v11  ;;  %v1030_v28 = vadd.f32 0.008332121, %v1029_v52 }
 0x158   :  { %v1160_v48 = vor.u32 %v1159_v61, %v1158_v34  ;;  %v1164_v21 = vor.u32 4788187, %v1163_v2  ;;  %v5128_v63 = vsel %vm1542_vm13, %v1553_v13, %v1555_v56  ;;  %v7661_v31 = vand.u32 2147483648, %v7649_v62 }
 0x159   :  { %v5139_v40 = vmul.f32 %v4958_v32, %v7610_v47  ;;  %v5141_v20 = vand.u32 3, %v866_v39  ;;  %v3571_v15 = vadd.s32 4294967169, %v1667_v59  ;;  %vm3564_vm14 = vcmp.lt.s32.totalorder %v3563_v51, 0  ;;  %v7664_v39 = vld [vmem:[#allocation44_spill] sm:$0xff] }
 0x15a   :  { %v5135_v44 = vsel %vm708_vm12, %v7661_v31, %v5006_v14  ;;  %v1454_v46 = vadd.s32 536870912, %v5115_v42  ;;  %v1558_v52 = vand.u32 65535, %v5117_v54  ;;  %v1583_v34 = vshrl.u32 %v5124_v45, 16 }
 0x15b   :  { %7662 = vst [vmem:[#allocation62_spill] sm:$0xff] %v5135_v44  ;;  %v872_v61 = vmul.f32 %v871_v23, %v4952_v25  ;;  %v880_v8 = vadd.f32 1.0, %v879_v9  ;;  %v1020_v62 = vsel %vm4983_vm7, 0, %v1018_v30  ;;  %v1561_v14 = vshrl.u32 %v5128_v63, 16 }
 0x15c   :  { %7663 = vst [vmem:[#allocation73_spill] sm:$0xff] %v5139_v40  ;;  %v1023_v32 = vadd.f32 0.041655596, %v1022_v26  ;;  %v1031_v2 = vmul.f32 %v1030_v28, %v5060_v6  ;;  %v1165_v10 = vand.u32 2147483647, %v1164_v21  ;;  %v1167_v11 = vcvt.s32.f32 %v1160_v48 }
 0x15d   :  { %vm888_vm10 = vcmp.eq.s32.totalorder %v5141_v20, 2  ;;  %vm1049_vm3 = vcmp.lt.s32.totalorder %v7664_v39, 0  ;;  %v1310_v13 = vsel %vm3564_vm14, 0, %v3563_v51  ;;  %v1673_v56 = vadd.s32 1, %v3571_v15 }
 0x15e   :  { %vm885_vm1 = vcmp.eq.s32.totalorder %v5141_v20, 0  ;;  %v5154_v25 = vshrl.u32 %v1454_v46, 30  ;;  %v1559_v33 = vshrl.u32 %v5117_v54, 16  ;;  %v1582_v59 = vand.u32 65535, %v5124_v45 }
 0x15f   :  { %v5158_v24 = vmul.u32 %v1583_v34, %v1558_v52  ;;  %v873_v30 = vadd.f32 1.0, %v872_v61  ;;  %v5160_v23 = vand.u32 3, %v1020_v62  ;;  %v1560_v9 = vand.u32 65535, %v5128_v63 }
 0x160   :  { %7665 = vst [vmem:[#allocation74_spill] sm:$0xff] %v5154_v25  ;;  %v5163_v26 = vmul.u32 %v1561_v14, %v1558_v52  ;;  %v881_v51 = vmul.f32 %v880_v8, %v4931_v18  ;;  %v1024_v28 = vmul.f32 %v1023_v32, %v5060_v6  ;;  %v1032_v48 = vadd.f32 -0.16666654, %v1031_v2 }
 0x161   :  { %v7666_v21 = vand.u32 2147483647, %v7664_v39  ;;  %v1168_v45 = vmul.f32 %v1167_v11, %v1165_v10  ;;  %vm884_vm11 = vcmp.lt.s32.totalorder %v5141_v20, 2  ;;  %v1295_v15 = vadd.s32 %v4849_v16, %v4844_v4 }
 0x162   :  { %v1311_v63 = vsub.s32 32, %v1310_v13  ;;  %v1315_v46 = vsub.s32 4294967266, %v1310_v13  ;;  %vm1674_vm5 = vcmp.gt.s32.totalorder %v1673_v56, 0  ;;  %v1456_v18 = vshll.u32 %v5154_v25, 30 }
 0x163   :  { %vm5169_vm9 = vcmp.le.f32.partialorder %v7666_v21, 0.7853982  ;;  %v1584_v61 = vmul.u32 %v1582_v59, %v1558_v52  ;;  %v5177_v8 = vmul.u32 %v1582_v59, %v1559_v33  ;;  %v1588_v62 = vshll.u32 %v5158_v24, 16 }
 0x164   :  { %v889_v32 = vxor.u32 2147483648, %v873_v30  ;;  %v1562_v2 = vmul.u32 %v1560_v9, %v1558_v52  ;;  %v5180_v21 = vmul.u32 %v1560_v9, %v1559_v33  ;;  %v1566_v10 = vshll.u32 %v5163_v26, 16 }
 0x165   :  { %v886_v11 = vxor.u32 2147483648, %v881_v51  ;;  %v1025_v53 = vadd.f32 -0.4999988, %v1024_v28  ;;  %v1169_v40 = vxor.u32 2147483648, %v1168_v45  ;;  %v1675_v4 = vsel %vm1674_vm5, %v1673_v56, 0 }
 0x166   :  { %v1033_v16 = vmul.f32 %v1032_v48, %v5060_v6  ;;  %v1312_v44 = vshll.u32 %v4993_v57, %v1310_v13  ;;  %v1313_v47 = vshrl.u32 %v1295_v15, %v1311_v63  ;;  %v1316_v29 = vadd.s32 127, %v1315_v46 }
 0x167   :  { %v5186_v59 = vsub.s32 %v5115_v42, %v1456_v18  ;;  %v1590_v25 = vshll.u32 %v5177_v8, 16  ;;  %vm1592_vm0 = vc.u32 %v1584_v61, %v1588_v62  ;;  %v5189_v52 = vadd.s32 %v1588_v62, %v1584_v61 }
 0x168   :  { %v1568_v9 = vshll.u32 %v5180_v21, 16  ;;  %vm1570_vm7 = vc.u32 %v1562_v2, %v1566_v10  ;;  %v1572_v28 = vadd.s32 %v1566_v10, %v1562_v2  ;;  %v1677_v60 = vand.u32 31, %v1675_v4 }
 0x169   :  { %v890_v56 = vsel %vm888_vm10, %v889_v32, %v881_v51  ;;  %v1026_v57 = vmul.f32 %v1025_v53, %v5060_v6  ;;  %v1170_v13 = vsel %vm1049_vm3, %v1169_v40, %v1168_v45  ;;  %v1587_v42 = vmul.u32 %v1583_v34, %v1559_v33 }
 0x16a   :  { %v887_v48 = vsel %vm885_vm1, %v873_v30, %v886_v11  ;;  %v1317_v15 = vshll.u32 %v1316_v29, 23  ;;  %v1565_v63 = vmul.u32 %v1561_v14, %v1559_v33  ;;  %v1593_v46 = vsel %vm1592_vm0, 1, %v7615_v41 }
 0x16b   :  { %v1034_v18 = vadd.f32 1.0, %v1033_v16  ;;  %v1314_v61 = vor.u32 %v1313_v47, %v1312_v44  ;;  %v1571_v62 = vsel %vm1570_vm7, 1, %v7615_v41  ;;  %vm1596_vm8 = vc.u32 %v5189_v52, %v1590_v25 }
 0x16c   :  { %v5207_v53 = vsel %vm5169_vm9, %v7664_v39, %v1170_v13  ;;  %v1459_v6 = vsub.s32 0, %v5186_v59  ;;  %vm1574_vm12 = vc.u32 %v1572_v28, %v1568_v9  ;;  %v5210_v29 = vsub.s32 32, %v1677_v60 }
 0x16d   :  { %v5214_v40 = vsel %vm884_vm11, %v887_v48, %v890_v56  ;;  %v5216_v47 = vadd.f32 1.0, %v1026_v57  ;;  %vm1458_vm15 = vcmp.lt.s32.totalorder %v5186_v59, 0  ;;  %v1595_v44 = vadd.s32 %v1593_v46, %v1587_v42 }
 0x16e   :  { %v1318_v34 = vor.u32 4788187, %v1317_v15  ;;  %v1573_v14 = vadd.s32 %v1571_v62, %v1565_v63  ;;  %v1597_v33 = vsel %vm1596_vm8, 1, %v7615_v41  ;;  %v7460_v30 = vand.u32 2147483647, %v7659_v49 }
 0x16f   :  { %v5222_v51 = vmul.f32 %v1034_v18, %v5021_v27  ;;  %v5226_v45 = vmul.f32 %v5207_v53, %v5207_v53  ;;  %v1321_v20 = vcvt.s32.f32 %v1314_v61  ;;  %v1575_v32 = vsel %vm1574_vm12, 1, %v7615_v41 }
 0x170   :  { %v1460_v2 = vsel %vm1458_vm15, %v1459_v6, %v5186_v59  ;;  %v1589_v10 = vshrl.u32 %v5158_v24, 16  ;;  %v1692_v11 = vshll.u32 %v7592_v1, %v1677_v60  ;;  %v1693_v16 = vshrl.u32 %v7622_v37, %v5210_v29 }
 0x171   :  { %v1599_v9 = vadd.s32 %v1597_v33, %v1595_v44  ;;  %v5234_v28 = vshrl.u32 %v1675_v4, 5  ;;  %v1689_v27 = vshll.u32 %v7596_v35, %v1677_v60  ;;  %v1690_v56 = vshrl.u32 %v7592_v1, %v5210_v29 }
 0x172   :  { %v1319_v57 = vand.u32 2147483647, %v1318_v34  ;;  %v1567_v13 = vshrl.u32 %v5163_v26, 16  ;;  %v1577_v42 = vadd.s32 %v1575_v32, %v1573_v14  ;;  %v1670_v24 = vand.u32 8388607, %v7460_v30 }
 0x173   :  { %v1683_v48 = vshll.u32 %v7594_v0, %v1677_v60  ;;  %v1684_v15 = vshrl.u32 %v7595_v36, %v5210_v29  ;;  %v1686_v4 = vshll.u32 %v7595_v36, %v1677_v60  ;;  %v1687_v63 = vshrl.u32 %v7596_v35, %v5210_v29 }
 0x174   :  { %v1461_v46 = vclz %v1460_v2  ;;  %v1680_v18 = vshll.u32 %v7562_v43, %v1677_v60  ;;  %v1681_v26 = vshrl.u32 %v7594_v0, %v5210_v29  ;;  %v1694_v61 = vor.u32 %v1693_v16, %v1692_v11 }
 0x175   :  { %v1591_v62 = vshrl.u32 %v5177_v8, 16  ;;  %v1600_v6 = vadd.s32 %v1599_v9, %v1589_v10  ;;  %v1691_v44 = vor.u32 %v1690_v56, %v1689_v27  ;;  %vm1698_vm14 = vcmp.lt.s32.totalorder %v5234_v28, 4 }
 0x176   :  { %vm882_vm10 = vweird.f32 %v7626_v22  ;;  %v1183_v34 = vmul.f32 -0.00019511016, %v5226_v45  ;;  %v1525_v14 = vshrl.u32 %v7562_v43, %v5001_v7  ;;  %v1569_v33 = vshrl.u32 %v5180_v21, 16 }
 0x177   :  { %v1578_v60 = vadd.s32 %v1577_v42, %v1567_v13  ;;  %v1322_v32 = vmul.f32 %v1321_v20, %v1319_v57  ;;  %v1546_v2 = vsel %vm1544_vm2, %v5080_v3, 2102212464  ;;  %v5261_v11 = vor.u32 %v1684_v15, %v1683_v48  ;;  %v7669_v48 = vld [vmem:[#allocation45_spill] sm:$0xff] }
 0x178   :  { %v5263_v10 = vor.u32 %v1687_v63, %v1686_v4  ;;  %vm1039_vm1 = vcmp.eq.s32.totalorder %v5160_v23, 0  ;;  %v5266_v16 = vor.u32 %v1681_v26, %v1680_v18  ;;  %vm1695_vm11 = vcmp.lt.s32.totalorder %v5234_v28, 1 }
 0x179   :  { %vm1697_vm5 = vcmp.lt.s32.totalorder %v5234_v28, 3  ;;  %v1708_v7 = vsel %vm1698_vm14, %v1694_v61, 1326507024  ;;  %v3566_v21 = vadd.s32 4294967294, %v1461_v46  ;;  %v1601_v20 = vadd.s32 %v1600_v6, %v1591_v62 }
 0x17a   :  { %v1671_v9 = vor.u32 8388608, %v1670_v24  ;;  %v1704_v3 = vsel %vm1698_vm14, %v1691_v44, 920167782  ;;  %v1545_v27 = vsel %vm1541_vm6, %v1525_v14, %v5076_v38  ;;  %v1547_v56 = vsel %vm1543_vm4, %v5078_v12, %v1546_v2 }
 0x17b   :  { %v5280_v57 = vadd.s32 %v1578_v60, %v1569_v33  ;;  %v5285_v13 = vadd.s32 %v5189_v52, %v1590_v25  ;;  %v1176_v42 = vmul.f32 -0.001358992, %v5226_v45  ;;  %vm1696_vm2 = vcmp.lt.s32.totalorder %v5234_v28, 2 }
 0x17c   :  { %v1707_v38 = vsel %vm1695_vm11, %v5261_v11, %v5263_v10  ;;  %v1709_v24 = vsel %vm1697_vm5, %v1691_v44, %v1708_v7  ;;  %vm1038_vm6 = vcmp.lt.s32.totalorder %v5160_v23, 2  ;;  %v1184_v12 = vadd.f32 0.008332121, %v1183_v34 }
 0x17d   :  { %vm1203_vm4 = vcmp.lt.s32.totalorder %v7669_v48, 0  ;;  %v1703_v25 = vsel %vm1695_vm11, %v5266_v16, %v5261_v11  ;;  %v1705_v8 = vsel %vm1697_vm5, %v5263_v10, %v1704_v3  ;;  %vm3567_vm0 = vcmp.lt.s32.totalorder %v3566_v21, 0 }
 0x17e   :  { %v1548_v52 = vsel %vm1542_vm13, %v1545_v27, %v1547_v56  ;;  %v1605_v15 = vadd.s32 1, %v1601_v20  ;;  %v5306_v4 = vshll.u32 %v1671_v9, 8  ;;  %v1171_v63 = vsub.s32 4, %v4783_v17 }
 0x17f   :  { %v1323_v46 = vxor.u32 2147483648, %v1322_v32  ;;  %vm1604_vm7 = vc.u32 %v5280_v57, %v5285_v13  ;;  %v5313_v18 = vsel %vm1696_vm2, %v1707_v38, %v1709_v24  ;;  %vm1036_vm8 = vweird.f32 %v7650_v5  ;;  %v7674_v38 = vld [vmem:[#allocation49_spill] sm:$0xff] }
 0x180   :  { %v1040_v26 = vxor.u32 2147483648, %v5222_v51  ;;  %v1043_v50 = vxor.u32 2147483648, %v5216_v47  ;;  %v1177_v61 = vadd.f32 0.041655596, %v1176_v42  ;;  %v5320_v62 = vsel %vm1696_vm2, %v1703_v25, %v1705_v8 }
 0x181   :  { %vm1042_vm13 = vcmp.eq.s32.totalorder %v5160_v23, 2  ;;  %v1185_v6 = vmul.f32 %v1184_v12, %v5226_v45  ;;  %v1464_v44 = vsel %vm3567_vm0, 0, %v3566_v21  ;;  %v1602_v34 = vmul.u32 %v5117_v54, %v1548_v52 }
 0x182   :  { %v5328_v14 = vsel %vm882_vm10, nan, %v5214_v40  ;;  %v1606_v33 = vsel %vm1604_vm7, %v1605_v15, %v1601_v20  ;;  %v1712_v60 = vand.u32 65535, %v5306_v4  ;;  %v1715_v2 = vshrl.u32 %v5313_v18, 16 }
 0x183   :  { %7670 = vst [vmem:[#allocation63_spill] sm:$0xff] %v5328_v14  ;;  %v1172_v7 = vsel %vm1049_vm3, %v1171_v63, %v4783_v17  ;;  %v7671_v9 = vand.u32 2147483647, %v7669_v48  ;;  %v1324_v22 = vsel %vm1203_vm4, %v1323_v46, %v1322_v32  ;;  %v1737_v54 = vshrl.u32 %v5320_v62, 16 }
 0x184   :  { %v1041_v40 = vsel %vm1039_vm1, %v5216_v47, %v1040_v26  ;;  %v1044_v20 = vsel %vm1042_vm13, %v1043_v50, %v5222_v51  ;;  %v1178_v3 = vmul.f32 %v1177_v61, %v5226_v45  ;;  %v1469_v17 = vsub.s32 4294967266, %v1464_v44 }
 0x185   :  { %vm5337_vm12 = vcmp.le.f32.partialorder %v7671_v9, 0.7853982  ;;  %v1186_v27 = vadd.f32 -0.16666654, %v1185_v6  ;;  %v1449_v56 = vadd.s32 %v5047_v19, %v5033_v55  ;;  %v1607_v42 = vadd.s32 %v1606_v33, %v1602_v34 }
 0x186   :  { %v1820_v24 = vand.u32 2139095040, %v7674_v38  ;;  %v5355_v32 = vsel %vm5337_vm12, %v7669_v48, %v1324_v22  ;;  %v1465_v12 = vsub.s32 32, %v1464_v44  ;;  %v1714_v47 = vand.u32 65535, %v5313_v18 }
 0x187   :  { %v5358_v25 = vmul.u32 %v1715_v2, %v1712_v60  ;;  %v1174_v51 = vsel %vm5169_vm9, 0, %v1172_v7  ;;  %v1713_v8 = vshrl.u32 %v5306_v4, 16  ;;  %v1736_v55 = vand.u32 65535, %v5320_v62 }
 0x188   :  { %v5364_v19 = vmul.u32 %v1737_v54, %v1712_v60  ;;  %v1045_v52 = vsel %vm1038_vm6, %v1041_v40, %v1044_v20  ;;  %v1179_v15 = vadd.f32 -0.4999988, %v1178_v3  ;;  %v1470_v63 = vadd.s32 127, %v1469_v17 }
 0x189   :  { %v1821_v46 = vshrl.u32 %v1820_v24, 23  ;;  %v1187_v26 = vmul.f32 %v1186_v27, %v5226_v45  ;;  %v5371_v18 = vmul.f32 %v5355_v32, %v5355_v32  ;;  %v1466_v31 = vshll.u32 %v5186_v59, %v1464_v44 }
 0x18a   :  { %v1608_v50 = vadd.s32 536870912, %v1607_v42  ;;  %v1467_v61 = vshrl.u32 %v1449_v56, %v1465_v12  ;;  %v1716_v6 = vmul.u32 %v1714_v47, %v1712_v60  ;;  %v1720_v62 = vshll.u32 %v5358_v25, 16 }
 0x18b   :  { %v3574_v34 = vadd.s32 4294967169, %v1821_v46  ;;  %v5377_v23 = vsel %vm1036_vm8, nan, %v1045_v52  ;;  %v1738_v33 = vmul.u32 %v1736_v55, %v1712_v60  ;;  %v5379_v7 = vmul.u32 %v1736_v55, %v1713_v8 }
 0x18c   :  { %7675 = vst [vmem:[#allocation76_spill] sm:$0xff] %v5377_v23  ;;  %v1742_v9 = vshll.u32 %v5364_v19, 16  ;;  %v5382_v22 = vand.u32 3, %v1174_v51  ;;  %v1471_v40 = vshll.u32 %v1470_v63, 23  ;;  %v5384_v20 = vmul.u32 %v1714_v47, %v1713_v8 }
 0x18d   :  { %v1827_v59 = vadd.s32 1, %v3574_v34  ;;  %v1180_v44 = vmul.f32 %v1179_v15, %v5226_v45  ;;  %v1188_v3 = vadd.f32 1.0, %v1187_v26  ;;  %v1330_v17 = vmul.f32 -0.001358992, %v5371_v18 }
 0x18e   :  { %v5388_v27 = vshrl.u32 %v1608_v50, 30  ;;  %v1337_v5 = vmul.f32 -0.00019511016, %v5371_v18  ;;  %v5391_v60 = vor.u32 %v1467_v61, %v1466_v31  ;;  %vm1724_vm3 = vc.u32 %v1716_v6, %v1720_v62 }
 0x18f   :  { %vm1828_vm9 = vcmp.gt.s32.totalorder %v1827_v59, 0  ;;  %v7461_v56 = vshll.u32 %v5379_v7, 16  ;;  %vm1746_vm15 = vc.u32 %v1738_v33, %v1742_v9  ;;  %v5394_v24 = vadd.s32 %v1742_v9, %v1738_v33 }
 0x190   :  { %v1829_v12 = vsel %vm1828_vm9, %v1827_v59, 0  ;;  %v5396_v47 = vor.u32 4788187, %v1471_v40  ;;  %v1722_v45 = vshll.u32 %v5384_v20, 16  ;;  %v1726_v51 = vadd.s32 %v1720_v62, %v1716_v6 }
 0x191   :  { %v1831_v55 = vand.u32 31, %v1829_v12  ;;  %v1610_v15 = vshll.u32 %v5388_v27, 30  ;;  %v1719_v63 = vmul.u32 %v1715_v2, %v1713_v8  ;;  %v1741_v46 = vmul.u32 %v1737_v54, %v1713_v8 }
 0x192   :  { %v5401_v26 = vadd.f32 1.0, %v1180_v44  ;;  %v1725_v31 = vsel %vm1724_vm3, 1, %v7615_v41  ;;  %v1747_v50 = vsel %vm1746_vm15, 1, %v7615_v41  ;;  %v5408_v34 = vmul.f32 %v1188_v3, %v5207_v53 }
 0x193   :  { %v5405_v61 = vsub.s32 32, %v1831_v55  ;;  %v5410_v33 = vadd.f32 0.041655596, %v1330_v17  ;;  %v5412_v6 = vadd.f32 0.008332121, %v1337_v5  ;;  %vm1750_vm10 = vc.u32 %v5394_v24, %v7461_v56 }
 0x194   :  { %v1473_v2 = vand.u32 2147483647, %v5396_v47  ;;  %v1475_v54 = vcvt.s32.f32 %v5391_v60  ;;  %v1679_v8 = vshrl.u32 %v7562_v43, %v5210_v29  ;;  %vm1728_vm1 = vc.u32 %v1726_v51, %v1722_v45 }
 0x195   :  { %v5421_v62 = vsub.s32 %v1607_v42, %v1610_v15  ;;  %v1700_v53 = vsel %vm1698_vm14, %v5263_v10, 2102212464  ;;  %v1727_v9 = vadd.s32 %v1725_v31, %v1719_v63  ;;  %v1749_v40 = vadd.s32 %v1747_v50, %v1741_v46 }
 0x196   :  { %v1751_v59 = vsel %vm1750_vm10, 1, %v7615_v41  ;;  %v7462_v44 = vand.u32 2147483647, %v7674_v38  ;;  %v1843_v3 = vshll.u32 %v7596_v35, %v1831_v55  ;;  %v1844_v17 = vshrl.u32 %v7592_v1, %v5405_v61 }
 0x197   :  { %v1729_v29 = vsel %vm1728_vm1, 1, %v7615_v41  ;;  %v5432_v5 = vshrl.u32 %v1829_v12, 5  ;;  %v1837_v42 = vshll.u32 %v7594_v0, %v1831_v55  ;;  %v1840_v60 = vshll.u32 %v7595_v36, %v1831_v55 }
 0x198   :  { %v1838_v10 = vshrl.u32 %v7595_v36, %v5405_v61  ;;  %v1841_v47 = vshrl.u32 %v7596_v35, %v5405_v61  ;;  %v1846_v45 = vshll.u32 %v7592_v1, %v1831_v55  ;;  %v1847_v51 = vshrl.u32 %v7622_v37, %v5405_v61 }
 0x199   :  { %v1743_v15 = vshrl.u32 %v5364_v19, 16  ;;  %v1753_v63 = vadd.s32 %v1751_v59, %v1749_v40  ;;  %v1834_v12 = vshll.u32 %v7562_v43, %v1831_v55  ;;  %v1835_v46 = vshrl.u32 %v7594_v0, %v5405_v61  ;;  %v7676_v19 = vld [vmem:[#allocation50_spill] sm:$0xff] }
 0x19a   :  { %v1721_v31 = vshrl.u32 %v5358_v25, 16  ;;  %v1731_v50 = vadd.s32 %v1729_v29, %v1727_v9  ;;  %v1824_v30 = vand.u32 8388607, %v7462_v44  ;;  %v1845_v52 = vor.u32 %v1844_v17, %v1843_v3  ;;  %v7677_v3 = vld [vmem:[#allocation46_spill] sm:$0xff] }
 0x19b   :  { %vm1612_vm14 = vcmp.lt.s32.totalorder %v5421_v62, 0  ;;  %v1613_v56 = vsub.s32 0, %v5421_v62  ;;  %vm1852_vm6 = vcmp.lt.s32.totalorder %v5432_v5, 4  ;;  %v1974_v40 = vand.u32 2139095040, %v7676_v19 }
 0x19c   :  { %vm1193_vm0 = vcmp.eq.s32.totalorder %v5382_v22, 0  ;;  %vm1196_vm7 = vcmp.eq.s32.totalorder %v5382_v22, 2  ;;  %v1723_v55 = vshrl.u32 %v5384_v20, 16  ;;  %v5457_v25 = vor.u32 %v1838_v10, %v1837_v42 }
 0x19d   :  { %v5459_v9 = vor.u32 %v1841_v47, %v1840_v60  ;;  %v1848_v59 = vor.u32 %v1847_v51, %v1846_v45  ;;  %vm1357_vm8 = vcmp.lt.s32.totalorder %v7677_v3, 0  ;;  %v1745_v17 = vshrl.u32 %v5379_v7, 16 }
 0x19e   :  { %v1754_v29 = vadd.s32 %v1753_v63, %v1743_v15  ;;  %v5463_v44 = vor.u32 %v1835_v46, %v1834_v12  ;;  %vm1849_vm13 = vcmp.lt.s32.totalorder %v5432_v5, 1  ;;  %v1732_v23 = vadd.s32 %v1731_v50, %v1721_v31 }
 0x19f   :  { %v1825_v14 = vor.u32 8388608, %v1824_v30  ;;  %vm1851_vm3 = vcmp.lt.s32.totalorder %v5432_v5, 3  ;;  %v1858_v20 = vsel %vm1852_vm6, %v1845_v52, 920167782  ;;  %v1476_v42 = vmul.f32 %v1475_v54, %v1473_v2 }
 0x1a0   :  { %v1614_v60 = vsel %vm1612_vm14, %v1613_v56, %v5421_v62  ;;  %v1699_v10 = vsel %vm1695_vm11, %v1679_v8, %v5266_v16  ;;  %v1975_v47 = vshrl.u32 %v1974_v40, 23  ;;  %vm1192_vm9 = vcmp.lt.s32.totalorder %v5382_v22, 2 }
 0x1a1   :  { %v1701_v30 = vsel %vm1697_vm5, %v5261_v11, %v1700_v53  ;;  %vm1850_vm15 = vcmp.lt.s32.totalorder %v5432_v5, 2  ;;  %v1861_v2 = vsel %vm1849_vm13, %v5457_v25, %v5459_v9  ;;  %v1862_v56 = vsel %vm1852_vm6, %v1848_v59, 1326507024 }
 0x1a2   :  { %v1755_v54 = vadd.s32 %v1754_v29, %v1745_v17  ;;  %v1857_v16 = vsel %vm1849_vm13, %v5463_v44, %v5457_v25  ;;  %v1859_v11 = vsel %vm1851_vm3, %v5459_v9, %v1858_v20  ;;  %v1863_v8 = vsel %vm1851_vm3, %v1845_v52, %v1862_v56 }
 0x1a3   :  { %v1615_v53 = vclz %v1614_v60  ;;  %v5495_v45 = vadd.s32 %v1732_v23, %v1723_v55  ;;  %v7678_v51 = vshll.u32 %v5379_v7, 16  ;;  %v5502_v63 = vshll.u32 %v1825_v14, 8 }
 0x1a4   :  { %v1194_v12 = vxor.u32 2147483648, %v5408_v34  ;;  %v1197_v46 = vxor.u32 2147483648, %v5401_v26  ;;  %v5508_v31 = vsel %vm1850_vm15, %v1861_v2, %v1863_v8  ;;  %v3577_v50 = vadd.s32 4294967169, %v1975_v47 }
 0x1a5   :  { %v5500_v15 = vadd.s32 %v5394_v24, %v7678_v51  ;;  %v1332_v23 = vmul.f32 %v5410_v33, %v5371_v18  ;;  %v1339_v7 = vmul.f32 %v5412_v6, %v5371_v18  ;;  %v1477_v52 = vxor.u32 2147483648, %v1476_v42 }
 0x1a6   :  { %v5516_v14 = vsel %vm1850_vm15, %v1857_v16, %v1859_v11  ;;  %v7679_v24 = vsub.s32 4, %v4954_v58  ;;  %v7680_v55 = vand.u32 2147483647, %v7677_v3  ;;  %v1702_v33 = vsel %vm1696_vm2, %v1699_v10, %v1701_v30 }
 0x1a7   :  { %v1759_v6 = vadd.s32 1, %v1755_v54  ;;  %v3569_v17 = vadd.s32 4294967294, %v1615_v53  ;;  %vm1758_vm5 = vc.u32 %v5495_v45, %v5500_v15  ;;  %v1866_v29 = vand.u32 65535, %v5502_v63 }
 0x1a8   :  { %v1326_v40 = vsel %vm1203_vm4, %v7679_v24, %v4954_v58  ;;  %vm5525_vm11 = vcmp.le.f32.partialorder %v7680_v55, 0.7853982  ;;  %v1869_v20 = vshrl.u32 %v5508_v31, 16  ;;  %v1195_v58 = vsel %vm1193_vm0, %v5401_v26, %v1194_v12 }
 0x1a9   :  { %v1198_v60 = vsel %vm1196_vm7, %v1197_v46, %v5408_v34  ;;  %v1891_v28 = vshrl.u32 %v5516_v14, 16  ;;  %v1981_v10 = vadd.s32 1, %v3577_v50  ;;  %v1333_v47 = vadd.f32 -0.4999988, %v1332_v23 }
 0x1aa   :  { %v1340_v30 = vadd.f32 -0.16666654, %v1339_v7  ;;  %v1478_v2 = vsel %vm1357_vm8, %v1477_v52, %v1476_v42  ;;  %v1756_v56 = vmul.u32 %v5306_v4, %v1702_v33  ;;  %v1760_v16 = vsel %vm1758_vm5, %v1759_v6, %v1755_v54  ;;  %v7683_v4 = vld [vmem:[#allocation74_spill] sm:$0xff] }
 0x1ab   :  { %v1867_v11 = vshrl.u32 %v5502_v63, 16  ;;  %v1868_v8 = vand.u32 65535, %v5508_v31  ;;  %v7463_v26 = vand.u32 2147483647, %v7676_v19  ;;  %v1328_v34 = vsel %vm5337_vm12, 0, %v1326_v40 }
 0x1ac   :  { %vm3570_vm2 = vcmp.lt.s32.totalorder %v3569_v17, 0  ;;  %v5550_v53 = vmul.u32 %v1869_v20, %v1866_v29  ;;  %v1890_v51 = vand.u32 65535, %v5516_v14  ;;  %v5555_v42 = vsel %vm1192_vm9, %v1195_v58, %v1198_v60 }
 0x1ad   :  { %v1479_v54 = vsub.s32 4, %v7683_v4  ;;  %v5558_v12 = vmul.u32 %v1891_v28, %v1866_v29  ;;  %vm1982_vm4 = vcmp.gt.s32.totalorder %v1981_v10, 0  ;;  %v1334_v46 = vmul.f32 %v1333_v47, %v5371_v18 }
 0x1ae   :  { %v1341_v31 = vmul.f32 %v1340_v30, %v5371_v18  ;;  %v5565_v21 = vsel %vm5525_vm11, %v7677_v3, %v1478_v2  ;;  %v5567_v50 = vadd.s32 %v1760_v16, %v1756_v56  ;;  %v5569_v23 = vand.u32 3, %v1328_v34 }
 0x1af   :  { %v5571_v22 = vsel %vm3570_vm2, 0, %v3569_v17  ;;  %v5573_v7 = vmul.u32 %v1868_v8, %v1867_v11  ;;  %v5577_v52 = vand.u32 8388607, %v7463_v26  ;;  %v1870_v14 = vmul.u32 %v1868_v8, %v1866_v29 }
 0x1b0   :  { %v1874_v18 = vshll.u32 %v5550_v53, 16  ;;  %v5580_v24 = vmul.u32 %v1890_v51, %v1867_v11  ;;  %v1983_v40 = vsel %vm1982_vm4, %v1981_v10, 0  ;;  %v5585_v55 = vsel %vm1357_vm8, %v1479_v54, %v7683_v4 }
 0x1b1   :  { %v5589_v33 = vmul.f32 %v5565_v21, %v5565_v21  ;;  %v1892_v6 = vmul.u32 %v1890_v51, %v1866_v29  ;;  %v1896_v17 = vshll.u32 %v5558_v12, 16  ;;  %v5592_v58 = vadd.f32 1.0, %v1334_v46 }
 0x1b2   :  { %v5594_v60 = vadd.f32 1.0, %v1341_v31  ;;  %v1762_v47 = vadd.s32 536870912, %v5567_v50  ;;  %v1985_v30 = vand.u32 31, %v1983_v40  ;;  %v1623_v2 = vsub.s32 4294967266, %v5571_v22 }
 0x1b3   :  { %v1484_v10 = vmul.f32 -0.001358992, %v5589_v33  ;;  %v1876_v56 = vshll.u32 %v5573_v7, 16  ;;  %v1979_v16 = vor.u32 8388608, %v5577_v52  ;;  %vm5601_vm12 = vc.u32 %v1870_v14, %v1874_v18 }
 0x1b4   :  { %v1880_v29 = vadd.s32 %v1874_v18, %v1870_v14  ;;  %v5606_v51 = vsub.s32 32, %v1985_v30  ;;  %vm1900_vm10 = vc.u32 %v1892_v6, %v1896_v17  ;;  %v5608_v4 = vadd.s32 %v1896_v17, %v1892_v6 }
 0x1b5   :  { %v1988_v54 = vshll.u32 %v7562_v43, %v1985_v30  ;;  %v1991_v46 = vshll.u32 %v7594_v0, %v1985_v30  ;;  %v5612_v31 = vshrl.u32 %v1762_v47, 30  ;;  %v1873_v26 = vmul.u32 %v1869_v20, %v1867_v11 }
 0x1b6   :  { %v1895_v52 = vmul.u32 %v1891_v28, %v1867_v11  ;;  %v5614_v19 = vshrl.u32 %v1983_v40, 5  ;;  %v1989_v14 = vshrl.u32 %v7594_v0, %v5606_v51  ;;  %v1992_v18 = vshrl.u32 %v7595_v36, %v5606_v51 }
 0x1b7   :  { %v1994_v34 = vshll.u32 %v7595_v36, %v1985_v30  ;;  %v1995_v6 = vshrl.u32 %v7596_v35, %v5606_v51  ;;  %v1879_v17 = vsel %vm5601_vm12, 1, %v7615_v41  ;;  %v1901_v20 = vsel %vm1900_vm10, 1, %v7615_v41 }
 0x1b8   :  { %v1997_v28 = vshll.u32 %v7596_v35, %v1985_v30  ;;  %v1998_v11 = vshrl.u32 %v7592_v1, %v5606_v51  ;;  %vm1882_vm1 = vc.u32 %v1880_v29, %v1876_v56  ;;  %v7686_v40 = vshll.u32 %v5580_v24, 16 }
 0x1b9   :  { %v5633_v47 = vor.u32 %v1989_v14, %v1988_v54  ;;  %v5635_v3 = vor.u32 %v1992_v18, %v1991_v46  ;;  %v1764_v48 = vshll.u32 %v5612_v31, 30  ;;  %v2000_v38 = vshll.u32 %v7592_v1, %v1985_v30 }
 0x1ba   :  { %vm1904_vm14 = vc.u32 %v5608_v4, %v7686_v40  ;;  %v1999_v8 = vor.u32 %v1998_v11, %v1997_v28  ;;  %vm2003_vm0 = vcmp.lt.s32.totalorder %v5614_v19, 1  ;;  %v1903_v49 = vadd.s32 %v1901_v20, %v1895_v52 }
 0x1bb   :  { %v5640_v35 = vor.u32 %v1995_v6, %v1994_v34  ;;  %v2001_v56 = vshrl.u32 %v7622_v37, %v5606_v51  ;;  %vm2006_vm7 = vcmp.lt.s32.totalorder %v5614_v19, 4  ;;  %v1881_v29 = vadd.s32 %v1879_v17, %v1873_v26 }
 0x1bc   :  { %v1883_v54 = vsel %vm1882_vm1, 1, %v7615_v41  ;;  %v1905_v46 = vsel %vm1904_vm14, 1, %v7615_v41  ;;  %vm2005_vm8 = vcmp.lt.s32.totalorder %v5614_v19, 3  ;;  %vm2004_vm9 = vcmp.lt.s32.totalorder %v5614_v19, 2 }
 0x1bd   :  { %v2002_v14 = vor.u32 %v2001_v56, %v2000_v38  ;;  %v2011_v30 = vsel %vm2003_vm0, %v5633_v47, %v5635_v3  ;;  %v2012_v34 = vsel %vm2006_vm7, %v1999_v8, 920167782  ;;  %v1491_v52 = vmul.f32 -0.00019511016, %v5589_v33 }
 0x1be   :  { %v1603_v26 = vadd.s32 %v5285_v13, %v5280_v57  ;;  %v1619_v18 = vsub.s32 32, %v5571_v22  ;;  %v1624_v6 = vadd.s32 127, %v1623_v2  ;;  %v1485_v17 = vadd.f32 0.041655596, %v1484_v10 }
 0x1bf   :  { %v1897_v38 = vshrl.u32 %v5558_v12, 16  ;;  %v1907_v20 = vadd.s32 %v1905_v46, %v1903_v49  ;;  %v2013_v28 = vsel %vm2005_vm8, %v5640_v35, %v2012_v34  ;;  %v5664_v11 = vsub.s32 %v5567_v50, %v1764_v48 }
 0x1c0   :  { %v1875_v40 = vshrl.u32 %v5550_v53, 16  ;;  %v1885_v56 = vadd.s32 %v1883_v54, %v1881_v29  ;;  %v5669_v57 = vsel %vm2004_vm9, %v2011_v30, %v2013_v28  ;;  %v1620_v13 = vshll.u32 %v5421_v62, %v5571_v22 }
 0x1c1   :  { %v2016_v49 = vsel %vm2006_vm7, %v2002_v14, 1326507024  ;;  %v5675_v12 = vshll.u32 %v1979_v16, 8  ;;  %v2045_v10 = vshrl.u32 %v5669_v57, 16  ;;  %v1621_v2 = vshrl.u32 %v1603_v26, %v1619_v18 }
 0x1c2   :  { %v1625_v48 = vshll.u32 %v1624_v6, 23  ;;  %v1833_v53 = vshrl.u32 %v7562_v43, %v5405_v61  ;;  %v2015_v50 = vsel %vm2003_vm0, %v5635_v3, %v5640_v35  ;;  %v1899_v29 = vshrl.u32 %v5580_v24, 16 }
 0x1c3   :  { %v1908_v62 = vadd.s32 %v1907_v20, %v1897_v38  ;;  %v2017_v22 = vsel %vm2005_vm8, %v1999_v8, %v2016_v49  ;;  %v2020_v16 = vand.u32 65535, %v5675_v12  ;;  %v1767_v54 = vsub.s32 0, %v5664_v11 }
 0x1c4   :  { %v1854_v46 = vsel %vm1852_vm6, %v5459_v9, 2102212464  ;;  %v1877_v61 = vshrl.u32 %v5573_v7, 16  ;;  %v1886_v14 = vadd.s32 %v1885_v56, %v1875_v40  ;;  %vm1766_vm5 = vcmp.lt.s32.totalorder %v5664_v11, 0 }
 0x1c5   :  { %v2018_v30 = vsel %vm2004_vm9, %v2015_v50, %v2017_v22  ;;  %v2044_v34 = vand.u32 65535, %v5669_v57  ;;  %v5697_v26 = vmul.u32 %v2045_v10, %v2020_v16  ;;  %v1492_v8 = vadd.f32 0.008332121, %v1491_v52 }
 0x1c6   :  { %v1622_v18 = vor.u32 %v1621_v2, %v1620_v13  ;;  %v1853_v6 = vsel %vm1849_vm13, %v1833_v53, %v5463_v44  ;;  %v2021_v9 = vshrl.u32 %v5675_v12, 16  ;;  %v1855_v7 = vsel %vm1851_vm3, %v5457_v25, %v1854_v46 }
 0x1c7   :  { %v1909_v38 = vadd.s32 %v1908_v62, %v1899_v29  ;;  %v2022_v20 = vand.u32 65535, %v2018_v30  ;;  %v2023_v28 = vshrl.u32 %v2018_v30, 16  ;;  %v1626_v40 = vor.u32 4788187, %v1625_v48 }
 0x1c8   :  { %v1768_v56 = vsel %vm1766_vm5, %v1767_v54, %v5664_v11  ;;  %v5707_v57 = vadd.s32 %v1886_v14, %v1877_v61  ;;  %v7687_v52 = vshll.u32 %v5580_v24, 16  ;;  %v2046_v2 = vmul.u32 %v2044_v34, %v2020_v16 }
 0x1c9   :  { %v2024_v44 = vmul.u32 %v2022_v20, %v2020_v16  ;;  %v5714_v49 = vmul.u32 %v2023_v28, %v2020_v16  ;;  %v2050_v53 = vshll.u32 %v5697_v26, 16  ;;  %v1343_v25 = vmul.f32 %v5594_v60, %v5355_v32 }
 0x1ca   :  { %v5712_v13 = vadd.s32 %v5608_v4, %v7687_v52  ;;  %vm1347_vm6 = vcmp.eq.s32.totalorder %v5569_v23, 0  ;;  %v1856_v48 = vsel %vm1850_vm15, %v1853_v6, %v1855_v7  ;;  %v5722_v50 = vmul.u32 %v2022_v20, %v2021_v9 }
 0x1cb   :  { %v5724_v24 = vmul.u32 %v2044_v34, %v2021_v9  ;;  %v1486_v4 = vmul.f32 %v1485_v17, %v5589_v33  ;;  %v1769_v29 = vclz %v1768_v56  ;;  %v1913_v62 = vadd.s32 1, %v1909_v38 }
 0x1cc   :  { %v2028_v22 = vshll.u32 %v5714_v49, 16  ;;  %vm1190_vm13 = vweird.f32 %v7664_v39  ;;  %v1493_v16 = vmul.f32 %v1492_v8, %v5589_v33  ;;  %v1629_v32 = vcvt.s32.f32 %v1622_v18 }
 0x1cd   :  { %vm1912_vm3 = vc.u32 %v5707_v57, %v5712_v13  ;;  %v2030_v5 = vshll.u32 %v5722_v50, 16  ;;  %vm1346_vm15 = vcmp.lt.s32.totalorder %v5569_v23, 2  ;;  %v1627_v60 = vand.u32 2147483647, %v1626_v40 }
 0x1ce   :  { %v1910_v54 = vmul.u32 %v5502_v63, %v1856_v48  ;;  %vm2032_vm2 = vc.u32 %v2024_v44, %v2028_v22  ;;  %vm2054_vm4 = vc.u32 %v2046_v2, %v2050_v53  ;;  %v2027_v17 = vmul.u32 %v2023_v28, %v2021_v9 }
 0x1cf   :  { %v2034_v46 = vadd.s32 %v2028_v22, %v2024_v44  ;;  %v2052_v61 = vshll.u32 %v5724_v24, 16  ;;  %v5736_v14 = vadd.s32 %v2050_v53, %v2046_v2  ;;  %v3572_v30 = vadd.s32 4294967294, %v1769_v29  ;;  %v7688_v44 = vld [vmem:[#allocation51_spill] sm:$0xff] }
 0x1d0   :  { %v1914_v34 = vsel %vm1912_vm3, %v1913_v62, %v1909_v38  ;;  %v2033_v8 = vsel %vm2032_vm2, 1, %v7615_v41  ;;  %v2049_v18 = vmul.u32 %v2045_v10, %v2021_v9  ;;  %v1351_v6 = vxor.u32 2147483648, %v5592_v58 }
 0x1d1   :  { %v1494_v7 = vadd.f32 -0.16666654, %v1493_v16  ;;  %vm2036_vm12 = vc.u32 %v2034_v46, %v2030_v5  ;;  %v2055_v20 = vsel %vm2054_vm4, 1, %v7615_v41  ;;  %v1348_v63 = vxor.u32 2147483648, %v1343_v25 }
 0x1d2   :  { %vm1350_vm10 = vcmp.eq.s32.totalorder %v5569_v23, 2  ;;  %v1487_v28 = vadd.f32 -0.4999988, %v1486_v4  ;;  %v1630_v40 = vmul.f32 %v1629_v32, %v1627_v60  ;;  %v1482_v56 = vsel %vm5525_vm11, 0, %v5585_v55  ;;  %v7689_v4 = vld [vmem:[#allocation47_spill] sm:$0xff] }
 0x1d3   :  { %v5745_v52 = vadd.s32 %v1914_v34, %v1910_v54  ;;  %v2035_v38 = vadd.s32 %v2033_v8, %v2027_v17  ;;  %vm2058_vm1 = vc.u32 %v5736_v14, %v2052_v61  ;;  %vm3573_vm14 = vcmp.lt.s32.totalorder %v3572_v30, 0 }
 0x1d4   :  { %v2037_v10 = vsel %vm2036_vm12, 1, %v7615_v41  ;;  %v2057_v9 = vadd.s32 %v2055_v20, %v2049_v18  ;;  %v2128_v2 = vand.u32 2139095040, %v7688_v44  ;;  %v1352_v53 = vsel %vm1350_vm10, %v1351_v6, %v1343_v25 }
 0x1d5   :  { %v1495_v48 = vmul.f32 %v1494_v7, %v5589_v33  ;;  %vm1511_vm5 = vcmp.lt.s32.totalorder %v7689_v4, 0  ;;  %v2059_v59 = vsel %vm2058_vm1, 1, %v7615_v41  ;;  %v1349_v55 = vsel %vm1347_vm6, %v5592_v58, %v1348_v63 }
 0x1d6   :  { %v1488_v29 = vmul.f32 %v1487_v28, %v5589_v33  ;;  %v1631_v62 = vxor.u32 2147483648, %v1630_v40  ;;  %v2129_v22 = vshrl.u32 %v2128_v2, 23  ;;  %v5759_v16 = vsel %vm3573_vm14, 0, %v3572_v30 }
 0x1d7   :  { %v1916_v32 = vadd.s32 536870912, %v5745_v52  ;;  %v2029_v25 = vshrl.u32 %v5714_v49, 16  ;;  %v2039_v5 = vadd.s32 %v2037_v10, %v2035_v38  ;;  %v5766_v60 = vsel %vm1190_vm13, nan, %v5555_v42 }
 0x1d8   :  { %7690 = vst [vmem:[#allocation64_spill] sm:$0xff] %v5766_v60  ;;  %v2051_v54 = vshrl.u32 %v5697_v26, 16  ;;  %v2061_v17 = vadd.s32 %v2059_v59, %v2057_v9  ;;  %v3580_v58 = vadd.s32 4294967169, %v2129_v22  ;;  %v5771_v33 = vsel %vm1346_vm15, %v1349_v55, %v1352_v53 }
 0x1d9   :  { %v1496_v46 = vadd.f32 1.0, %v1495_v48  ;;  %v5773_v30 = vand.u32 3, %v1482_v56  ;;  %v7691_v34 = vand.u32 2147483647, %v7689_v4  ;;  %v1632_v39 = vsel %vm1511_vm5, %v1631_v62, %v1630_v40 }
 0x1da   :  { %v1633_v42 = vsub.s32 4, %v5388_v27  ;;  %v1777_v26 = vsub.s32 4294967266, %v5759_v16  ;;  %v2135_v8 = vadd.s32 1, %v3580_v58  ;;  %v5785_v23 = vadd.f32 1.0, %v1488_v29 }
 0x1db   :  { %vm5777_vm11 = vcmp.le.f32.partialorder %v7691_v34, 0.7853982  ;;  %v5787_v18 = vshrl.u32 %v1916_v32, 30  ;;  %v2031_v6 = vshrl.u32 %v5722_v50, 16  ;;  %v2040_v7 = vadd.s32 %v2039_v5, %v2029_v25 }
 0x1dc   :  { %v1987_v20 = vshrl.u32 %v7562_v43, %v5606_v51  ;;  %v2053_v63 = vshrl.u32 %v5724_v24, 16  ;;  %v2062_v28 = vadd.s32 %v2061_v17, %v2051_v54  ;;  %vm2136_vm6 = vcmp.gt.s32.totalorder %v2135_v8, 0 }
 0x1dd   :  { %v5794_v40 = vmul.f32 %v1496_v46, %v5565_v21  ;;  %v5799_v56 = vsel %vm5777_vm11, %v7689_v4, %v1632_v39  ;;  %v2008_v50 = vsel %vm2006_vm7, %v5640_v35, 2102212464  ;;  %v2137_v38 = vsel %vm2136_vm6, %v2135_v8, 0 }
 0x1de   :  { %v1757_v51 = vadd.s32 %v5500_v15, %v5495_v45  ;;  %v1773_v10 = vsub.s32 32, %v5759_v16  ;;  %v1778_v9 = vadd.s32 127, %v1777_v26  ;;  %v2139_v2 = vand.u32 31, %v2137_v38 }
 0x1df   :  { %v1918_v21 = vshll.u32 %v5787_v18, 30  ;;  %v5808_v53 = vadd.s32 %v2040_v7, %v2031_v6  ;;  %v5813_v48 = vadd.s32 %v5736_v14, %v2052_v61  ;;  %v7470_v59 = vand.u32 2147483647, %v7688_v44  ;;  %v7695_v7 = vld [vmem:[#allocation52_spill] sm:$0xff] }
 0x1e0   :  { %v5818_v35 = vmul.f32 %v5799_v56, %v5799_v56  ;;  %v2007_v45 = vsel %vm2003_vm0, %v1987_v20, %v5633_v47  ;;  %v2009_v15 = vsel %vm2005_vm8, %v5635_v3, %v2008_v50  ;;  %v2063_v55 = vadd.s32 %v2062_v28, %v2053_v63 }
 0x1e1   :  { %v1502_v24 = vxor.u32 2147483648, %v5794_v40  ;;  %v1505_v61 = vxor.u32 2147483648, %v5785_v23  ;;  %v5831_v14 = vsel %vm1511_vm5, %v1633_v42, %v5388_v27  ;;  %v5833_v29 = vsub.s32 32, %v2139_v2 }
 0x1e2   :  { %v1638_v62 = vmul.f32 -0.001358992, %v5818_v35  ;;  %v1774_v47 = vshll.u32 %v5664_v11, %v5759_v16  ;;  %v1775_v22 = vshrl.u32 %v1757_v51, %v1773_v10  ;;  %v1779_v32 = vshll.u32 %v1778_v9, 23 }
 0x1e3   :  { %v5839_v3 = vsub.s32 %v5745_v52, %v1918_v21  ;;  %v2010_v25 = vsel %vm2004_vm9, %v2007_v45, %v2009_v15  ;;  %vm2066_vm0 = vc.u32 %v5808_v53, %v5813_v48  ;;  %v2132_v27 = vand.u32 8388607, %v7470_v59 }
 0x1e4   :  { %vm1504_vm7 = vcmp.eq.s32.totalorder %v5773_v30, 2  ;;  %v2067_v5 = vadd.s32 1, %v2063_v55  ;;  %v2145_v54 = vshll.u32 %v7594_v0, %v2139_v2  ;;  %v2148_v11 = vshll.u32 %v7595_v36, %v2139_v2 }
 0x1e5   :  { %v7694_v16 = vmov 2102212464   ;;  %v2146_v52 = vshrl.u32 %v7595_v36, %v5833_v29  ;;  %v2152_v58 = vshrl.u32 %v7592_v1, %v5833_v29  ;;  %v2154_v46 = vshll.u32 %v7592_v1, %v2139_v2 }
 0x1e6   :  { %v2151_v17 = vshll.u32 %v7694_v16, %v2139_v2  ;;  %v2149_v19 = vshrl.u32 %v7694_v16, %v5833_v29  ;;  %vm1501_vm8 = vcmp.eq.s32.totalorder %v5773_v30, 0  ;;  %v1776_v34 = vor.u32 %v1775_v22, %v1774_v47 }
 0x1e7   :  { %v1780_v39 = vor.u32 4788187, %v1779_v32  ;;  %v2064_v42 = vmul.u32 %v5675_v12, %v2010_v25  ;;  %v5860_v26 = vshrl.u32 %v2137_v38, 5  ;;  %vm1920_vm9 = vcmp.lt.s32.totalorder %v5839_v3, 0 }
 0x1e8   :  { %v1921_v8 = vsub.s32 0, %v5839_v3  ;;  %v2155_v6 = vshrl.u32 %v7622_v37, %v5833_v29  ;;  %v2282_v20 = vand.u32 2139095040, %v7695_v7  ;;  %v2068_v63 = vsel %vm2066_vm0, %v2067_v5, %v2063_v55 }
 0x1e9   :  { %v2133_v28 = vor.u32 8388608, %v2132_v27  ;;  %v2142_v50 = vshll.u32 %v7562_v43, %v2139_v2  ;;  %v2143_v12 = vshrl.u32 %v7594_v0, %v5833_v29  ;;  %vm1500_vm13 = vcmp.lt.s32.totalorder %v5773_v30, 2 }
 0x1ea   :  { %v5874_v38 = vor.u32 %v2146_v52, %v2145_v54  ;;  %v5876_v51 = vor.u32 %v2149_v19, %v2148_v11  ;;  %v2153_v10 = vor.u32 %v2152_v58, %v2151_v17  ;;  %v2156_v9 = vor.u32 %v2155_v6, %v2154_v46  ;;  %v7696_v11 = vld [vmem:[#allocation48_spill] sm:$0xff] }
 0x1eb   :  { %v1639_v21 = vadd.f32 0.041655596, %v1638_v62  ;;  %v1645_v45 = vmul.f32 -0.00019511016, %v5818_v35  ;;  %vm2157_vm3 = vcmp.lt.s32.totalorder %v5860_v26, 1  ;;  %vm2160_vm15 = vcmp.lt.s32.totalorder %v5860_v26, 4 }
 0x1ec   :  { %v1922_v2 = vsel %vm1920_vm9, %v1921_v8, %v5839_v3  ;;  %v5884_v15 = vadd.s32 %v2068_v63, %v2064_v42  ;;  %vm2159_vm2 = vcmp.lt.s32.totalorder %v5860_v26, 3  ;;  %v2283_v55 = vshrl.u32 %v2282_v20, 23 }
 0x1ed   :  { %v1781_v47 = vand.u32 2147483647, %v1780_v39  ;;  %v1783_v22 = vcvt.s32.f32 %v1776_v34  ;;  %v5887_v32 = vor.u32 %v2143_v12, %v2142_v50  ;;  %v5889_v62 = vshll.u32 %v2133_v28, 8 }
 0x1ee   :  { %vm2158_vm4 = vcmp.lt.s32.totalorder %v5860_v26, 2  ;;  %v2166_v25 = vsel %vm2160_vm15, %v2153_v10, 920167782  ;;  %v2169_v27 = vsel %vm2157_vm3, %v5874_v38, %v5876_v51  ;;  %v2170_v5 = vsel %vm2160_vm15, %v2156_v9, 1326507024 }
 0x1ef   :  { %v1646_v54 = vadd.f32 0.008332121, %v1645_v45  ;;  %vm1665_vm12 = vcmp.lt.s32.totalorder %v7696_v11, 0  ;;  %v1923_v17 = vclz %v1922_v2  ;;  %v2171_v52 = vsel %vm2159_vm2, %v2153_v10, %v2170_v5 }
 0x1f0   :  { %v1506_v19 = vsel %vm1504_vm7, %v1505_v61, %v5794_v40  ;;  %v1636_v58 = vsel %vm5777_vm11, 0, %v5831_v14  ;;  %v2070_v46 = vadd.s32 536870912, %v5884_v15  ;;  %v3583_v34 = vadd.s32 4294967169, %v2283_v55 }
 0x1f1   :  { %v1784_v39 = vmul.f32 %v1783_v22, %v1781_v47  ;;  %v2165_v42 = vsel %vm2157_vm3, %v5887_v32, %v5874_v38  ;;  %v2167_v8 = vsel %vm2159_vm2, %v5876_v51, %v2166_v25  ;;  %v2172_v61 = vsel %vm2158_vm4, %v2169_v27, %v2171_v52 }
 0x1f2   :  { %v1503_v49 = vsel %vm1501_vm8, %v5785_v23, %v1502_v24  ;;  %v1640_v14 = vmul.f32 %v1639_v21, %v5818_v35  ;;  %v2174_v6 = vand.u32 65535, %v5889_v62  ;;  %v2175_v20 = vshrl.u32 %v5889_v62, 16 }
 0x1f3   :  { %v1647_v63 = vmul.f32 %v1646_v54, %v5818_v35  ;;  %v1787_v28 = vsub.s32 4, %v5612_v31  ;;  %v3575_v50 = vadd.s32 4294967294, %v1923_v17  ;;  %v2176_v12 = vand.u32 65535, %v2172_v61 }
 0x1f4   :  { %v5929_v10 = vshrl.u32 %v2070_v46, 30  ;;  %v2168_v40 = vsel %vm2158_vm4, %v2165_v42, %v2167_v8  ;;  %v2177_v9 = vshrl.u32 %v2172_v61, 16  ;;  %v2289_v45 = vadd.s32 1, %v3583_v34 }
 0x1f5   :  { %v5935_v23 = vsel %vm1500_vm13, %v1503_v49, %v1506_v19  ;;  %v7698_v24 = vand.u32 2147483647, %v7696_v11  ;;  %v1785_v2 = vxor.u32 2147483648, %v1784_v39  ;;  %v2198_v55 = vand.u32 65535, %v2168_v40 }
 0x1f6   :  { %7697 = vst [vmem:[#allocation43_spill] sm:$0xff] %v5929_v10  ;;  %v5943_v47 = vand.u32 3, %v1636_v58  ;;  %v2178_v22 = vmul.u32 %v2176_v12, %v2174_v6  ;;  %v5945_v25 = vmul.u32 %v2177_v9, %v2174_v6  ;;  %v5947_v27 = vmul.u32 %v2176_v12, %v2175_v20 }
 0x1f7   :  { %vm5939_vm10 = vcmp.le.f32.partialorder %v7698_v24, 0.7853982  ;;  %v1641_v5 = vadd.f32 -0.4999988, %v1640_v14  ;;  %v5952_v30 = vsel %vm1665_vm12, %v1787_v28, %v5612_v31  ;;  %vm3576_vm1 = vcmp.lt.s32.totalorder %v3575_v50, 0 }
 0x1f8   :  { %v2199_v54 = vshrl.u32 %v2168_v40, 16  ;;  %v1648_v17 = vadd.f32 -0.16666654, %v1647_v63  ;;  %v2072_v52 = vshll.u32 %v5929_v10, 30  ;;  %v2182_v19 = vshll.u32 %v5945_v25, 16 }
 0x1f9   :  { %vm2290_vm14 = vcmp.gt.s32.totalorder %v2289_v45, 0  ;;  %v1786_v58 = vsel %vm1665_vm12, %v1785_v2, %v1784_v39  ;;  %v2200_v46 = vmul.u32 %v2198_v55, %v2174_v6  ;;  %v5958_v42 = vmul.u32 %v2198_v55, %v2175_v20 }
 0x1fa   :  { %v2201_v34 = vmul.u32 %v2199_v54, %v2174_v6  ;;  %v5963_v8 = vsel %vm3576_vm1, 0, %v3575_v50  ;;  %v2184_v61 = vshll.u32 %v5947_v27, 16  ;;  %vm2186_vm5 = vc.u32 %v2178_v22, %v2182_v19 }
 0x1fb   :  { %v2188_v49 = vadd.s32 %v2182_v19, %v2178_v22  ;;  %v7472_v63 = vshll.u32 %v5958_v42, 16  ;;  %v2291_v28 = vsel %vm2290_vm14, %v2289_v45, 0  ;;  %v5968_v39 = vmul.f32 %v1641_v5, %v5818_v35 }
 0x1fc   :  { %v2204_v14 = vshll.u32 %v2201_v34, 16  ;;  %v5973_v6 = vsel %vm5939_vm10, %v7696_v11, %v1786_v58  ;;  %v5976_v12 = vsub.s32 %v5884_v15, %v2072_v52  ;;  %v2203_v50 = vmul.u32 %v2199_v54, %v2175_v20 }
 0x1fd   :  { %v1931_v40 = vsub.s32 4294967266, %v5963_v8  ;;  %v2181_v24 = vmul.u32 %v2177_v9, %v2175_v20  ;;  %v2187_v55 = vsel %vm2186_vm5, 1, %v7615_v41  ;;  %v7471_v22 = vand.u32 2147483647, %v7695_v7 }
 0x1fe   :  { %vm2208_vm11 = vc.u32 %v2200_v46, %v2204_v14  ;;  %v2210_v2 = vadd.s32 %v2204_v14, %v2200_v46  ;;  %v2293_v5 = vand.u32 31, %v2291_v28  ;;  %v1649_v19 = vmul.f32 %v1648_v17, %v5818_v35 }
 0x1ff   :  { %v2209_v45 = vsel %vm2208_vm11, 1, %v7615_v41  ;;  %v5985_v58 = vmul.f32 %v5973_v6, %v5973_v6  ;;  %vm2190_vm6 = vc.u32 %v2188_v49, %v2184_v61  ;;  %v1911_v15 = vadd.s32 %v5712_v13, %v5707_v57 }
 0x200   :  { %vm2212_vm0 = vc.u32 %v2210_v2, %v7472_v63  ;;  %v2075_v20 = vsub.s32 0, %v5976_v12  ;;  %v2211_v9 = vadd.s32 %v2209_v45, %v2203_v50  ;;  %v5992_v54 = vsub.s32 32, %v2293_v5 }
 0x201   :  { %v1927_v52 = vsub.s32 32, %v5963_v8  ;;  %vm2074_vm7 = vcmp.lt.s32.totalorder %v5976_v12, 0  ;;  %v2189_v35 = vadd.s32 %v2187_v55, %v2181_v24  ;;  %v2213_v17 = vsel %vm2212_vm0, 1, %v7615_v41 }
 0x202   :  { %v1932_v46 = vadd.s32 127, %v1931_v40  ;;  %v2141_v61 = vshrl.u32 %v7562_v43, %v5833_v29  ;;  %v2191_v49 = vsel %vm2190_vm6, 1, %v7615_v41  ;;  %v2286_v57 = vand.u32 8388607, %v7471_v22 }
 0x203   :  { %v2296_v13 = vshll.u32 %v7562_v43, %v2293_v5  ;;  %v2297_v14 = vshrl.u32 %v7594_v0, %v5992_v54  ;;  %v2299_v50 = vshll.u32 %v7594_v0, %v2293_v5  ;;  %v2300_v24 = vshrl.u32 %v7595_v36, %v5992_v54 }
 0x204   :  { %v2076_v40 = vsel %vm2074_vm7, %v2075_v20, %v5976_v12  ;;  %v2205_v55 = vshrl.u32 %v2201_v34, 16  ;;  %v2215_v45 = vadd.s32 %v2213_v17, %v2211_v9  ;;  %v6009_v29 = vshrl.u32 %v2291_v28, 5 }
 0x205   :  { %v2183_v59 = vshrl.u32 %v5945_v25, 16  ;;  %v2193_v31 = vadd.s32 %v2191_v49, %v2189_v35  ;;  %v2302_v22 = vshll.u32 %v7595_v36, %v2293_v5  ;;  %v2303_v63 = vshrl.u32 %v7694_v16, %v5992_v54 }
 0x206   :  { %v2162_v60 = vsel %vm2160_vm15, %v5876_v51, 2102212464  ;;  %v2185_v7 = vshrl.u32 %v5947_v27, 16  ;;  %v2305_v20 = vshll.u32 %v7694_v16, %v2293_v5  ;;  %v2306_v34 = vshrl.u32 %v7592_v1, %v5992_v54 }
 0x207   :  { %v6022_v28 = vor.u32 %v2297_v14, %v2296_v13  ;;  %v6024_v25 = vor.u32 %v2300_v24, %v2299_v50  ;;  %v2308_v9 = vshll.u32 %v7592_v1, %v2293_v5  ;;  %v2309_v35 = vshrl.u32 %v7622_v37, %v5992_v54 }
 0x208   :  { %v2207_v17 = vshrl.u32 %v5958_v42, 16  ;;  %v2216_v49 = vadd.s32 %v2215_v45, %v2205_v55  ;;  %v2307_v51 = vor.u32 %v2306_v34, %v2305_v20  ;;  %vm2311_vm8 = vcmp.lt.s32.totalorder %v6009_v29, 1 }
 0x209   :  { %v2194_v27 = vadd.s32 %v2193_v31, %v2183_v59  ;;  %v6031_v44 = vor.u32 %v2303_v63, %v2302_v22  ;;  %v2310_v10 = vor.u32 %v2309_v35, %v2308_v9  ;;  %vm2314_vm9 = vcmp.lt.s32.totalorder %v6009_v29, 4 }
 0x20a   :  { %v1928_v13 = vshll.u32 %v5839_v3, %v5963_v8  ;;  %v1929_v14 = vshrl.u32 %v1911_v15, %v1927_v52  ;;  %v1933_v5 = vshll.u32 %v1932_v46, 23  ;;  %vm2313_vm13 = vcmp.lt.s32.totalorder %v6009_v29, 3 }
 0x20b   :  { %v2287_v50 = vor.u32 8388608, %v2286_v57  ;;  %vm2312_vm15 = vcmp.lt.s32.totalorder %v6009_v29, 2  ;;  %v2319_v59 = vsel %vm2311_vm8, %v6022_v28, %v6024_v25  ;;  %v2320_v31 = vsel %vm2314_vm9, %v2307_v51, 920167782 }
 0x20c   :  { %v2077_v63 = vclz %v2076_v40  ;;  %v2161_v3 = vsel %vm2157_vm3, %v2141_v61, %v5887_v32  ;;  %v2163_v8 = vsel %vm2159_vm2, %v5874_v38, %v2162_v60  ;;  %v2217_v22 = vadd.s32 %v2216_v49, %v2207_v17 }
 0x20d   :  { %v6050_v15 = vadd.s32 %v2194_v27, %v2185_v7  ;;  %v7702_v52 = vshll.u32 %v5958_v42, 16  ;;  %v2321_v57 = vsel %vm2313_vm13, %v6031_v44, %v2320_v31  ;;  %v2324_v24 = vsel %vm2314_vm9, %v2310_v10, 1326507024 }
 0x20e   :  { %v1650_v40 = vadd.f32 1.0, %v1649_v19  ;;  %v1799_v32 = vmul.f32 -0.00019511016, %v5985_v58  ;;  %v2322_v60 = vsel %vm2312_vm15, %v2319_v59, %v2321_v57  ;;  %v2323_v7 = vsel %vm2311_vm8, %v6024_v25, %v6031_v44 }
 0x20f   :  { %7701 = vst [vmem:[#allocation72_spill] sm:$0xff] %v6050_v15  ;;  %v6054_v46 = vadd.s32 %v2210_v2, %v7702_v52  ;;  %v1930_v38 = vor.u32 %v1929_v14, %v1928_v13  ;;  %v1934_v42 = vor.u32 4788187, %v1933_v5  ;;  %v2325_v2 = vsel %vm2313_vm13, %v2307_v51, %v2324_v24 }
 0x210   :  { %v6070_v61 = vshll.u32 %v2287_v50, 8  ;;  %v3578_v55 = vadd.s32 4294967294, %v2077_v63  ;;  %v2164_v10 = vsel %vm2158_vm4, %v2161_v3, %v2163_v8  ;;  %v2221_v19 = vadd.s32 1, %v2217_v22  ;;  %v7704_v8 = vld [vmem:[#allocation49_spill] sm:$0xff] }
 0x211   :  { %7703 = vst [vmem:[#allocation79_spill] sm:$0xff] %v6054_v46  ;;  %v2353_v45 = vshrl.u32 %v2322_v60, 16  ;;  %vm2220_vm3 = vc.u32 %v6050_v15, %v6054_v46  ;;  %v2326_v20 = vsel %vm2312_vm15, %v2323_v7, %v2325_v2  ;;  %v6081_v35 = vadd.f32 1.0, %v5968_v39  ;;  %v7710_v15 = vld [vmem:[#allocation53_spill] sm:$0xff] }
 0x212   :  { %v2328_v34 = vand.u32 65535, %v6070_v61  ;;  %v2329_v9 = vshrl.u32 %v6070_v61, 16  ;;  %v6084_v17 = vmul.f32 %v1650_v40, %v5799_v56  ;;  %v1792_v26 = vmul.f32 -0.001358992, %v5985_v58 }
 0x213   :  { %v2352_v49 = vand.u32 65535, %v2322_v60  ;;  %v1800_v51 = vadd.f32 0.008332121, %v1799_v32  ;;  %v2218_v27 = vmul.u32 %v5889_v62, %v2164_v10  ;;  %v2330_v13 = vand.u32 65535, %v2326_v20 }
 0x214   :  { %v2331_v14 = vshrl.u32 %v2326_v20, 16  ;;  %v1935_v5 = vand.u32 2147483647, %v1934_v42  ;;  %v1937_v50 = vcvt.s32.f32 %v1930_v38  ;;  %v2222_v59 = vsel %vm2220_vm3, %v2221_v19, %v2217_v22 }
 0x215   :  { %v2355_v31 = vmul.u32 %v2353_v45, %v2328_v34  ;;  %vm3579_vm2 = vcmp.lt.s32.totalorder %v3578_v55, 0  ;;  %v2332_v63 = vmul.u32 %v2330_v13, %v2328_v34  ;;  %v6088_v39 = vmul.u32 %v2330_v13, %v2329_v9 }
 0x216   :  { %v2333_v3 = vmul.u32 %v2331_v14, %v2328_v34  ;;  %vm1819_vm4 = vcmp.lt.s32.totalorder %v7704_v8, 0  ;;  %v2354_v52 = vmul.u32 %v2352_v49, %v2328_v34  ;;  %v6092_v57 = vmul.u32 %v2352_v49, %v2329_v9 }
 0x217   :  { %v1793_v24 = vadd.f32 0.041655596, %v1792_v26  ;;  %v6094_v62 = vadd.s32 %v2222_v59, %v2218_v27  ;;  %v2335_v40 = vmul.u32 %v2331_v14, %v2329_v9  ;;  %v1801_v22 = vmul.f32 %v1800_v51, %v5985_v58  ;;  %v7708_v14 = vld [vmem:[#allocation45_spill] sm:$0xff]  ;;  %v7709_v59 = vld [vmem:[#allocation46_spill] sm:$0xff] }
 0x218   :  { %v2336_v32 = vshll.u32 %v2333_v3, 16  ;;  %v6097_v60 = vsel %vm3579_vm2, 0, %v3578_v55  ;;  %v2338_v7 = vshll.u32 %v6088_v39, 16  ;;  %v2358_v38 = vshll.u32 %v2355_v31, 16 }
 0x219   :  { %vm1655_vm12 = vcmp.eq.s32.totalorder %v5943_v47, 0  ;;  %vm1658_vm1 = vcmp.eq.s32.totalorder %v5943_v47, 2  ;;  %v1938_v42 = vmul.f32 %v1937_v50, %v1935_v5  ;;  %v2360_v10 = vshll.u32 %v6092_v57, 16 }
 0x21a   :  { %vm2340_vm14 = vc.u32 %v2332_v63, %v2336_v32  ;;  %v2342_v2 = vadd.s32 %v2336_v32, %v2332_v63  ;;  %v7705_v19 = vand.u32 2147483647, %v7704_v8  ;;  %v2357_v34 = vmul.u32 %v2353_v45, %v2329_v9 }
 0x21b   :  { %v2341_v55 = vsel %vm2340_vm14, 1, %v7615_v41  ;;  %vm2362_vm11 = vc.u32 %v2354_v52, %v2358_v38  ;;  %v2364_v26 = vadd.s32 %v2358_v38, %v2354_v52  ;;  %v1794_v49 = vmul.f32 %v1793_v24, %v5985_v58 }
 0x21c   :  { %vm6105_vm5 = vcmp.le.f32.partialorder %v7705_v19, 0.7853982  ;;  %v2085_v51 = vsub.s32 4294967266, %v6097_v60  ;;  %v2224_v27 = vadd.s32 536870912, %v6094_v62  ;;  %v2343_v13 = vadd.s32 %v2341_v55, %v2335_v40 }
 0x21d   :  { %vm1344_vm6 = vweird.f32 %v7708_v14  ;;  %v1802_v5 = vadd.f32 -0.16666654, %v1801_v22  ;;  %vm2344_vm0 = vc.u32 %v2342_v2, %v2338_v7  ;;  %v2363_v50 = vsel %vm2362_vm11, 1, %v7615_v41 }
 0x21e   :  { %vm2366_vm7 = vc.u32 %v2364_v26, %v2360_v10  ;;  %vm1498_vm3 = vweird.f32 %v7709_v59  ;;  %vm1654_vm2 = vcmp.lt.s32.totalorder %v5943_v47, 2  ;;  %v1656_v45 = vxor.u32 2147483648, %v6084_v17 }
 0x21f   :  { %v1939_v9 = vxor.u32 2147483648, %v1938_v42  ;;  %v2065_v63 = vadd.s32 %v5813_v48, %v5808_v53  ;;  %v2081_v52 = vsub.s32 32, %v6097_v60  ;;  %v2337_v24 = vshrl.u32 %v2333_v3, 16 }
 0x220   :  { %v2345_v40 = vsel %vm2344_vm0, 1, %v7615_v41  ;;  %v2359_v32 = vshrl.u32 %v2355_v31, 16  ;;  %v2365_v22 = vadd.s32 %v2363_v50, %v2357_v34  ;;  %v2086_v7 = vadd.s32 127, %v2085_v51 }
 0x221   :  { %v6122_v38 = vshrl.u32 %v2224_v27, 30  ;;  %v2347_v2 = vadd.s32 %v2345_v40, %v2343_v13  ;;  %v2367_v19 = vsel %vm2366_vm7, 1, %v7615_v41  ;;  %v1795_v55 = vadd.f32 -0.4999988, %v1794_v49 }
 0x222   :  { %v1803_v56 = vmul.f32 %v1802_v5, %v5985_v58  ;;  %v2369_v46 = vadd.s32 %v2367_v19, %v2365_v22  ;;  %v2436_v37 = vand.u32 2139095040, %v7710_v15  ;;  %v1940_v53 = vsel %vm1819_vm4, %v1939_v9, %v1938_v42 }
 0x223   :  { %v2082_v48 = vshll.u32 %v5976_v12, %v6097_v60  ;;  %v2295_v31 = vshrl.u32 %v7562_v43, %v5992_v54  ;;  %v2361_v3 = vshrl.u32 %v6092_v57, 16  ;;  %v2339_v34 = vshrl.u32 %v6088_v39, 16 }
 0x224   :  { %v2348_v51 = vadd.s32 %v2347_v2, %v2337_v24  ;;  %v2370_v49 = vadd.s32 %v2369_v46, %v2359_v32  ;;  %v2437_v27 = vshrl.u32 %v2436_v37, 23  ;;  %v2083_v13 = vshrl.u32 %v2065_v63, %v2081_v52 }
 0x225   :  { %v2087_v5 = vshll.u32 %v2086_v7, 23  ;;  %v2226_v50 = vshll.u32 %v6122_v38, 30  ;;  %v2316_v42 = vsel %vm2314_vm9, %v6031_v44, 2102212464  ;;  %v1657_v12 = vsel %vm1655_vm12, %v6081_v35, %v1656_v45 }
 0x226   :  { %v7711_v54 = vxor.u32 2147483648, %v6081_v35  ;;  %v1796_v37 = vmul.f32 %v1795_v55, %v5985_v58  ;;  %v3586_v46 = vadd.s32 4294967169, %v2437_v27  ;;  %v1804_v57 = vadd.f32 1.0, %v1803_v56 }
 0x227   :  { %v6151_v60 = vsel %vm6105_vm5, %v7704_v8, %v1940_v53  ;;  %v2315_v44 = vsel %vm2311_vm8, %v2295_v31, %v6022_v28  ;;  %v2371_v45 = vadd.s32 %v2370_v49, %v2361_v3  ;;  %v2317_v35 = vsel %vm2313_vm13, %v6024_v25, %v2316_v42  ;;  %v7715_v31 = vld [vmem:[#allocation50_spill] sm:$0xff] }
 0x228   :  { %v1660_v39 = vsel %vm1658_vm1, %v7711_v54, %v6084_v17  ;;  %v6159_v9 = vadd.s32 %v2348_v51, %v2339_v34  ;;  %v6161_v17 = vadd.s32 %v2364_v26, %v2360_v10  ;;  %v2443_v58 = vadd.s32 1, %v3586_v46 }
 0x229   :  { %v6166_v56 = vsel %vm1344_vm6, nan, %v5771_v33  ;;  %v2084_v63 = vor.u32 %v2083_v13, %v2082_v48  ;;  %v2088_v52 = vor.u32 4788187, %v2087_v5  ;;  %v6169_v24 = vsub.s32 %v6094_v62, %v2226_v50 }
 0x22a   :  { %7712 = vst [vmem:[#allocation44_spill] sm:$0xff] %v6166_v56  ;;  %v6174_v28 = vsel %vm1498_vm3, nan, %v5935_v23  ;;  %v6178_v25 = vsel %vm1654_vm2, %v1657_v12, %v1660_v39  ;;  %v7714_v10 = vsel %vm5939_vm10, 0, %v5952_v30  ;;  %vm2444_vm8 = vcmp.gt.s32.totalorder %v2443_v58, 0 }
 0x22b   :  { %7713 = vst [vmem:[#allocation74_spill] sm:$0xff] %v6174_v28  ;;  %v6184_v33 = vand.u32 3, %v7714_v10  ;;  %v6188_v62 = vmul.f32 %v6151_v60, %v6151_v60  ;;  %v2318_v26 = vsel %vm2312_vm15, %v2315_v44, %v2317_v35  ;;  %v2375_v23 = vadd.s32 1, %v2371_v45  ;;  %v7720_v10 = vld [vmem:[#allocation54_spill] sm:$0xff] }
 0x22c   :  { %v2445_v14 = vsel %vm2444_vm8, %v2443_v58, 0  ;;  %v1797_v59 = vadd.f32 1.0, %v1796_v37  ;;  %v1805_v47 = vmul.f32 %v1804_v57, %v5973_v6  ;;  %vm2374_vm9 = vc.u32 %v6159_v9, %v6161_v17 }
 0x22d   :  { %v2447_v21 = vand.u32 31, %v2445_v14  ;;  %v1946_v30 = vmul.f32 -0.001358992, %v6188_v62  ;;  %v2089_v40 = vand.u32 2147483647, %v2088_v52  ;;  %v2091_v32 = vcvt.s32.f32 %v2084_v63 }
 0x22e   :  { %v2229_v22 = vsub.s32 0, %v6169_v24  ;;  %vm2228_vm10 = vcmp.lt.s32.totalorder %v6169_v24, 0  ;;  %v2372_v29 = vmul.u32 %v6070_v61, %v2318_v26  ;;  %v7480_v7 = vand.u32 2147483647, %v7710_v15 }
 0x22f   :  { %v6200_v2 = vsub.s32 32, %v2447_v21  ;;  %vm1808_vm13 = vcmp.lt.s32.totalorder %v6184_v33, 2  ;;  %vm1809_vm15 = vcmp.eq.s32.totalorder %v6184_v33, 0  ;;  %vm1812_vm12 = vcmp.eq.s32.totalorder %v6184_v33, 2 }
 0x230   :  { %v2376_v6 = vsel %vm2374_vm9, %v2375_v23, %v2371_v45  ;;  %v1810_v19 = vxor.u32 2147483648, %v1805_v47  ;;  %v1813_v55 = vxor.u32 2147483648, %v1797_v59  ;;  %v1941_v53 = vsub.s32 4, %v5787_v18 }
 0x231   :  { %v1953_v48 = vmul.f32 -0.00019511016, %v6188_v62  ;;  %vm1973_vm1 = vcmp.lt.s32.totalorder %v7715_v31, 0  ;;  %v1947_v61 = vadd.f32 0.041655596, %v1946_v30  ;;  %v2092_v3 = vmul.f32 %v2091_v32, %v2089_v40 }
 0x232   :  { %v2230_v34 = vsel %vm2228_vm10, %v2229_v22, %v6169_v24  ;;  %v2459_v51 = vshll.u32 %v7694_v16, %v2447_v21  ;;  %v6210_v49 = vadd.s32 %v2376_v6, %v2372_v29  ;;  %v2440_v27 = vand.u32 8388607, %v7480_v7 }
 0x233   :  { %v6214_v13 = vshrl.u32 %v2445_v14, 5  ;;  %v2460_v5 = vshrl.u32 %v7592_v1, %v6200_v2  ;;  %vm1652_vm14 = vweird.f32 %v7689_v4  ;;  %vm1806_vm11 = vweird.f32 %v7696_v11 }
 0x234   :  { %v7716_v50 = vand.u32 2147483647, %v7715_v31  ;;  %v2450_v12 = vshll.u32 %v7562_v43, %v2447_v21  ;;  %v2451_v54 = vshrl.u32 %v7594_v0, %v6200_v2  ;;  %v2453_v39 = vshll.u32 %v7594_v0, %v2447_v21 }
 0x235   :  { %v2456_v37 = vshll.u32 %v7595_v36, %v2447_v21  ;;  %v2454_v46 = vshrl.u32 %v7595_v36, %v6200_v2  ;;  %v2457_v57 = vshrl.u32 %v7694_v16, %v6200_v2  ;;  %v2462_v44 = vshll.u32 %v7592_v1, %v2447_v21 }
 0x236   :  { %vm6222_vm6 = vcmp.le.f32.partialorder %v7716_v50, 0.7853982  ;;  %v7719_v45 = vmov 1326507024   ;;  %v1814_v58 = vsel %vm1812_vm12, %v1813_v55, %v1805_v47  ;;  %v1942_v63 = vsel %vm1819_vm4, %v1941_v53, %v5787_v18 }
 0x237   :  { %v2463_v35 = vshrl.u32 %v7719_v45, %v6200_v2  ;;  %v2461_v52 = vor.u32 %v2460_v5, %v2459_v51  ;;  %v2590_v26 = vand.u32 2139095040, %v7720_v10  ;;  %v1811_v23 = vsel %vm1809_vm15, %v1797_v59, %v1810_v19 }
 0x238   :  { %v1954_v14 = vadd.f32 0.008332121, %v1953_v48  ;;  %v2093_v30 = vxor.u32 2147483648, %v2092_v3  ;;  %v2231_v40 = vclz %v2230_v34  ;;  %v2378_v21 = vadd.s32 536870912, %v6210_v49 }
 0x239   :  { %v2441_v32 = vor.u32 8388608, %v2440_v27  ;;  %v2464_v22 = vor.u32 %v2463_v35, %v2462_v44  ;;  %vm2468_vm0 = vcmp.lt.s32.totalorder %v6214_v13, 4  ;;  %v1948_v47 = vmul.f32 %v1947_v61, %v6188_v62 }
 0x23a   :  { %v6249_v29 = vor.u32 %v2451_v54, %v2450_v12  ;;  %v6251_v18 = vor.u32 %v2454_v46, %v2453_v39  ;;  %v6253_v6 = vor.u32 %v2457_v57, %v2456_v37  ;;  %vm2465_vm4 = vcmp.lt.s32.totalorder %v6214_v13, 1 }
 0x23b   :  { %vm2467_vm7 = vcmp.lt.s32.totalorder %v6214_v13, 3  ;;  %v2474_v59 = vsel %vm2468_vm0, %v2461_v52, 920167782  ;;  %v2591_v19 = vshrl.u32 %v2590_v26, 23  ;;  %v1815_v55 = vsel %vm1808_vm13, %v1811_v23, %v1814_v58 }
 0x23c   :  { %v1944_v53 = vsel %vm6105_vm5, 0, %v1942_v63  ;;  %v1955_v48 = vmul.f32 %v1954_v14, %v6188_v62  ;;  %v3581_v61 = vadd.s32 4294967294, %v2231_v40  ;;  %v2094_v34 = vsel %vm1973_vm1, %v2093_v30, %v2092_v3  ;;  %v7721_v3 = vld [vmem:[#allocation43_spill] sm:$0xff] }
 0x23d   :  { %v6266_v51 = vshrl.u32 %v2378_v21, 30  ;;  %v2478_v27 = vsel %vm2468_vm0, %v2464_v22, 1326507024  ;;  %v6270_v5 = vshll.u32 %v2441_v32, 8  ;;  %v1949_v50 = vadd.f32 -0.4999988, %v1948_v47 }
 0x23e   :  { %vm2466_vm3 = vcmp.lt.s32.totalorder %v6214_v13, 2  ;;  %v2473_v20 = vsel %vm2465_vm4, %v6249_v29, %v6251_v18  ;;  %v2475_v33 = vsel %vm2467_vm7, %v6253_v6, %v2474_v59  ;;  %v2095_v12 = vsub.s32 4, %v7721_v3 }
 0x23f   :  { %v2477_v54 = vsel %vm2465_vm4, %v6251_v18, %v6253_v6  ;;  %v2479_v39 = vsel %vm2467_vm7, %v2461_v52, %v2478_v27  ;;  %v3589_v37 = vadd.s32 4294967169, %v2591_v19  ;;  %v6290_v46 = vsel %vm1652_vm14, nan, %v6178_v25 }
 0x240   :  { %7722 = vst [vmem:[#allocation47_spill] sm:$0xff] %v6290_v46  ;;  %v6294_v57 = vsel %vm1806_vm11, nan, %v1815_v55  ;;  %v6299_v44 = vsel %vm6222_vm6, %v7715_v31, %v2094_v34  ;;  %vm3582_vm5 = vcmp.lt.s32.totalorder %v3581_v61, 0  ;;  %v2380_v35 = vshll.u32 %v6266_v51, 30 }
 0x241   :  { %7723 = vst [vmem:[#allocation48_spill] sm:$0xff] %v6294_v57  ;;  %v2476_v58 = vsel %vm2466_vm3, %v2473_v20, %v2475_v33  ;;  %v2482_v63 = vand.u32 65535, %v6270_v5  ;;  %v2483_v4 = vshrl.u32 %v6270_v5, 16  ;;  %v1950_v25 = vmul.f32 %v1949_v50, %v6188_v62 }
 0x242   :  { %v1956_v11 = vadd.f32 -0.16666654, %v1955_v48  ;;  %v6307_v52 = vand.u32 3, %v1944_v53  ;;  %v2480_v26 = vsel %vm2466_vm3, %v2477_v54, %v2479_v39  ;;  %v6314_v23 = vsel %vm1973_vm1, %v2095_v12, %v7721_v3 }
 0x243   :  { %v2484_v14 = vand.u32 65535, %v2480_v26  ;;  %v2485_v30 = vshrl.u32 %v2480_v26, 16  ;;  %v2597_v40 = vadd.s32 1, %v3589_v37  ;;  %v6318_v21 = vmul.f32 %v6299_v44, %v6299_v44 }
 0x244   :  { %v6320_v32 = vsel %vm3582_vm5, 0, %v3581_v61  ;;  %v2506_v22 = vand.u32 65535, %v2476_v58  ;;  %v2507_v47 = vshrl.u32 %v2476_v58, 16  ;;  %v6323_v59 = vsub.s32 %v6210_v49, %v2380_v35 }
 0x245   :  { %v2486_v19 = vmul.u32 %v2484_v14, %v2482_v63  ;;  %v2487_v55 = vmul.u32 %v2485_v30, %v2482_v63  ;;  %v2488_v53 = vmul.u32 %v2484_v14, %v2483_v4  ;;  %v6325_v48 = vadd.f32 1.0, %v1950_v25 }
 0x246   :  { %v6328_v34 = vmul.f32 %v1956_v11, %v6188_v62  ;;  %v6334_v61 = vmul.f32 -0.001358992, %v6318_v21  ;;  %v2489_v50 = vmul.u32 %v2485_v30, %v2483_v4  ;;  %vm2598_vm2 = vcmp.gt.s32.totalorder %v2597_v40, 0 }
 0x247   :  { %v2490_v20 = vshll.u32 %v2487_v55, 16  ;;  %v2492_v33 = vshll.u32 %v2488_v53, 16  ;;  %v2239_v49 = vsub.s32 4294967266, %v6320_v32  ;;  %v2508_v3 = vmul.u32 %v2506_v22, %v2482_v63 }
 0x248   :  { %v2509_v12 = vmul.u32 %v2507_v47, %v2482_v63  ;;  %v2510_v54 = vmul.u32 %v2506_v22, %v2483_v4  ;;  %vm2382_vm8 = vcmp.lt.s32.totalorder %v6323_v59, 0  ;;  %v2383_v62 = vsub.s32 0, %v6323_v59 }
 0x249   :  { %vm2494_vm9 = vc.u32 %v2486_v19, %v2490_v20  ;;  %v2496_v39 = vadd.s32 %v2490_v20, %v2486_v19  ;;  %v2511_v35 = vmul.u32 %v2507_v47, %v2483_v4  ;;  %v2599_v25 = vsel %vm2598_vm2, %v2597_v40, 0 }
 0x24a   :  { %v2495_v37 = vsel %vm2494_vm9, 1, %v7615_v41  ;;  %v2512_v58 = vshll.u32 %v2509_v12, 16  ;;  %v2491_v11 = vshrl.u32 %v2487_v55, 16  ;;  %v2514_v14 = vshll.u32 %v2510_v54, 16 }
 0x24b   :  { %v2497_v26 = vadd.s32 %v2495_v37, %v2489_v50  ;;  %vm2498_vm10 = vc.u32 %v2496_v39, %v2492_v33  ;;  %v2449_v30 = vshrl.u32 %v7562_v43, %v6200_v2  ;;  %v2384_v19 = vsel %vm2382_vm8, %v2383_v62, %v6323_v59  ;;  %v7724_v37 = vld [vmem:[#allocation72_spill] sm:$0xff] }
 0x24c   :  { %v2499_v63 = vsel %vm2498_vm10, 1, %v7615_v41  ;;  %vm2516_vm13 = vc.u32 %v2508_v3, %v2512_v58  ;;  %v2518_v22 = vadd.s32 %v2512_v58, %v2508_v3  ;;  %v2601_v47 = vand.u32 31, %v2599_v25  ;;  %v7725_v58 = vld [vmem:[#allocation79_spill] sm:$0xff] }
 0x24d   :  { %v2501_v20 = vadd.s32 %v2499_v63, %v2497_v26  ;;  %v2517_v4 = vsel %vm2516_vm13, 1, %v7615_v41  ;;  %v2470_v40 = vsel %vm2468_vm0, %v6253_v6, 2102212464  ;;  %v2513_v55 = vshrl.u32 %v2509_v12, 16 }
 0x24e   :  { %v2519_v50 = vadd.s32 %v2517_v4, %v2511_v35  ;;  %vm2520_vm15 = vc.u32 %v2518_v22, %v2514_v14  ;;  %v2493_v2 = vshrl.u32 %v2488_v53, 16  ;;  %v6351_v3 = vsub.s32 32, %v2601_v47 }
 0x24f   :  { %v2502_v33 = vadd.s32 %v2501_v20, %v2491_v11  ;;  %v2521_v39 = vsel %vm2520_vm15, 1, %v7615_v41  ;;  %v2219_v62 = vadd.s32 %v7725_v58, %v7724_v37  ;;  %v2235_v26 = vsub.s32 32, %v6320_v32 }
 0x250   :  { %v2515_v63 = vshrl.u32 %v2510_v54, 16  ;;  %v2523_v7 = vadd.s32 %v2521_v39, %v2519_v50  ;;  %v2240_v27 = vadd.s32 127, %v2239_v49  ;;  %v2385_v57 = vclz %v2384_v19 }
 0x251   :  { %v2469_v6 = vsel %vm2465_vm4, %v2449_v30, %v6249_v29  ;;  %v7481_v53 = vand.u32 2147483647, %v7720_v10  ;;  %v2471_v12 = vsel %vm2467_vm7, %v6251_v18, %v2470_v40  ;;  %v6363_v35 = vadd.s32 %v2518_v22, %v2514_v14 }
 0x252   :  { %v2524_v11 = vadd.s32 %v2523_v7, %v2513_v55  ;;  %v6365_v20 = vshrl.u32 %v2599_v25, 5  ;;  %v6367_v4 = vadd.s32 %v2502_v33, %v2493_v2  ;;  %v2604_v49 = vshll.u32 %v7562_v43, %v2601_v47 }
 0x253   :  { %v2605_v54 = vshrl.u32 %v7594_v0, %v6351_v3  ;;  %v2607_v29 = vshll.u32 %v7594_v0, %v2601_v47  ;;  %v2608_v19 = vshrl.u32 %v7595_v36, %v6351_v3  ;;  %v2610_v18 = vshll.u32 %v7595_v36, %v2601_v47 }
 0x254   :  { %v2525_v30 = vadd.s32 %v2524_v11, %v2515_v63  ;;  %v2611_v7 = vshrl.u32 %v7694_v16, %v6351_v3  ;;  %v2613_v25 = vshll.u32 %v7694_v16, %v2601_v47  ;;  %v2614_v14 = vshrl.u32 %v7592_v1, %v6351_v3 }
 0x255   :  { %v2616_v22 = vshll.u32 %v7592_v1, %v2601_v47  ;;  %v2617_v40 = vshrl.u32 %v7719_v45, %v6351_v3  ;;  %v2236_v55 = vshll.u32 %v6169_v24, %v6320_v32  ;;  %v2237_v50 = vshrl.u32 %v2219_v62, %v2235_v26 }
 0x256   :  { %v3584_v2 = vadd.s32 4294967294, %v2385_v57  ;;  %v2594_v33 = vand.u32 8388607, %v7481_v53  ;;  %v2241_v39 = vshll.u32 %v2240_v27, 23  ;;  %v2472_v37 = vsel %vm2466_vm3, %v2469_v6, %v2471_v12 }
 0x257   :  { %vm2528_vm12 = vc.u32 %v6367_v4, %v6363_v35  ;;  %v2615_v58 = vor.u32 %v2614_v14, %v2613_v25  ;;  %v2529_v47 = vadd.s32 1, %v2525_v30  ;;  %v6392_v63 = vor.u32 %v2605_v54, %v2604_v49 }
 0x258   :  { %v6394_v11 = vor.u32 %v2608_v19, %v2607_v29  ;;  %v6396_v46 = vor.u32 %v2611_v7, %v2610_v18  ;;  %v2618_v24 = vor.u32 %v2617_v40, %v2616_v22  ;;  %vm2619_vm1 = vcmp.lt.s32.totalorder %v6365_v20, 1 }
 0x259   :  { %vm2621_vm14 = vcmp.lt.s32.totalorder %v6365_v20, 3  ;;  %vm2622_vm11 = vcmp.lt.s32.totalorder %v6365_v20, 4  ;;  %v1958_v13 = vadd.f32 1.0, %v6328_v34  ;;  %v2107_v57 = vmul.f32 -0.00019511016, %v6318_v21 }
 0x25a   :  { %vm3585_vm0 = vcmp.lt.s32.totalorder %v3584_v2, 0  ;;  %v2595_v32 = vor.u32 8388608, %v2594_v33  ;;  %v2101_v27 = vadd.f32 0.041655596, %v6334_v61  ;;  %v2238_v62 = vor.u32 %v2237_v50, %v2236_v55 }
 0x25b   :  { %v2526_v26 = vmul.u32 %v6270_v5, %v2472_v37  ;;  %v2628_v6 = vsel %vm2622_vm11, %v2615_v58, 920167782  ;;  %v2530_v12 = vsel %vm2528_vm12, %v2529_v47, %v2525_v30  ;;  %vm2620_vm4 = vcmp.lt.s32.totalorder %v6365_v20, 2 }
 0x25c   :  { %v2627_v34 = vsel %vm2619_vm1, %v6392_v63, %v6394_v11  ;;  %v2629_v61 = vsel %vm2621_vm14, %v6396_v46, %v2628_v6  ;;  %v2242_v49 = vor.u32 4788187, %v2241_v39  ;;  %v6418_v5 = vsel %vm3585_vm0, 0, %v3584_v2 }
 0x25d   :  { %v2631_v54 = vsel %vm2619_vm1, %v6394_v11, %v6396_v46  ;;  %v2632_v29 = vsel %vm2622_vm11, %v2618_v24, 1326507024  ;;  %v6427_v30 = vmul.f32 %v1958_v13, %v6151_v60  ;;  %v2108_v19 = vadd.f32 0.008332121, %v2107_v57 }
 0x25e   :  { %v2633_v18 = vsel %vm2621_vm14, %v2615_v58, %v2632_v29  ;;  %v6431_v7 = vshll.u32 %v2595_v32, 8  ;;  %v2102_v25 = vmul.f32 %v2101_v27, %v6318_v21  ;;  %v6434_v14 = vadd.s32 %v2530_v12, %v2526_v26 }
 0x25f   :  { %v2630_v22 = vsel %vm2620_vm4, %v2627_v34, %v2629_v61  ;;  %v2634_v40 = vsel %vm2620_vm4, %v2631_v54, %v2633_v18  ;;  %v2245_v55 = vcvt.s32.f32 %v2238_v62  ;;  %v2393_v60 = vsub.s32 4294967266, %v6418_v5  ;;  %v7727_v54 = vld [vmem:[#allocation51_spill] sm:$0xff] }
 0x260   :  { %v2636_v50 = vand.u32 65535, %v6431_v7  ;;  %v2637_v2 = vshrl.u32 %v6431_v7, 16  ;;  %v2243_v33 = vand.u32 2147483647, %v2242_v49  ;;  %v2638_v39 = vand.u32 65535, %v2634_v40 }
 0x261   :  { %v2639_v37 = vshrl.u32 %v2634_v40, 16  ;;  %v2660_v58 = vand.u32 65535, %v2630_v22  ;;  %v1967_v47 = vxor.u32 2147483648, %v6325_v48  ;;  %v2373_v24 = vadd.s32 %v6161_v17, %v6159_v9 }
 0x262   :  { %v2389_v13 = vsub.s32 32, %v6418_v5  ;;  %v2661_v57 = vshrl.u32 %v2630_v22, 16  ;;  %v2103_v32 = vadd.f32 -0.4999988, %v2102_v25  ;;  %v2109_v27 = vmul.f32 %v2108_v19, %v6318_v21 }
 0x263   :  { %v7726_v62 = vsel %vm6222_vm6, 0, %v6314_v23  ;;  %v2532_v6 = vadd.s32 536870912, %v6434_v14  ;;  %v2394_v12 = vadd.s32 127, %v2393_v60  ;;  %v2640_v34 = vmul.u32 %v2638_v39, %v2636_v50 }
 0x264   :  { %v6452_v26 = vand.u32 3, %v7726_v62  ;;  %v2641_v61 = vmul.u32 %v2639_v37, %v2636_v50  ;;  %v2642_v49 = vmul.u32 %v2638_v39, %v2637_v2  ;;  %vm2127_vm7 = vcmp.lt.s32.totalorder %v7727_v54, 0 }
 0x265   :  { %v2246_v9 = vmul.f32 %v2245_v55, %v2243_v33  ;;  %v2662_v17 = vmul.u32 %v2660_v58, %v2636_v50  ;;  %v2663_v29 = vmul.u32 %v2661_v57, %v2636_v50  ;;  %v2664_v18 = vmul.u32 %v2660_v58, %v2637_v2 }
 0x266   :  { %v2390_v19 = vshll.u32 %v6323_v59, %v6418_v5  ;;  %v2391_v42 = vshrl.u32 %v2373_v24, %v2389_v13  ;;  %v2643_v25 = vmul.u32 %v2639_v37, %v2637_v2  ;;  %v2644_v23 = vshll.u32 %v2641_v61, 16 }
 0x267   :  { %v6458_v22 = vshrl.u32 %v2532_v6, 30  ;;  %v2646_v40 = vshll.u32 %v2642_v49, 16  ;;  %v2666_v62 = vshll.u32 %v2663_v29, 16  ;;  %v2668_v60 = vshll.u32 %v2664_v18, 16 }
 0x268   :  { %v7728_v53 = vand.u32 2147483647, %v7727_v54  ;;  %v2395_v55 = vshll.u32 %v2394_v12, 23  ;;  %v2603_v50 = vshrl.u32 %v7562_v43, %v6351_v3  ;;  %vm2648_vm3 = vc.u32 %v2640_v34, %v2644_v23 }
 0x269   :  { %v2650_v59 = vadd.s32 %v2644_v23, %v2640_v34  ;;  %v2649_v5 = vsel %vm2648_vm3, 1, %v7615_v41  ;;  %v2665_v33 = vmul.u32 %v2661_v57, %v2637_v2  ;;  %vm2670_vm5 = vc.u32 %v2662_v17, %v2666_v62 }
 0x26a   :  { %vm6462_vm6 = vcmp.le.f32.partialorder %v7728_v53, 0.7853982  ;;  %v2672_v37 = vadd.s32 %v2666_v62, %v2662_v17  ;;  %v2104_v58 = vmul.f32 %v2103_v32, %v6318_v21  ;;  %v2110_v24 = vadd.f32 -0.16666654, %v2109_v27 }
 0x26b   :  { %v2624_v53 = vsel %vm2622_vm11, %v6396_v46, 2102212464  ;;  %v2651_v13 = vadd.s32 %v2649_v5, %v2643_v25  ;;  %vm1963_vm2 = vcmp.eq.s32.totalorder %v6307_v52, 0  ;;  %vm1966_vm8 = vcmp.eq.s32.totalorder %v6307_v52, 2 }
 0x26c   :  { %v2534_v3 = vshll.u32 %v6458_v22, 30  ;;  %vm2652_vm9 = vc.u32 %v2650_v59, %v2646_v40  ;;  %v2671_v6 = vsel %vm2670_vm5, 1, %v7615_v41  ;;  %vm2674_vm10 = vc.u32 %v2672_v37, %v2668_v60 }
 0x26d   :  { %v2247_v2 = vxor.u32 2147483648, %v2246_v9  ;;  %v2392_v57 = vor.u32 %v2391_v42, %v2390_v19  ;;  %v2396_v12 = vor.u32 4788187, %v2395_v55  ;;  %v2645_v32 = vshrl.u32 %v2641_v61, 16  ;;  %v7731_v55 = vld [vmem:[#allocation55_spill] sm:$0xff] }
 0x26e   :  { %v2623_v27 = vsel %vm2619_vm1, %v2603_v50, %v6392_v63  ;;  %v2653_v46 = vsel %vm2652_vm9, 1, %v7615_v41  ;;  %v2667_v34 = vshrl.u32 %v2663_v29, 16  ;;  %v2673_v17 = vadd.s32 %v2671_v6, %v2665_v33 }
 0x26f   :  { %v2625_v25 = vsel %vm2621_vm14, %v6394_v11, %v2624_v53  ;;  %v2647_v23 = vshrl.u32 %v2642_v49, 16  ;;  %v2655_v40 = vadd.s32 %v2653_v46, %v2651_v13  ;;  %v2675_v62 = vsel %vm2674_vm10, 1, %v7615_v41 }
 0x270   :  { %v6486_v19 = vsub.s32 %v6434_v14, %v2534_v3  ;;  %v2669_v61 = vshrl.u32 %v2664_v18, 16  ;;  %v2677_v42 = vadd.s32 %v2675_v62, %v2673_v17  ;;  %v2744_v59 = vand.u32 2139095040, %v7731_v55 }
 0x271   :  { %v2111_v63 = vmul.f32 %v2110_v24, %v6318_v21  ;;  %v2248_v29 = vsel %vm2127_vm7, %v2247_v2, %v2246_v9  ;;  %v2656_v50 = vadd.s32 %v2655_v40, %v2645_v32  ;;  %v6492_v5 = vadd.s32 %v2672_v37, %v2668_v60 }
 0x272   :  { %vm1960_vm13 = vweird.f32 %v7704_v8  ;;  %v1964_v11 = vxor.u32 2147483648, %v6427_v30  ;;  %v2626_v14 = vsel %vm2620_vm4, %v2623_v27, %v2625_v25  ;;  %v2678_v49 = vadd.s32 %v2677_v42, %v2667_v34 }
 0x273   :  { %v2745_v18 = vshrl.u32 %v2744_v59, 23  ;;  %v6498_v33 = vadd.f32 1.0, %v2104_v58  ;;  %v2397_v53 = vand.u32 2147483647, %v2396_v12  ;;  %v2399_v13 = vcvt.s32.f32 %v2392_v57 }
 0x274   :  { %v6500_v21 = vadd.s32 %v2656_v50, %v2647_v23  ;;  %v6505_v9 = vsel %vm6462_vm6, %v7727_v54, %v2248_v29  ;;  %v2537_v60 = vsub.s32 0, %v6486_v19  ;;  %v2679_v37 = vadd.s32 %v2678_v49, %v2669_v61 }
 0x275   :  { %v3592_v24 = vadd.s32 4294967169, %v2745_v18  ;;  %v2112_v3 = vadd.f32 1.0, %v2111_v63  ;;  %vm2536_vm15 = vcmp.lt.s32.totalorder %v6486_v19, 0  ;;  %v2680_v20 = vmul.u32 %v6431_v7, %v2626_v14 }
 0x276   :  { %vm2682_vm12 = vc.u32 %v6500_v21, %v6492_v5  ;;  %vm1962_vm1 = vcmp.lt.s32.totalorder %v6307_v52, 2  ;;  %v2249_v58 = vsub.s32 4, %v6122_v38  ;;  %v2683_v6 = vadd.s32 1, %v2679_v37 }
 0x277   :  { %v2751_v2 = vadd.s32 1, %v3592_v24  ;;  %v1965_v57 = vsel %vm1963_vm2, %v6325_v48, %v1964_v11  ;;  %v1968_v12 = vsel %vm1966_vm8, %v1967_v47, %v6427_v30  ;;  %v6524_v7 = vmul.f32 %v6505_v9, %v6505_v9 }
 0x278   :  { %v2400_v32 = vmul.f32 %v2399_v13, %v2397_v53  ;;  %vm2120_vm14 = vcmp.eq.s32.totalorder %v6452_v26, 2  ;;  %v2538_v27 = vsel %vm2536_vm15, %v2537_v60, %v6486_v19  ;;  %v2684_v46 = vsel %vm2682_vm12, %v2683_v6, %v2679_v37 }
 0x279   :  { %vm2752_vm11 = vcmp.gt.s32.totalorder %v2751_v2, 0  ;;  %v2113_v34 = vmul.f32 %v2112_v3, %v6299_v44  ;;  %v2121_v17 = vxor.u32 2147483648, %v6498_v33  ;;  %v2685_v25 = vadd.s32 %v2684_v46, %v2680_v20  ;;  %v7732_v44 = vld [vmem:[#allocation52_spill] sm:$0xff] }
 0x27a   :  { %v2753_v48 = vsel %vm2752_vm11, %v2751_v2, 0  ;;  %v1969_v30 = vsel %vm1962_vm1, %v1965_v57, %v1968_v12  ;;  %v2250_v47 = vsel %vm2127_vm7, %v2249_v58, %v6122_v38  ;;  %v2254_v23 = vmul.f32 -0.001358992, %v6524_v7 }
 0x27b   :  { %v2755_v40 = vand.u32 31, %v2753_v48  ;;  %v2261_v62 = vmul.f32 -0.00019511016, %v6524_v7  ;;  %v2401_v61 = vxor.u32 2147483648, %v2400_v32  ;;  %v2539_v42 = vclz %v2538_v27 }
 0x27c   :  { %v2686_v59 = vadd.s32 536870912, %v2685_v25  ;;  %vm2117_vm0 = vcmp.eq.s32.totalorder %v6452_v26, 0  ;;  %vm2281_vm4 = vcmp.lt.s32.totalorder %v7732_v44, 0  ;;  %v7482_v63 = vand.u32 2147483647, %v7731_v55 }
 0x27d   :  { %v6540_v52 = vsub.s32 32, %v2755_v40  ;;  %v6544_v29 = vsel %vm1960_vm13, nan, %v1969_v30  ;;  %v2118_v38 = vxor.u32 2147483648, %v2113_v34  ;;  %v6548_v50 = vsel %vm2120_vm14, %v2121_v17, %v2113_v34 }
 0x27e   :  { %7733 = vst [vmem:[#allocation49_spill] sm:$0xff] %v6544_v29  ;;  %v7734_v11 = vand.u32 2147483647, %v7732_v44  ;;  %v2252_v49 = vsel %vm6462_vm6, 0, %v2250_v47  ;;  %v2255_v18 = vadd.f32 0.041655596, %v2254_v23  ;;  %v2402_v60 = vsel %vm2281_vm4, %v2401_v61, %v2400_v32 }
 0x27f   :  { %v2403_v53 = vsub.s32 4, %v6266_v51  ;;  %v6559_v8 = vshrl.u32 %v2686_v59, 30  ;;  %v2262_v13 = vadd.f32 0.008332121, %v2261_v62  ;;  %v3587_v37 = vadd.s32 4294967294, %v2539_v42  ;;  %v7737_v47 = vld [vmem:[#allocation56_spill] sm:$0xff] }
 0x280   :  { %vm6552_vm7 = vcmp.le.f32.partialorder %v7734_v11, 0.7853982  ;;  %v2767_v24 = vshll.u32 %v7694_v16, %v2755_v40  ;;  %v2748_v3 = vand.u32 8388607, %v7482_v63  ;;  %v6566_v20 = vshrl.u32 %v2753_v48, 5 }
 0x281   :  { %v2758_v39 = vshll.u32 %v7562_v43, %v2755_v40  ;;  %v2768_v58 = vshrl.u32 %v7592_v1, %v6540_v52  ;;  %v2759_v6 = vshrl.u32 %v7594_v0, %v6540_v52  ;;  %v2761_v2 = vshll.u32 %v7594_v0, %v2755_v40 }
 0x282   :  { %v2762_v57 = vshrl.u32 %v7595_v36, %v6540_v52  ;;  %v2764_v12 = vshll.u32 %v7595_v36, %v2755_v40  ;;  %v2688_v32 = vshll.u32 %v6559_v8, 30  ;;  %v2765_v27 = vshrl.u32 %v7694_v16, %v6540_v52 }
 0x283   :  { %v2770_v46 = vshll.u32 %v7592_v1, %v2755_v40  ;;  %v2771_v34 = vshrl.u32 %v7719_v45, %v6540_v52  ;;  %v6586_v17 = vsel %vm2117_vm0, %v6498_v33, %v2118_v38  ;;  %v6588_v48 = vand.u32 3, %v2252_v49 }
 0x284   :  { %v2769_v30 = vor.u32 %v2768_v58, %v2767_v24  ;;  %v2898_v23 = vand.u32 2139095040, %v7737_v47  ;;  %v2256_v62 = vmul.f32 %v2255_v18, %v6524_v7  ;;  %v2263_v61 = vmul.f32 %v2262_v13, %v6524_v7 }
 0x285   :  { %v6596_v40 = vsel %vm2281_vm4, %v2403_v53, %v6266_v51  ;;  %v6601_v42 = vsel %vm6552_vm7, %v7732_v44, %v2402_v60  ;;  %vm3588_vm6 = vcmp.lt.s32.totalorder %v3587_v37, 0  ;;  %v2749_v33 = vor.u32 8388608, %v2748_v3 }
 0x286   :  { %v2772_v59 = vor.u32 %v2771_v34, %v2770_v46  ;;  %vm2776_vm3 = vcmp.lt.s32.totalorder %v6566_v20, 4  ;;  %v6604_v38 = vsub.s32 %v2685_v25, %v2688_v32  ;;  %v2760_v11 = vor.u32 %v2759_v6, %v2758_v39 }
 0x287   :  { %v2763_v49 = vor.u32 %v2762_v57, %v2761_v2  ;;  %v2766_v18 = vor.u32 %v2765_v27, %v2764_v12  ;;  %vm2773_vm5 = vcmp.lt.s32.totalorder %v6566_v20, 1  ;;  %vm2775_vm2 = vcmp.lt.s32.totalorder %v6566_v20, 3 }
 0x288   :  { %v2782_v51 = vsel %vm2776_vm3, %v2769_v30, 920167782  ;;  %v2899_v53 = vshrl.u32 %v2898_v23, 23  ;;  %v2257_v13 = vadd.f32 -0.4999988, %v2256_v62  ;;  %v6612_v24 = vmul.f32 %v6601_v42, %v6601_v42 }
 0x289   :  { %v2264_v60 = vadd.f32 -0.16666654, %v2263_v61  ;;  %v2542_v3 = vsel %vm3588_vm6, 0, %v3587_v37  ;;  %v2527_v25 = vadd.s32 %v6363_v35, %v6367_v4  ;;  %v2786_v58 = vsel %vm2776_vm3, %v2772_v59, 1326507024 }
 0x28a   :  { %v2543_v39 = vsub.s32 32, %v2542_v3  ;;  %v6618_v6 = vshll.u32 %v2749_v33, 8  ;;  %v2691_v2 = vsub.s32 0, %v6604_v38  ;;  %vm2774_vm8 = vcmp.lt.s32.totalorder %v6566_v20, 2 }
 0x28b   :  { %v2781_v57 = vsel %vm2773_vm5, %v2760_v11, %v2763_v49  ;;  %v2783_v12 = vsel %vm2775_vm2, %v2766_v18, %v2782_v51  ;;  %vm2690_vm9 = vcmp.lt.s32.totalorder %v6604_v38, 0  ;;  %v2785_v35 = vsel %vm2773_vm5, %v2763_v49, %v2766_v18 }
 0x28c   :  { %v2787_v4 = vsel %vm2775_vm2, %v2769_v30, %v2786_v58  ;;  %v3595_v37 = vadd.s32 4294967169, %v2899_v53  ;;  %v6632_v32 = vmul.f32 %v2257_v13, %v6524_v7  ;;  %v2408_v46 = vmul.f32 -0.001358992, %v6612_v24 }
 0x28d   :  { %v2415_v34 = vmul.f32 -0.00019511016, %v6612_v24  ;;  %v2544_v23 = vshll.u32 %v6486_v19, %v2542_v3  ;;  %v2784_v62 = vsel %vm2774_vm8, %v2781_v57, %v2783_v12  ;;  %v2790_v61 = vand.u32 65535, %v6618_v6 }
 0x28e   :  { %v2791_v30 = vshrl.u32 %v6618_v6, 16  ;;  %v2545_v33 = vshrl.u32 %v2527_v25, %v2543_v39  ;;  %v2547_v59 = vsub.s32 4294967266, %v2542_v3  ;;  %v2692_v51 = vsel %vm2690_vm9, %v2691_v2, %v6604_v38 }
 0x28f   :  { %v2788_v53 = vsel %vm2774_vm8, %v2785_v35, %v2787_v4  ;;  %v6648_v13 = vmul.f32 %v2264_v60, %v6524_v7  ;;  %v2905_v19 = vadd.s32 1, %v3595_v37  ;;  %v2409_v27 = vadd.f32 0.041655596, %v2408_v46 }
 0x290   :  { %v2792_v58 = vand.u32 65535, %v2788_v53  ;;  %v2793_v63 = vshrl.u32 %v2788_v53, 16  ;;  %v2757_v57 = vshrl.u32 %v7562_v43, %v6540_v52  ;;  %v2814_v12 = vand.u32 65535, %v2784_v62 }
 0x291   :  { %v2815_v29 = vshrl.u32 %v2784_v62, 16  ;;  %v2693_v28 = vclz %v2692_v51  ;;  %v6652_v2 = vadd.f32 0.008332121, %v2415_v34  ;;  %v6654_v56 = vor.u32 %v2545_v33, %v2544_v23 }
 0x292   :  { %v2794_v25 = vmul.u32 %v2792_v58, %v2790_v61  ;;  %v2795_v3 = vmul.u32 %v2793_v63, %v2790_v61  ;;  %v2796_v39 = vmul.u32 %v2792_v58, %v2791_v30  ;;  %v2548_v35 = vadd.s32 127, %v2547_v59 }
 0x293   :  { %v2778_v7 = vsel %vm2776_vm3, %v2766_v18, 2102212464  ;;  %v2797_v60 = vmul.u32 %v2793_v63, %v2791_v30  ;;  %vm2906_vm10 = vcmp.gt.s32.totalorder %v2905_v19, 0  ;;  %v2777_v52 = vsel %vm2773_vm5, %v2757_v57, %v2760_v11 }
 0x294   :  { %v2798_v4 = vshll.u32 %v2795_v3, 16  ;;  %v2800_v37 = vshll.u32 %v2796_v39, 16  ;;  %v2816_v46 = vmul.u32 %v2814_v12, %v2790_v61  ;;  %v2817_v62 = vmul.u32 %v2815_v29, %v2790_v61 }
 0x295   :  { %v2818_v51 = vmul.u32 %v2814_v12, %v2791_v30  ;;  %v3590_v53 = vadd.s32 4294967294, %v2693_v28  ;;  %v2779_v34 = vsel %vm2775_vm2, %v2763_v49, %v2778_v7  ;;  %v2819_v59 = vmul.u32 %v2815_v29, %v2791_v30 }
 0x296   :  { %vm2802_vm13 = vc.u32 %v2794_v25, %v2798_v4  ;;  %v2804_v23 = vadd.s32 %v2798_v4, %v2794_v25  ;;  %v2820_v18 = vshll.u32 %v2817_v62, 16  ;;  %v2907_v63 = vsel %vm2906_vm10, %v2905_v19, 0 }
 0x297   :  { %v2803_v33 = vsel %vm2802_vm13, 1, %v7615_v41  ;;  %v2799_v58 = vshrl.u32 %v2795_v3, 16  ;;  %v2822_v54 = vshll.u32 %v2818_v51, 16  ;;  %v2549_v31 = vshll.u32 %v2548_v35, 23 }
 0x298   :  { %v2805_v44 = vadd.s32 %v2803_v33, %v2797_v60  ;;  %vm2806_vm15 = vc.u32 %v2804_v23, %v2800_v37  ;;  %vm2824_vm12 = vc.u32 %v2816_v46, %v2820_v18  ;;  %v2826_v61 = vadd.s32 %v2820_v18, %v2816_v46 }
 0x299   :  { %v2807_v11 = vsel %vm2806_vm15, 1, %v7615_v41  ;;  %v2801_v28 = vshrl.u32 %v2796_v39, 16  ;;  %v2825_v49 = vsel %vm2824_vm12, 1, %v7615_v41  ;;  %v2909_v12 = vand.u32 31, %v2907_v63 }
 0x29a   :  { %v2809_v57 = vadd.s32 %v2807_v11, %v2805_v44  ;;  %v2780_v25 = vsel %vm2774_vm8, %v2777_v52, %v2779_v34  ;;  %v2821_v29 = vshrl.u32 %v2817_v62, 16  ;;  %v2827_v30 = vadd.s32 %v2825_v49, %v2819_v59 }
 0x29b   :  { %vm2828_vm1 = vc.u32 %v2826_v61, %v2822_v54  ;;  %vm3591_vm14 = vcmp.lt.s32.totalorder %v3590_v53, 0  ;;  %v6668_v35 = vsub.s32 32, %v2909_v12  ;;  %v2410_v7 = vmul.f32 %v2409_v27, %v6612_v24 }
 0x29c   :  { %v2810_v19 = vadd.s32 %v2809_v57, %v2799_v58  ;;  %v2829_v3 = vsel %vm2828_vm1, 1, %v7615_v41  ;;  %v2823_v60 = vshrl.u32 %v2818_v51, 16  ;;  %v6671_v39 = vadd.s32 %v2826_v61, %v2822_v54 }
 0x29d   :  { %v2831_v44 = vadd.s32 %v2829_v3, %v2827_v30  ;;  %v2550_v4 = vor.u32 4788187, %v2549_v31  ;;  %v2553_v37 = vcvt.s32.f32 %v6654_v56  ;;  %v2895_v52 = vand.u32 2147483647, %v7737_v47 }
 0x29e   :  { %v6674_v20 = vadd.s32 %v2810_v19, %v2801_v28  ;;  %v2696_v46 = vsel %vm3591_vm14, 0, %v3590_v53  ;;  %v2834_v34 = vmul.u32 %v6618_v6, %v2780_v25  ;;  %v6678_v23 = vshrl.u32 %v2907_v63, 5 }
 0x29f   :  { %v2832_v62 = vadd.s32 %v2831_v44, %v2821_v29  ;;  %v2912_v33 = vshll.u32 %v7562_v43, %v2909_v12  ;;  %v2913_v54 = vshrl.u32 %v7594_v0, %v6668_v35  ;;  %v2915_v27 = vshll.u32 %v7594_v0, %v2909_v12 }
 0x2a0   :  { %v2916_v56 = vshrl.u32 %v7595_v36, %v6668_v35  ;;  %vm2836_vm11 = vc.u32 %v6674_v20, %v6671_v39  ;;  %v2918_v51 = vshll.u32 %v7595_v36, %v2909_v12  ;;  %v2919_v6 = vshrl.u32 %v7694_v16, %v6668_v35 }
 0x2a1   :  { %v2833_v31 = vadd.s32 %v2832_v62, %v2823_v60  ;;  %v2921_v53 = vshll.u32 %v7694_v16, %v2909_v12  ;;  %v2922_v59 = vshrl.u32 %v7592_v1, %v6668_v35  ;;  %v2924_v18 = vshll.u32 %v7592_v1, %v2909_v12 }
 0x2a2   :  { %v2925_v63 = vshrl.u32 %v7719_v45, %v6668_v35  ;;  %v2551_v58 = vand.u32 2147483647, %v2550_v4  ;;  %v2681_v11 = vadd.s32 %v6492_v5, %v6500_v21  ;;  %v2902_v28 = vand.u32 8388607, %v2895_v52 }
 0x2a3   :  { %v2837_v61 = vadd.s32 1, %v2833_v31  ;;  %v2697_v57 = vsub.s32 32, %v2696_v46  ;;  %v2701_v49 = vsub.s32 4294967266, %v2696_v46  ;;  %v6701_v25 = vor.u32 %v2913_v54, %v2912_v33 }
 0x2a4   :  { %v2923_v29 = vor.u32 %v2922_v59, %v2921_v53  ;;  %v6703_v19 = vor.u32 %v2916_v56, %v2915_v27  ;;  %v6705_v12 = vor.u32 %v2919_v6, %v2918_v51  ;;  %v2926_v3 = vor.u32 %v2925_v63, %v2924_v18 }
 0x2a5   :  { %v2838_v30 = vsel %vm2836_vm11, %v2837_v61, %v2833_v31  ;;  %vm2927_vm0 = vcmp.lt.s32.totalorder %v6678_v23, 1  ;;  %vm2929_vm4 = vcmp.lt.s32.totalorder %v6678_v23, 3  ;;  %vm2930_vm6 = vcmp.lt.s32.totalorder %v6678_v23, 4 }
 0x2a6   :  { %v2839_v60 = vadd.s32 %v2838_v30, %v2834_v34  ;;  %v6711_v5 = vadd.f32 1.0, %v6632_v32  ;;  %v2417_v21 = vmul.f32 %v6652_v2, %v6612_v24  ;;  %v2554_v44 = vmul.f32 %v2553_v37, %v2551_v58 }
 0x2a7   :  { %v2903_v4 = vor.u32 8388608, %v2902_v28  ;;  %v2698_v62 = vshll.u32 %v6604_v38, %v2696_v46  ;;  %v2702_v33 = vadd.s32 127, %v2701_v49  ;;  %v2936_v34 = vsel %vm2930_vm6, %v2923_v29, 920167782 }
 0x2a8   :  { %v2840_v54 = vadd.s32 536870912, %v2839_v60  ;;  %v2699_v27 = vshrl.u32 %v2681_v11, %v2697_v57  ;;  %vm2928_vm3 = vcmp.lt.s32.totalorder %v6678_v23, 2  ;;  %v2935_v32 = vsel %vm2927_vm0, %v6701_v25, %v6703_v19 }
 0x2a9   :  { %v2937_v2 = vsel %vm2929_vm4, %v6705_v12, %v2936_v34  ;;  %v2411_v37 = vadd.f32 -0.4999988, %v2410_v7  ;;  %v2939_v38 = vsel %vm2927_vm0, %v6703_v19, %v6705_v12  ;;  %v2940_v46 = vsel %vm2930_vm6, %v2926_v3, 1326507024 }
 0x2aa   :  { %v6726_v56 = vshrl.u32 %v2840_v54, 30  ;;  %v2418_v31 = vadd.f32 -0.16666654, %v2417_v21  ;;  %v2555_v51 = vxor.u32 2147483648, %v2554_v44  ;;  %v2941_v6 = vsel %vm2929_vm4, %v2923_v29, %v2940_v46 }
 0x2ab   :  { %v6736_v53 = vshll.u32 %v2903_v4, 8  ;;  %v2703_v59 = vshll.u32 %v2702_v33, 23  ;;  %v2938_v18 = vsel %vm2928_vm3, %v2935_v32, %v2937_v2  ;;  %v2942_v63 = vsel %vm2928_vm3, %v2939_v38, %v2941_v6 }
 0x2ac   :  { %v2842_v7 = vshll.u32 %v6726_v56, 30  ;;  %vm2435_vm5 = vcmp.lt.s32.totalorder %v7710_v15, 0  ;;  %v6744_v58 = vor.u32 %v2699_v27, %v2698_v62  ;;  %v2946_v57 = vand.u32 65535, %v2942_v63 }
 0x2ad   :  { %v2944_v11 = vand.u32 65535, %v6736_v53  ;;  %v2945_v61 = vshrl.u32 %v6736_v53, 16  ;;  %v2947_v49 = vshrl.u32 %v2942_v63, 16  ;;  %v2968_v29 = vand.u32 65535, %v2938_v18 }
 0x2ae   :  { %v6748_v28 = vsub.s32 %v2839_v60, %v2842_v7  ;;  %v6751_v30 = vadd.f32 1.0, %v6648_v13  ;;  %v6754_v3 = vmul.f32 %v2411_v37, %v6612_v24  ;;  %v6757_v21 = vmul.f32 %v2418_v31, %v6612_v24 }
 0x2af   :  { %v2969_v4 = vshrl.u32 %v2938_v18, 16  ;;  %v6761_v62 = vsel %vm2435_vm5, %v2555_v51, %v2554_v44  ;;  %v2704_v33 = vor.u32 4788187, %v2703_v59  ;;  %v2707_v54 = vcvt.s32.f32 %v6744_v58 }
 0x2b0   :  { %vm2844_vm2 = vcmp.lt.s32.totalorder %v6748_v28, 0  ;;  %v2845_v60 = vsub.s32 0, %v6748_v28  ;;  %v2948_v13 = vmul.u32 %v2946_v57, %v2944_v11  ;;  %v2949_v34 = vmul.u32 %v2947_v49, %v2944_v11 }
 0x2b1   :  { %v2950_v27 = vmul.u32 %v2946_v57, %v2945_v61  ;;  %v2970_v2 = vmul.u32 %v2968_v29, %v2944_v11  ;;  %v2971_v24 = vmul.u32 %v2969_v4, %v2944_v11  ;;  %v2972_v37 = vmul.u32 %v2968_v29, %v2945_v61 }
 0x2b2   :  { %v2846_v32 = vsel %vm2844_vm2, %v2845_v60, %v6748_v28  ;;  %v2911_v44 = vshrl.u32 %v7562_v43, %v6668_v35  ;;  %v2951_v46 = vmul.u32 %v2947_v49, %v2945_v61  ;;  %v2952_v31 = vshll.u32 %v2949_v34, 16 }
 0x2b3   :  { %v2847_v38 = vclz %v2846_v32  ;;  %v7738_v51 = vand.u32 2147483647, %v7710_v15  ;;  %v2705_v59 = vand.u32 2147483647, %v2704_v33  ;;  %v2954_v7 = vshll.u32 %v2950_v27, 16 }
 0x2b4   :  { %v2974_v18 = vshll.u32 %v2971_v24, 16  ;;  %v2976_v63 = vshll.u32 %v2972_v37, 16  ;;  %v2932_v11 = vsel %vm2930_vm6, %v6705_v12, 2102212464  ;;  %vm2956_vm9 = vc.u32 %v2948_v13, %v2952_v31 }
 0x2b5   :  { %vm6771_vm8 = vcmp.le.f32.partialorder %v7738_v51, 0.7853982  ;;  %v3593_v58 = vadd.s32 4294967294, %v2847_v38  ;;  %v2958_v57 = vadd.s32 %v2952_v31, %v2948_v13  ;;  %v2957_v35 = vsel %vm2956_vm9, 1, %v7615_v41 }
 0x2b6   :  { %v2973_v49 = vmul.u32 %v2969_v4, %v2945_v61  ;;  %vm2978_vm10 = vc.u32 %v2970_v2, %v2974_v18  ;;  %v2980_v29 = vadd.s32 %v2974_v18, %v2970_v2  ;;  %v2835_v60 = vadd.s32 %v6671_v39, %v6674_v20 }
 0x2b7   :  { %vm3594_vm13 = vcmp.lt.s32.totalorder %v3593_v58, 0  ;;  %v2931_v33 = vsel %vm2927_vm0, %v2911_v44, %v6701_v25  ;;  %v2959_v32 = vadd.s32 %v2957_v35, %v2951_v46  ;;  %vm2960_vm15 = vc.u32 %v2958_v57, %v2954_v7 }
 0x2b8   :  { %v2850_v38 = vsel %vm3594_vm13, 0, %v3593_v58  ;;  %v2979_v12 = vsel %vm2978_vm10, 1, %v7615_v41  ;;  %vm2982_vm12 = vc.u32 %v2980_v29, %v2976_v63  ;;  %v2933_v61 = vsel %vm2929_vm4, %v6703_v19, %v2932_v11  ;;  %v7741_v19 = vld [vmem:[#allocation57_spill] sm:$0xff] }
 0x2b9   :  { %v2851_v13 = vsub.s32 32, %v2850_v38  ;;  %v2855_v31 = vsub.s32 4294967266, %v2850_v38  ;;  %v2953_v4 = vshrl.u32 %v2949_v34, 16  ;;  %v2955_v2 = vshrl.u32 %v2950_v27, 16 }
 0x2ba   :  { %v2961_v39 = vsel %vm2960_vm15, 1, %v7615_v41  ;;  %v2975_v20 = vshrl.u32 %v2971_v24, 16  ;;  %v2981_v51 = vadd.s32 %v2979_v12, %v2973_v49  ;;  %v2977_v44 = vshrl.u32 %v2972_v37, 16 }
 0x2bb   :  { %v2856_v18 = vadd.s32 127, %v2855_v31  ;;  %v2963_v25 = vadd.s32 %v2961_v39, %v2959_v32  ;;  %v2983_v46 = vsel %vm2982_vm12, 1, %v7615_v41  ;;  %vm2116_vm1 = vcmp.lt.s32.totalorder %v6452_v26, 2 }
 0x2bc   :  { %vm2274_vm14 = vcmp.eq.s32.totalorder %v6588_v48, 2  ;;  %v2852_v7 = vshll.u32 %v6748_v28, %v2850_v38  ;;  %v2853_v58 = vshrl.u32 %v2835_v60, %v2851_v13  ;;  %v2985_v57 = vadd.s32 %v2983_v46, %v2981_v51 }
 0x2bd   :  { %v3052_v34 = vand.u32 2139095040, %v7741_v19  ;;  %v2708_v27 = vmul.f32 %v2707_v54, %v2705_v59  ;;  %v2857_v11 = vshll.u32 %v2856_v18, 23  ;;  %v2964_v35 = vadd.s32 %v2963_v25, %v2953_v4 }
 0x2be   :  { %v6794_v24 = vadd.s32 %v2980_v29, %v2976_v63  ;;  %vm2271_vm11 = vcmp.eq.s32.totalorder %v6588_v48, 0  ;;  %v7742_v37 = vsel %vm6552_vm7, 0, %v6596_v40  ;;  %v2934_v28 = vsel %vm2928_vm3, %v2931_v33, %v2933_v61 }
 0x2bf   :  { %v6801_v49 = vand.u32 3, %v7742_v37  ;;  %v2986_v60 = vadd.s32 %v2985_v57, %v2975_v20  ;;  %v3053_v32 = vshrl.u32 %v3052_v34, 23  ;;  %v2267_v54 = vmul.f32 %v6751_v30, %v6505_v9 }
 0x2c0   :  { %v2420_v59 = vadd.f32 1.0, %v6757_v21  ;;  %v6812_v63 = vsel %vm6771_vm8, %v7710_v15, %v6761_v62  ;;  %v6814_v14 = vadd.s32 %v2964_v35, %v2955_v2  ;;  %v2854_v40 = vor.u32 %v2853_v58, %v2852_v7 }
 0x2c1   :  { %v2858_v29 = vor.u32 4788187, %v2857_v11  ;;  %v2987_v38 = vadd.s32 %v2986_v60, %v2977_v44  ;;  %v3598_v23 = vadd.s32 4294967169, %v3053_v32  ;;  %v2413_v33 = vadd.f32 1.0, %v6754_v3 }
 0x2c2   :  { %v2709_v12 = vxor.u32 2147483648, %v2708_v27  ;;  %v2988_v13 = vmul.u32 %v6736_v53, %v2934_v28  ;;  %vm2990_vm7 = vc.u32 %v6814_v14, %v6794_v24  ;;  %v2275_v9 = vxor.u32 2147483648, %v6711_v5 }
 0x2c3   :  { %vm2589_vm0 = vcmp.lt.s32.totalorder %v7720_v10, 0  ;;  %v2991_v30 = vadd.s32 1, %v2987_v38  ;;  %v3059_v21 = vadd.s32 1, %v3598_v23  ;;  %v2272_v62 = vxor.u32 2147483648, %v2267_v54 }
 0x2c4   :  { %v2421_v31 = vmul.f32 %v2420_v59, %v6601_v42  ;;  %v6825_v61 = vmul.f32 %v6812_v63, %v6812_v63  ;;  %v7743_v3 = vand.u32 2147483647, %v7720_v10  ;;  %v2859_v4 = vand.u32 2147483647, %v2858_v29 }
 0x2c5   :  { %v2861_v2 = vcvt.s32.f32 %v2854_v40  ;;  %v2992_v39 = vsel %vm2990_vm7, %v2991_v30, %v2987_v38  ;;  %vm3060_vm6 = vcmp.gt.s32.totalorder %v3059_v21, 0  ;;  %v2429_v20 = vxor.u32 2147483648, %v2413_v33 }
 0x2c6   :  { %vm6829_vm4 = vcmp.le.f32.partialorder %v7743_v3, 0.7853982  ;;  %v2710_v51 = vsel %vm2589_vm0, %v2709_v12, %v2708_v27  ;;  %v2993_v18 = vadd.s32 %v2992_v39, %v2988_v13  ;;  %v3061_v42 = vsel %vm3060_vm6, %v3059_v21, 0 }
 0x2c7   :  { %vm2428_vm3 = vcmp.eq.s32.totalorder %v6801_v49, 2  ;;  %v2557_v25 = vsub.s32 4, %v6458_v22  ;;  %v2562_v44 = vmul.f32 -0.001358992, %v6825_v61  ;;  %v3063_v46 = vand.u32 31, %v3061_v42 }
 0x2c8   :  { %v6842_v7 = vsel %vm2116_vm1, %v6586_v17, %v6548_v50  ;;  %v6846_v58 = vsel %vm2274_vm14, %v2275_v9, %v2267_v54  ;;  %v2994_v57 = vadd.s32 536870912, %v2993_v18  ;;  %v7486_v34 = vand.u32 2147483647, %v7741_v19 }
 0x2c9   :  { %7746 = vst [vmem:[#allocation45_spill] sm:$0xff] %v6842_v7  ;;  %vm2425_vm2 = vcmp.eq.s32.totalorder %v6801_v49, 0  ;;  %v6853_v27 = vsel %vm6829_vm4, %v7720_v10, %v2710_v51  ;;  %v2862_v11 = vmul.f32 %v2861_v2, %v2859_v4  ;;  %v6855_v35 = vsub.s32 32, %v3063_v46 }
 0x2ca   :  { %v6860_v26 = vsel %vm2271_vm11, %v6711_v5, %v2272_v62  ;;  %v2426_v50 = vxor.u32 2147483648, %v2421_v31  ;;  %v6862_v17 = vsel %vm2428_vm3, %v2429_v20, %v2421_v31  ;;  %v6864_v37 = vshrl.u32 %v2994_v57, 30 }
 0x2cb   :  { %v6869_v28 = vsel %vm2435_vm5, %v2557_v25, %v6458_v22  ;;  %v2563_v60 = vadd.f32 0.041655596, %v2562_v44  ;;  %v2569_v32 = vmul.f32 -0.00019511016, %v6825_v61  ;;  %vm2743_vm9 = vcmp.lt.s32.totalorder %v7731_v55, 0 }
 0x2cc   :  { %v6875_v54 = vmul.f32 %v6853_v27, %v6853_v27  ;;  %v2996_v5 = vshll.u32 %v6864_v37, 30  ;;  %v3056_v59 = vand.u32 8388607, %v7486_v34  ;;  %v3075_v40 = vshll.u32 %v7694_v16, %v3063_v46 }
 0x2cd   :  { %v2863_v29 = vxor.u32 2147483648, %v2862_v11  ;;  %v6881_v38 = vshrl.u32 %v3061_v42, 5  ;;  %v3066_v22 = vshll.u32 %v7562_v43, %v3063_v46  ;;  %v3076_v23 = vshrl.u32 %v7592_v1, %v6855_v35 }
 0x2ce   :  { %v2997_v12 = vsub.s32 %v2993_v18, %v2996_v5  ;;  %v3067_v13 = vshrl.u32 %v7594_v0, %v6855_v35  ;;  %v3069_v9 = vshll.u32 %v7594_v0, %v3063_v46  ;;  %v3072_v30 = vshll.u32 %v7595_v36, %v3063_v46 }
 0x2cf   :  { %v3070_v21 = vshrl.u32 %v7595_v36, %v6855_v35  ;;  %v3073_v62 = vshrl.u32 %v7694_v16, %v6855_v35  ;;  %v3078_v31 = vshll.u32 %v7592_v1, %v3063_v46  ;;  %v3079_v3 = vshrl.u32 %v7719_v45, %v6855_v35 }
 0x2d0   :  { %v2570_v4 = vadd.f32 0.008332121, %v2569_v32  ;;  %vm2998_vm5 = vcmp.lt.s32.totalorder %v2997_v12, 0  ;;  %v2999_v2 = vsub.s32 0, %v2997_v12  ;;  %v3077_v39 = vor.u32 %v3076_v23, %v3075_v40 }
 0x2d1   :  { %v6899_v0 = vsel %vm2425_vm2, %v2413_v33, %v2426_v50  ;;  %v2723_v20 = vmul.f32 -0.00019511016, %v6875_v54  ;;  %v7747_v36 = vand.u32 2147483647, %v7731_v55  ;;  %v3057_v1 = vor.u32 8388608, %v3056_v59 }
 0x2d2   :  { %v2864_v16 = vsel %vm2743_vm9, %v2863_v29, %v2862_v11  ;;  %v3000_v45 = vsel %vm2998_vm5, %v2999_v2, %v2997_v12  ;;  %v3080_v18 = vor.u32 %v3079_v3, %v3078_v31  ;;  %vm3084_vm13 = vcmp.lt.s32.totalorder %v6881_v38, 4 }
 0x2d3   :  { %vm6904_vm10 = vcmp.le.f32.partialorder %v7747_v36, 0.7853982  ;;  %v3001_v42 = vclz %v3000_v45  ;;  %v6911_v25 = vor.u32 %v3067_v13, %v3066_v22  ;;  %v6913_v33 = vor.u32 %v3070_v21, %v3069_v9 }
 0x2d4   :  { %v3074_v44 = vor.u32 %v3073_v62, %v3072_v30  ;;  %v2571_v46 = vmul.f32 %v2570_v4, %v6825_v61  ;;  %vm3081_vm15 = vcmp.lt.s32.totalorder %v6881_v38, 1  ;;  %vm3083_vm12 = vcmp.lt.s32.totalorder %v6881_v38, 3 }
 0x2d5   :  { %v3090_v57 = vsel %vm3084_vm13, %v3077_v39, 920167782  ;;  %v6921_v11 = vmul.f32 %v2563_v60, %v6825_v61  ;;  %v2716_v50 = vmul.f32 -0.001358992, %v6875_v54  ;;  %v2724_v32 = vadd.f32 0.008332121, %v2723_v20 }
 0x2d6   :  { %v3596_v5 = vadd.s32 4294967294, %v3001_v42  ;;  %v6927_v59 = vsel %vm6904_vm10, %v7731_v55, %v2864_v16  ;;  %v2989_v40 = vadd.s32 %v6794_v24, %v6814_v14  ;;  %v3094_v29 = vsel %vm3084_vm13, %v3080_v18, 1326507024 }
 0x2d7   :  { %v6933_v22 = vshll.u32 %v3057_v1, 8  ;;  %vm3082_vm14 = vcmp.lt.s32.totalorder %v6881_v38, 2  ;;  %v3089_v60 = vsel %vm3081_vm15, %v6911_v25, %v6913_v33  ;;  %v3091_v23 = vsel %vm3083_vm12, %v3074_v44, %v3090_v57 }
 0x2d8   :  { %vm3597_vm1 = vcmp.lt.s32.totalorder %v3596_v5, 0  ;;  %v6942_v13 = vadd.f32 -0.16666654, %v2571_v46  ;;  %v3093_v24 = vsel %vm3081_vm15, %v6913_v33, %v3074_v44  ;;  %v3095_v14 = vsel %vm3083_vm12, %v3077_v39, %v3094_v29 }
 0x2d9   :  { %v3004_v9 = vsel %vm3597_vm1, 0, %v3596_v5  ;;  %v6949_v30 = vadd.f32 0.041655596, %v2716_v50  ;;  %v6953_v3 = vmul.f32 %v6927_v59, %v6927_v59  ;;  %v3092_v4 = vsel %vm3082_vm14, %v3089_v60, %v3091_v23 }
 0x2da   :  { %v3005_v21 = vsub.s32 32, %v3004_v9  ;;  %v3006_v62 = vshll.u32 %v2997_v12, %v3004_v9  ;;  %v3009_v31 = vsub.s32 4294967266, %v3004_v9  ;;  %v3098_v2 = vand.u32 65535, %v6933_v22 }
 0x2db   :  { %v3099_v20 = vshrl.u32 %v6933_v22, 16  ;;  %v6960_v36 = vmul.f32 %v2724_v32, %v6875_v54  ;;  %v3096_v12 = vsel %vm3082_vm14, %v3093_v24, %v3095_v14  ;;  %v2870_v16 = vmul.f32 -0.001358992, %v6953_v3 }
 0x2dc   :  { %v3007_v39 = vshrl.u32 %v2989_v40, %v3005_v21  ;;  %v3010_v1 = vadd.s32 127, %v3009_v31  ;;  %vm2897_vm11 = vcmp.lt.s32.totalorder %v7737_v47, 0  ;;  %v3100_v45 = vand.u32 65535, %v3096_v12 }
 0x2dd   :  { %v3101_v18 = vshrl.u32 %v3096_v12, 16  ;;  %v3122_v57 = vand.u32 65535, %v3092_v4  ;;  %v3123_v50 = vshrl.u32 %v3092_v4, 16  ;;  %v2877_v5 = vmul.f32 -0.00019511016, %v6953_v3 }
 0x2de   :  { %v3008_v42 = vor.u32 %v3007_v39, %v3006_v62  ;;  %v3011_v46 = vshll.u32 %v3010_v1, 23  ;;  %v3102_v29 = vmul.u32 %v3100_v45, %v3098_v2  ;;  %v3104_v60 = vmul.u32 %v3100_v45, %v3099_v20 }
 0x2df   :  { %v3103_v32 = vmul.u32 %v3101_v18, %v3098_v2  ;;  %vm6969_vm7 = vcmp.le.f32.partialorder %v2895_v52, 0.7853982  ;;  %v3065_v24 = vshrl.u32 %v7562_v43, %v6855_v35  ;;  %v2871_v14 = vadd.f32 0.041655596, %v2870_v16 }
 0x2e0   :  { %v3012_v23 = vor.u32 4788187, %v3011_v46  ;;  %v3015_v9 = vcvt.s32.f32 %v3008_v42  ;;  %v3105_v21 = vmul.u32 %v3101_v18, %v3099_v20  ;;  %v3108_v31 = vshll.u32 %v3104_v60, 16 }
 0x2e1   :  { %v3106_v62 = vshll.u32 %v3103_v32, 16  ;;  %v3124_v39 = vmul.u32 %v3122_v57, %v3098_v2  ;;  %v3125_v1 = vmul.u32 %v3123_v50, %v3098_v2  ;;  %v3126_v12 = vmul.u32 %v3122_v57, %v3099_v20 }
 0x2e2   :  { %v3013_v4 = vand.u32 2147483647, %v3012_v23  ;;  %v2878_v45 = vadd.f32 0.008332121, %v2877_v5  ;;  %v3086_v52 = vsel %vm3084_vm13, %v3074_v44, 2102212464  ;;  %v3127_v46 = vmul.u32 %v3123_v50, %v3099_v20 }
 0x2e3   :  { %vm3110_vm6 = vc.u32 %v3102_v29, %v3106_v62  ;;  %v3112_v34 = vadd.s32 %v3106_v62, %v3102_v29  ;;  %v3128_v19 = vshll.u32 %v3125_v1, 16  ;;  %v3107_v43 = vshrl.u32 %v3103_v32, 16 }
 0x2e4   :  { %v3016_v7 = vmul.f32 %v3015_v9, %v3013_v4  ;;  %v3111_v42 = vsel %vm3110_vm6, 1, %v7615_v41  ;;  %v3130_v16 = vshll.u32 %v3126_v12, 16  ;;  %v3085_v44 = vsel %vm3081_vm15, %v3065_v24, %v6911_v25 }
 0x2e5   :  { %v3113_v35 = vadd.s32 %v3111_v42, %v3105_v21  ;;  %vm3114_vm3 = vc.u32 %v3112_v34, %v3108_v31  ;;  %vm3132_vm2 = vc.u32 %v3124_v39, %v3128_v19  ;;  %v3134_v2 = vadd.s32 %v3128_v19, %v3124_v39 }
 0x2e6   :  { %v3017_v18 = vxor.u32 2147483648, %v3016_v7  ;;  %v3115_v23 = vsel %vm3114_vm3, 1, %v7615_v41  ;;  %v3109_v57 = vshrl.u32 %v3104_v60, 16  ;;  %v3133_v29 = vsel %vm3132_vm2, 1, %v7615_v41 }
 0x2e7   :  { %v3117_v5 = vadd.s32 %v3115_v23, %v3113_v35  ;;  %v3129_v50 = vshrl.u32 %v3125_v1, 16  ;;  %v3135_v32 = vadd.s32 %v3133_v29, %v3127_v46  ;;  %vm3136_vm5 = vc.u32 %v3134_v2, %v3130_v16 }
 0x2e8   :  { %v3018_v20 = vsel %vm2897_vm11, %v3017_v18, %v3016_v7  ;;  %v3087_v19 = vsel %vm3083_vm12, %v6913_v33, %v3086_v52  ;;  %v3137_v60 = vsel %vm3136_vm5, 1, %v7615_v41  ;;  %vm2270_vm13 = vcmp.lt.s32.totalorder %v6588_v48, 2 }
 0x2e9   :  { %v6988_v34 = vsel %vm6969_vm7, %v7737_v47, %v3018_v20  ;;  %v3118_v25 = vadd.s32 %v3117_v5, %v3107_v43  ;;  %v2879_v9 = vmul.f32 %v2878_v45, %v6953_v3  ;;  %v3131_v24 = vshrl.u32 %v3126_v12, 16 }
 0x2ea   :  { %v3023_v7 = vmul.f32 %v6988_v34, %v6988_v34  ;;  %v3139_v21 = vadd.s32 %v3137_v60, %v3135_v32  ;;  %vm2424_vm15 = vcmp.lt.s32.totalorder %v6801_v49, 2  ;;  %v2718_v62 = vmul.f32 %v6949_v30, %v6875_v54 }
 0x2eb   :  { %v2726_v31 = vadd.f32 -0.16666654, %v6960_v36  ;;  %v7002_v33 = vadd.s32 %v3118_v25, %v3109_v57  ;;  %v7004_v4 = vadd.s32 %v3134_v2, %v3130_v16  ;;  %v3088_v1 = vsel %vm3082_vm14, %v3085_v44, %v3087_v19 }
 0x2ec   :  { %v3024_v41 = vmul.f32 -0.001358992, %v3023_v7  ;;  %v3031_v39 = vmul.f32 -0.00019511016, %v3023_v7  ;;  %v3140_v45 = vadd.s32 %v3139_v21, %v3129_v50  ;;  %v2565_v12 = vadd.f32 -0.4999988, %v6921_v11 }
 0x2ed   :  { %v2573_v52 = vmul.f32 %v6942_v13, %v6825_v61  ;;  %v2711_v42 = vsub.s32 4, %v6559_v8  ;;  %v2872_v30 = vmul.f32 %v2871_v14, %v6953_v3  ;;  %v2880_v36 = vadd.f32 -0.16666654, %v2879_v9 }
 0x2ee   :  { %v3025_v46 = vadd.f32 0.041655596, %v3024_v41  ;;  %v3032_v43 = vadd.f32 0.008332121, %v3031_v39  ;;  %v3141_v35 = vadd.s32 %v3140_v45, %v3131_v24  ;;  %v2560_v16 = vsel %vm6771_vm8, 0, %v6869_v28 }
 0x2ef   :  { %v2719_v38 = vadd.f32 -0.4999988, %v2718_v62  ;;  %v3142_v18 = vmul.u32 %v6933_v22, %v3088_v1  ;;  %vm3144_vm12 = vc.u32 %v7002_v33, %v7004_v4  ;;  %v2727_v11 = vmul.f32 %v2726_v31, %v6875_v54 }
 0x2f0   :  { %v3026_v13 = vmul.f32 %v3025_v46, %v3023_v7  ;;  %v3033_v23 = vmul.f32 %v3032_v43, %v3023_v7  ;;  %v3145_v2 = vadd.s32 1, %v3141_v35  ;;  %v2566_v14 = vmul.f32 %v2565_v12, %v6825_v61  ;;  %v7754_v43 = vld [vmem:[#allocation52_spill] sm:$0xff] }
 0x2f1   :  { %v2574_v44 = vadd.f32 1.0, %v2573_v52  ;;  %v2712_v57 = vsel %vm2589_vm0, %v2711_v42, %v6559_v8  ;;  %v2865_v6 = vsub.s32 4, %v6726_v56  ;;  %v2873_v28 = vadd.f32 -0.4999988, %v2872_v30  ;;  %v7753_v42 = vld [vmem:[#allocation51_spill] sm:$0xff] }
 0x2f2   :  { %v2881_v22 = vmul.f32 %v2880_v36, %v6953_v3  ;;  %v3034_v5 = vadd.f32 -0.16666654, %v3033_v23  ;;  %v3146_v29 = vsel %vm3144_vm12, %v3145_v2, %v3141_v35  ;;  %v7026_v20 = vand.u32 3, %v2560_v16 }
 0x2f3   :  { %v2720_v50 = vmul.f32 %v2719_v38, %v6875_v54  ;;  %v3019_v32 = vsub.s32 4, %v6864_v37  ;;  %v3147_v19 = vadd.s32 %v3146_v29, %v3142_v18  ;;  %v2714_v61 = vsel %vm6829_vm4, 0, %v2712_v57 }
 0x2f4   :  { %v2728_v25 = vadd.f32 1.0, %v2727_v11  ;;  %v3027_v60 = vadd.f32 -0.4999988, %v3026_v13  ;;  %v3035_v8 = vmul.f32 %v3034_v5, %v3023_v7  ;;  %v7036_v9 = vsel %vm2270_vm13, %v6860_v26, %v6846_v58 }
 0x2f5   :  { %v2567_v24 = vadd.f32 1.0, %v2566_v14  ;;  %v2866_v54 = vsel %vm2743_vm9, %v2865_v6, %v6726_v56  ;;  %v3148_v21 = vadd.s32 536870912, %v3147_v19  ;;  %v7045_v53 = vsel %vm2424_vm15, %v6899_v0, %v6862_v17 }
 0x2f6   :  { %v2575_v62 = vmul.f32 %v2574_v44, %v6812_v63  ;;  %v2874_v31 = vmul.f32 %v2873_v28, %v6953_v3  ;;  %v2882_v41 = vadd.f32 1.0, %v2881_v22  ;;  %v2721_v48 = vadd.f32 1.0, %v2720_v50 }
 0x2f7   :  { %v2731_v58 = vand.u32 3, %v2714_v61  ;;  %v3020_v26 = vsel %vm2897_vm11, %v3019_v32, %v6864_v37  ;;  %v7052_v39 = vshrl.u32 %v3148_v21, 30  ;;  %vm2578_vm8 = vcmp.lt.s32.totalorder %v7026_v20, 2  ;;  %v7755_v61 = vld [vmem:[#allocation57_spill] sm:$0xff] }
 0x2f8   :  { %v2729_v56 = vmul.f32 %v2728_v25, %v6853_v27  ;;  %v2868_v49 = vsel %vm6904_vm10, 0, %v2866_v54  ;;  %v3028_v17 = vmul.f32 %v3027_v60, %v3023_v7  ;;  %v3036_v63 = vadd.f32 1.0, %v3035_v8  ;;  %v7752_v7 = vld [vmem:[#allocation50_spill] sm:$0xff]  ;;  %v7756_v54 = vld [vmem:[#allocation45_spill] sm:$0xff] }
 0x2f9   :  { %vm2579_vm0 = vcmp.eq.s32.totalorder %v7026_v20, 0  ;;  %vm2582_vm4 = vcmp.eq.s32.totalorder %v7026_v20, 2  ;;  %v2583_v0 = vxor.u32 2147483648, %v2567_v24  ;;  %v3150_v3 = vshll.u32 %v7052_v39, 30 }
 0x2fa   :  { %v2580_v1 = vxor.u32 2147483648, %v2575_v62  ;;  %v2875_v37 = vadd.f32 1.0, %v2874_v31  ;;  %v2883_v45 = vmul.f32 %v2882_v41, %v6927_v59  ;;  %v3022_v12 = vsel %vm6969_vm7, 0, %v3020_v26 }
 0x2fb   :  { %vm2732_vm9 = vcmp.lt.s32.totalorder %v2731_v58, 2  ;;  %v2737_v27 = vxor.u32 2147483648, %v2721_v48  ;;  %v2885_v51 = vand.u32 3, %v2868_v49  ;;  %v7064_v52 = vsub.s32 %v3147_v19, %v3150_v3 }
 0x2fc   :  { %vm2114_vm10 = vweird.f32 %v7752_v7  ;;  %vm2268_vm1 = vweird.f32 %v7753_v42  ;;  %v2734_v30 = vxor.u32 2147483648, %v2729_v56  ;;  %vm2736_vm14 = vcmp.eq.s32.totalorder %v2731_v58, 2  ;;  %v7770_v7 = vld [vmem:[#allocation74_spill] sm:$0xff] }
 0x2fd   :  { %v3029_v36 = vadd.f32 1.0, %v3028_v17  ;;  %v3037_v46 = vmul.f32 %v3036_v63, %v6988_v34  ;;  %vm2422_vm11 = vweird.f32 %v7754_v43  ;;  %vm2733_vm6 = vcmp.eq.s32.totalorder %v2731_v58, 0  ;;  %v7761_v63 = vld [vmem:[#allocation67_spill] sm:$0xff] }
 0x2fe   :  { %v3039_v59 = vand.u32 3, %v3022_v12  ;;  %vm3152_vm7 = vcmp.lt.s32.totalorder %v7064_v52, 0  ;;  %v3153_v40 = vsub.s32 0, %v7064_v52  ;;  %v2581_v35 = vsel %vm2579_vm0, %v2567_v24, %v2580_v1  ;;  %v7763_v1 = vld [vmem:[#allocation68_spill] sm:$0xff]  ;;  %v7772_v43 = vld [vmem:[#allocation47_spill] sm:$0xff] }
 0x2ff   :  { %v2584_v16 = vsel %vm2582_vm4, %v2583_v0, %v2575_v62  ;;  %v2888_v38 = vxor.u32 2147483648, %v2883_v45  ;;  %v2891_v18 = vxor.u32 2147483648, %v2875_v37  ;;  %v2738_v11 = vsel %vm2736_vm14, %v2737_v27, %v2729_v56  ;;  %v7757_v62 = vld [vmem:[#allocation65_spill] sm:$0xff]  ;;  %v7762_v0 = vld [vmem:[#allocation63_spill] sm:$0xff]  ;;  %v7766_v12 = vld [vmem:[#allocation64_spill] sm:$0xff] }
 0x300   :  { %vm2887_vm3 = vcmp.eq.s32.totalorder %v2885_v51, 0  ;;  %vm2890_vm2 = vcmp.eq.s32.totalorder %v2885_v51, 2  ;;  %v3154_v34 = vsel %vm3152_vm7, %v3153_v40, %v7064_v52  ;;  %v2735_v13 = vsel %vm2733_vm6, %v2721_v48, %v2734_v30  ;;  %v7773_v40 = vld [vmem:[#allocation59_spill] sm:$0xff] }
 0x301   :  { %v3042_v23 = vxor.u32 2147483648, %v3037_v46  ;;  %v3045_v2 = vxor.u32 2147483648, %v3029_v36  ;;  %v3155_v14 = vclz %v3154_v34  ;;  %vm2576_vm5 = vweird.f32 %v7710_v15  ;;  %v7765_v15 = vld [vmem:[#allocation69_spill] sm:$0xff] }
 0x302   :  { %vm2886_vm13 = vcmp.lt.s32.totalorder %v2885_v51, 2  ;;  %vm3041_vm15 = vcmp.eq.s32.totalorder %v3039_v59, 0  ;;  %vm3044_vm12 = vcmp.eq.s32.totalorder %v3039_v59, 2  ;;  %v2889_v44 = vsel %vm2887_vm3, %v2875_v37, %v2888_v38  ;;  %v7764_v37 = vld [vmem:[#allocation76_spill] sm:$0xff]  ;;  %v7775_v38 = vld [vmem:[#allocation75_spill] sm:$0xff]  ;;  %v7777_v34 = vld [vmem:[#allocation77_spill] sm:$0xff] }
 0x303   :  { %v2892_v57 = vsel %vm2890_vm2, %v2891_v18, %v2883_v45  ;;  %v3599_v6 = vadd.s32 4294967294, %v3155_v14  ;;  %v3173_v28 = vsub.s32 4, %v7052_v39  ;;  %v2585_v22 = vsel %vm2578_vm8, %v2581_v35, %v2584_v16  ;;  %v7768_v51 = vld [vmem:[#allocation44_spill] sm:$0xff]  ;;  %v7776_v18 = vld [vmem:[#allocation49_spill] sm:$0xff]  ;;  %v7779_v14 = vld [vmem:[#allocation58_spill] sm:$0xff] }
 0x304   :  { %vm2730_vm0 = vweird.f32 %v7720_v10  ;;  %v2739_v5 = vsel %vm2732_vm9, %v2735_v13, %v2738_v11  ;;  %vm3040_vm4 = vcmp.lt.s32.totalorder %v3039_v59, 2  ;;  %v3043_v29 = vsel %vm3041_vm15, %v3029_v36, %v3042_v23  ;;  %v7767_v10 = vld [vmem:[#allocation70_spill] sm:$0xff]  ;;  %v7774_v35 = vld [vmem:[#allocation48_spill] sm:$0xff] }
 0x305   :  { %v3046_v50 = vsel %vm3044_vm12, %v3045_v2, %v3037_v46  ;;  %v3143_v32 = vadd.s32 %v7004_v4, %v7002_v33  ;;  %vm3600_vm14 = vcmp.lt.s32.totalorder %v3599_v6, 0  ;;  %vm2884_vm6 = vweird.f32 %v7731_v55  ;;  %v7769_v55 = vld [vmem:[#allocation71_spill] sm:$0xff]  ;;  %v7771_v46 = vld [vmem:[#allocation61_spill] sm:$0xff]  ;;  %v7778_v23 = vld [vmem:[#allocation78_spill] sm:$0xff] }
 0x306   :  { %v2893_v19 = vsel %vm2886_vm13, %v2889_v44, %v2892_v57  ;;  %vm3051_vm7 = vcmp.lt.s32.totalorder %v7755_v61, 0  ;;  %v3158_v25 = vsel %vm3600_vm14, 0, %v3599_v6  ;;  %v2124_v33 = vsel %vm2114_vm10, nan, %v7756_v54  ;;  %v7780_v6 = vld [vmem:[#allocation60_spill] sm:$0xff] }
 0x307   :  { %v3159_v20 = vsub.s32 32, %v3158_v25  ;;  %v3160_v60 = vshll.u32 %v7064_v52, %v3158_v25  ;;  %v3163_v8 = vsub.s32 4294967266, %v3158_v25  ;;  %v3174_v24 = vsel %vm3051_vm7, %v3173_v28, %v7052_v39 }
 0x308   :  { %v2278_v4 = vsel %vm2268_vm1, nan, %v7036_v9  ;;  %vm3038_vm8 = vweird.f32 %v7737_v47  ;;  %v3047_v21 = vsel %vm3040_vm4, %v3043_v29, %v3046_v50  ;;  %vm718_vm9 = vcmp.eq.f32.partialorder %v7757_v62, inf  ;;  %v7782_v29 = vld [vmem:[#allocation66_spill] sm:$0xff] }
 0x309   :  { %v2432_v31 = vsel %vm2422_vm11, nan, %v7045_v53  ;;  %v7758_v41 = vand.u32 2147483647, %v7755_v61  ;;  %v3161_v58 = vshrl.u32 %v3143_v32, %v3159_v20  ;;  %v3164_v26 = vadd.s32 127, %v3163_v8  ;;  %v7783_v32 = vld [vmem:[#allocation62_spill] sm:$0xff] }
 0x30a   :  { %v2586_v9 = vsel %vm2576_vm5, nan, %v2585_v22  ;;  %v2740_v47 = vsel %vm2730_vm0, nan, %v2739_v5  ;;  %v2894_v39 = vsel %vm2884_vm6, nan, %v2893_v19  ;;  %v3048_v56 = vsel %vm3038_vm8, nan, %v3047_v21  ;;  %v7781_v22 = vld [vmem:[#allocation41_spill] sm:$0xff] }
 0x30b   :  { %vm7106_vm3 = vcmp.le.f32.partialorder %v7758_v41, 0.7853982  ;;  %v3162_v49 = vor.u32 %v3161_v58, %v3160_v60  ;;  %v3165_v17 = vshll.u32 %v3164_v26, 23  ;;  %v3203_v3 = vmul.f32 %v7762_v0, %v7761_v63 }
 0x30c   :  { %v3176_v53 = vsel %vm7106_vm3, 0, %v3174_v24  ;;  %v3204_v45 = vmul.f32 %v7764_v37, %v7763_v1  ;;  %v3205_v27 = vmul.f32 %v7766_v12, %v7765_v15  ;;  %v3206_v52 = vmul.f32 %v7768_v51, %v7767_v10 }
 0x30d   :  { %v3207_v42 = vmul.f32 %v7770_v7, %v7769_v55  ;;  %v3166_v30 = vor.u32 4788187, %v3165_v17  ;;  %v3169_v36 = vcvt.s32.f32 %v3162_v49  ;;  %v3208_v59 = vmul.f32 %v7772_v43, %v7771_v46 }
 0x30e   :  { %v3209_v16 = vmul.f32 %v7774_v35, %v7773_v40  ;;  %v3210_v11 = vmul.f32 %v7776_v18, %v7775_v38  ;;  %v3211_v13 = vmul.f32 %v2124_v33, %v7777_v34  ;;  %v3212_v2 = vmul.f32 %v2278_v4, %v7778_v23 }
 0x30f   :  { %v3213_v44 = vmul.f32 %v2432_v31, %v7779_v14  ;;  %v3167_v57 = vand.u32 2147483647, %v3166_v30  ;;  %v3214_v28 = vmul.f32 %v2586_v9, %v7780_v6  ;;  %v3215_v5 = vmul.f32 %v2740_v47, %v7781_v22  ;;  %v7784_v47 = vld [vmem:[#allocation73_spill] sm:$0xff]  ;;  %v25_v14 = vld [vmem:[#allocation4] sm:$0xff] }
 0x310   :  { %v3216_v50 = vmul.f32 %v2894_v39, %v7782_v29  ;;  %v3217_v19 = vmul.f32 %v3048_v56, %v7783_v32  ;;  %v3219_v25 = vmul.f32 0.01, %v3203_v3  ;;  %v3220_v20 = vmul.f32 0.01, %v3204_v45 }
 0x311   :  { %v3221_v60 = vmul.f32 0.01, %v3205_v27  ;;  %v3170_v8 = vmul.f32 %v3169_v36, %v3167_v57  ;;  %v3222_v24 = vmul.f32 0.01, %v3206_v52  ;;  %v3223_v54 = vmul.f32 0.01, %v3207_v42 }
 0x312   :  { %v3224_v33 = vmul.f32 0.01, %v3208_v59  ;;  %v3225_v21 = vmul.f32 0.01, %v3209_v16  ;;  %v3226_v4 = vmul.f32 0.01, %v3210_v11  ;;  %v719_v39 = vsel %vm718_vm9, %v7757_v62, %v7784_v47 }
 0x313   :  { %v3227_v41 = vmul.f32 0.01, %v3211_v13  ;;  %vm720_vm10 = vcmp.eq.f32.partialorder %v7757_v62, 0.0  ;;  %v3171_v31 = vxor.u32 2147483648, %v3170_v8  ;;  %v7142_v58 = vand.u32 3, %v3176_v53 }
 0x314   :  { %v3228_v26 = vmul.f32 0.01, %v3212_v2  ;;  %v3229_v9 = vmul.f32 0.01, %v3213_v44  ;;  %v3230_v56 = vmul.f32 0.01, %v3214_v28  ;;  %vm3192_vm14 = vweird.f32 %v7755_v61 }
 0x315   :  { %v3231_v49 = vmul.f32 0.01, %v3215_v5  ;;  %v3232_v17 = vmul.f32 0.01, %v3216_v50  ;;  %v3172_v63 = vsel %vm3051_vm7, %v3171_v31, %v3170_v8  ;;  %v7150_v0 = vmul.f32 0.01, %v3217_v19 }
 0x316   :  { %v3251_v3 = vrot.slane %v3220_v20, 7  ;;  %v3252_v1 = vrot.slane %v3221_v60, 6  ;;  %v3175_v53 = vsel %vm7106_vm3, %v7755_v61, %v3172_v63  ;;  %v3253_v37 = vrot.slane %v3222_v24, 5  ;;  %v7786_v50 = vld [vmem:[#allocation10_spill] sm:$0xff]  ;;  %v7787_v19 = vld [vmem:[#allocation11_spill] sm:$0xff]  ;;  %v7788_v60 = vld [vmem:[#allocation12_spill] sm:$0xff] }
 0x317   :  { %v3254_v45 = vrot.slane %v3223_v54, 4  ;;  %v3255_v15 = vrot.slane %v3224_v33, 3  ;;  %v3177_v12 = vmul.f32 %v3175_v53, %v3175_v53  ;;  %v3256_v27 = vrot.slane %v3225_v21, 2  ;;  %v7789_v24 = vld [vmem:[#allocation13_spill] sm:$0xff]  ;;  %v7790_v33 = vld [vmem:[#allocation14_spill] sm:$0xff]  ;;  %v7791_v31 = vld [vmem:[#allocation15_spill] sm:$0xff] }
 0x318   :  { %v3257_v10 = vrot.slane %v3226_v4, 1  ;;  %v3258_v51 = vrot.slane %v3228_v26, 7  ;;  %v3259_v52 = vrot.slane %v3229_v9, 6  ;;  %v3260_v55 = vrot.slane %v3230_v56, 5  ;;  %v7792_v9 = vld [vmem:[#allocation16_spill] sm:$0xff]  ;;  %v7795_v63 = vld [vmem:[#allocation19_spill] sm:$0xff] }
 0x319   :  { %v3261_v7 = vrot.slane %v3231_v49, 4  ;;  %v3262_v42 = vrot.slane %v3232_v17, 3  ;;  %v3178_v30 = vmul.f32 -0.001358992, %v3177_v12  ;;  %v3185_v36 = vmul.f32 -0.00019511016, %v3177_v12 }
 0x31a   :  { %vm7494_vm1 = vcmask 1040384   ;;  %vm7493_vm11 = vcmask 1042434   ;;  %vm7491_vm2 = vcmask 1041408   ;;  %vm7492_vm5 = vcmask 1044484   ;;  %v7794_v49 = vld [vmem:[#allocation18_spill] sm:$0xff] }
 0x31b   :  { %v3266_v46 = vsel %vm7494_vm1, %v3219_v25, %v3251_v3  ;;  %v3268_v48 = vsel %vm7493_vm11, %v3252_v1, %v3253_v37  ;;  %v3179_v43 = vadd.f32 0.041655596, %v3178_v30  ;;  %v3186_v59 = vadd.f32 0.008332121, %v3185_v36  ;;  %v7796_v1 = vld [vmem:[#allocation20_spill] sm:$0xff]  ;;  %v7801_v30 = vld [vmem:[#allocation25_spill] sm:$0xff] }
 0x31c   :  { %v3270_v40 = vsel %vm7491_vm2, %v3266_v46, %v3268_v48  ;;  %v3272_v35 = vsel %vm7492_vm5, %v3254_v45, %v3255_v15  ;;  %vm7490_vm13 = vcmask 1046534   ;;  %vm7489_vm15 = vcmask 1045508  }
 0x31d   :  { %vm7488_vm12 = vcmask 1043456   ;;  %v3279_v16 = vsel %vm7494_vm1, %v3227_v41, %v3258_v51  ;;  %v3180_v38 = vmul.f32 %v3179_v43, %v3177_v12  ;;  %v3187_v18 = vmul.f32 %v3186_v59, %v3177_v12 }
 0x31e   :  { %v3274_v11 = vsel %vm7490_vm13, %v3256_v27, %v3257_v10  ;;  %v3280_v34 = vsel %vm7493_vm11, %v3259_v52, %v3260_v55  ;;  %v7785_v13 = vand.u32 2147483648, %v7757_v62  ;;  %vm3194_vm0 = vcmp.lt.s32.totalorder %v7142_v58, 2  ;;  %v7798_v10 = vld [vmem:[#allocation22_spill] sm:$0xff]  ;;  %v7799_v52 = vld [vmem:[#allocation23_spill] sm:$0xff] }
 0x31f   :  { %v3276_v2 = vsel %vm7489_vm15, %v3272_v35, %v3274_v11  ;;  %v3181_v44 = vadd.f32 -0.4999988, %v3180_v38  ;;  %v3188_v57 = vadd.f32 -0.16666654, %v3187_v18  ;;  %vm3195_vm4 = vcmp.eq.s32.totalorder %v7142_v58, 0 }
 0x320   :  { %v722_v23 = vsel %vm720_vm10, %v7785_v13, %v719_v39  ;;  %v3278_v6 = vsel %vm7488_vm12, %v3270_v40, %v3276_v2  ;;  %vm3198_vm6 = vcmp.eq.s32.totalorder %v7142_v58, 2  ;;  %v3263_v28 = vrot.slane %v7150_v0, 2  ;;  %v7793_v39 = vld [vmem:[#allocation17_spill] sm:$0xff]  ;;  %v7806_v58 = vld [vmem:[#allocation30_spill] sm:$0xff] }
 0x321   :  { %v7174_v62 = vsel %vm7491_vm2, %v3279_v16, %v3280_v34  ;;  %v7177_v22 = vsel %vm7492_vm5, %v3261_v7, %v3262_v42  ;;  %v3182_v5 = vmul.f32 %v3181_v44, %v3177_v12  ;;  %v3189_v29 = vmul.f32 %v3188_v57, %v3177_v12  ;;  %v7797_v12 = vld [vmem:[#allocation21_spill] sm:$0xff]  ;;  %v7800_v7 = vld [vmem:[#allocation24_spill] sm:$0xff] }
 0x322   :  { %v3290_v32 = vshrl.u32 %v7786_v50, 24  ;;  %v3291_v25 = vshrl.u32 %v7787_v19, 24  ;;  %v7181_v20 = vadd.f32 %v3278_v6, %v25_v14  ;;  %v3292_v8 = vshrl.u32 %v7788_v60, 24  ;;  %v7802_v19 = vld [vmem:[#allocation26_spill] sm:$0xff]  ;;  %v7803_v60 = vld [vmem:[#allocation27_spill] sm:$0xff] }
 0x323   :  { %v3293_v54 = vshrl.u32 %v7789_v24, 24  ;;  %v3294_v21 = vshrl.u32 %v7790_v33, 24  ;;  %v3183_v4 = vadd.f32 1.0, %v3182_v5  ;;  %v3190_v41 = vadd.f32 1.0, %v3189_v29  ;;  %v7804_v24 = vld [vmem:[#allocation28_spill] sm:$0xff]  ;;  %v7805_v33 = vld [vmem:[#allocation29_spill] sm:$0xff] }
 0x324   :  { %v3295_v26 = vshrl.u32 %v7791_v31, 24  ;;  %v3296_v47 = vshrl.u32 %v7792_v9, 24  ;;  %v3297_v56 = vshrl.u32 %v7793_v39, 24  ;;  %v3298_v17 = vshrl.u32 %v7794_v49, 24 }
 0x325   :  { %v3299_v3 = vshrl.u32 %v7795_v63, 24  ;;  %v3300_v37 = vshrl.u32 %v7796_v1, 24  ;;  %v3191_v45 = vmul.f32 %v3190_v41, %v3175_v53  ;;  %v3199_v15 = vxor.u32 2147483648, %v3183_v4  ;;  %v7807_v41 = vld [vmem:[#allocation31_spill] sm:$0xff]  ;;  %v7812_v63 = vld [vmem:[#allocation36_spill] sm:$0xff]  ;;  %v7813_v1 = vld [vmem:[#allocation37_spill] sm:$0xff] }
 0x326   :  { %v3301_v27 = vshrl.u32 %v7797_v12, 24  ;;  %v3302_v51 = vshrl.u32 %v7798_v10, 24  ;;  %v3303_v55 = vshrl.u32 %v7799_v52, 24  ;;  %v3304_v42 = vshrl.u32 %v7800_v7, 24  ;;  %v7815_v12 = vld [vmem:[#allocation39_spill] sm:$0xff] }
 0x327   :  { %v3305_v36 = vshrl.u32 %v7801_v30, 24  ;;  %v3306_v46 = vshll.u32 %v3290_v32, 8  ;;  %v3196_v48 = vxor.u32 2147483648, %v3191_v45  ;;  %v3200_v43 = vsel %vm3198_vm6, %v3199_v15, %v3191_v45  ;;  %v7814_v45 = vld [vmem:[#allocation38_spill] sm:$0xff] }
 0x328   :  { %v3307_v59 = vshll.u32 %v3291_v25, 8  ;;  %v3308_v40 = vshll.u32 %v3292_v8, 8  ;;  %v3309_v35 = vshll.u32 %v3293_v54, 8  ;;  %v3310_v53 = vshll.u32 %v3294_v21, 8 }
 0x329   :  { %v3311_v16 = vshll.u32 %v3295_v26, 8  ;;  %v3312_v38 = vshll.u32 %v3296_v47, 8  ;;  %v3197_v18 = vsel %vm3195_vm4, %v3183_v4, %v3196_v48  ;;  %v3313_v11 = vshll.u32 %v3297_v56, 8  ;;  %v7808_v26 = vld [vmem:[#allocation32_spill] sm:$0xff]  ;;  %v7809_v47 = vld [vmem:[#allocation33_spill] sm:$0xff]  ;;  %v7810_v56 = vld [vmem:[#allocation34_spill] sm:$0xff] }
 0x32a   :  { %v3314_v34 = vshll.u32 %v3298_v17, 8  ;;  %v3315_v13 = vshll.u32 %v3299_v3, 8  ;;  %v3201_v2 = vsel %vm3194_vm0, %v3197_v18, %v3200_v43  ;;  %v3316_v14 = vshll.u32 %v3300_v37, 8  ;;  %v26_v18 = vld [vmem:[#allocation4 + $0x8] sm:$0xff] }
 0x32b   :  { %v3317_v44 = vshll.u32 %v3301_v27, 8  ;;  %v3318_v57 = vshll.u32 %v3302_v51, 8  ;;  %v3202_v6 = vsel %vm3192_vm14, nan, %v3201_v2  ;;  %v3319_v5 = vshll.u32 %v3303_v55, 8  ;;  %v7816_v51 = vld [vmem:[#allocation40_spill] sm:$0xff]  ;;  %v7817_v55 = vld [vmem:[#allocation42_spill] sm:$0xff] }
 0x32c   :  { %v3320_v29 = vshll.u32 %v3304_v42, 8  ;;  %v3321_v50 = vshll.u32 %v3305_v36, 8  ;;  %v3218_v32 = vmul.f32 %v3202_v6, %v722_v23  ;;  %v3322_v25 = vshrl.u32 %v7802_v19, 24  ;;  %v7811_v23 = vld [vmem:[#allocation35_spill] sm:$0xff] }
 0x32d   :  { %v3323_v8 = vshrl.u32 %v7803_v60, 24  ;;  %v3324_v54 = vshrl.u32 %v7804_v24, 24  ;;  %v3325_v21 = vshrl.u32 %v7805_v33, 24  ;;  %v3326_v4 = vshrl.u32 %v7806_v58, 24 }
 0x32e   :  { %v3327_v31 = vshrl.u32 %v7807_v41, 24  ;;  %v3328_v9 = vshrl.u32 %v7808_v26, 24  ;;  %v3234_v61 = vmul.f32 0.01, %v3218_v32  ;;  %v3329_v39 = vshrl.u32 %v7809_v47, 24 }
 0x32f   :  { %v3330_v49 = vshrl.u32 %v7810_v56, 24  ;;  %v3331_v17 = vshrl.u32 %v7811_v23, 24  ;;  %v3332_v3 = vshrl.u32 %v7812_v63, 24  ;;  %v3333_v37 = vshrl.u32 %v7813_v1, 24 }
 0x330   :  { %v3334_v15 = vshrl.u32 %v7814_v45, 24  ;;  %v3335_v27 = vshrl.u32 %v7815_v12, 24  ;;  %v3264_v10 = vrot.slane %v3234_v61, 1  ;;  %v3336_v52 = vshrl.u32 %v7816_v51, 24 }
 0x331   :  { %v3337_v7 = vshrl.u32 %v7817_v55, 24  ;;  %v7221_v42 = vor.u32 %v3322_v25, %v3306_v46  ;;  %v7223_v30 = vor.u32 %v3323_v8, %v3307_v59  ;;  %v7225_v36 = vor.u32 %v3324_v54, %v3308_v40 }
 0x332   :  { %v7227_v48 = vor.u32 %v3325_v21, %v3309_v35  ;;  %v7229_v43 = vor.u32 %v3326_v4, %v3310_v53  ;;  %v3283_v2 = vsel %vm7490_vm13, %v3263_v28, %v3264_v10  ;;  %v7234_v6 = vor.u32 %v3327_v31, %v3311_v16 }
 0x333   :  { %v7236_v32 = vor.u32 %v3328_v9, %v3312_v38  ;;  %v7238_v19 = vor.u32 %v3329_v39, %v3313_v11  ;;  %v3284_v46 = vsel %vm7489_vm15, %v7177_v22, %v3283_v2  ;;  %v7242_v59 = vor.u32 %v3330_v49, %v3314_v34 }
 0x334   :  { %v7244_v40 = vor.u32 %v3331_v17, %v3315_v13  ;;  %v7246_v35 = vor.u32 %v3332_v3, %v3316_v14  ;;  %v3285_v0 = vsel %vm7488_vm12, %v7174_v62, %v3284_v46  ;;  %v7250_v53 = vor.u32 %v3333_v37, %v3317_v44 }
 0x335   :  { %v7252_v28 = vor.u32 %v3334_v15, %v3318_v57  ;;  %v7254_v16 = vor.u32 %v3335_v27, %v3319_v5  ;;  %v7256_v38 = vadd.f32 %v3285_v0, %v26_v18  ;;  %v7258_v11 = vor.u32 %v3336_v52, %v3320_v29 }
 0x336   :  { %v7260_v22 = vor.u32 %v3337_v7, %v3321_v50  ;;  %vm3354_vm7 = vcmp.lt.s32.totalorder %v7221_v42, 6554  ;;  %vm3355_vm8 = vcmp.lt.s32.totalorder %v7223_v30, 6554  ;;  %vm3356_vm9 = vcmp.lt.s32.totalorder %v7225_v36, 6554 }
 0x337   :  { %vm3357_vm3 = vcmp.lt.s32.totalorder %v7227_v48, 6554  ;;  %vm3358_vm10 = vcmp.lt.s32.totalorder %v7229_v43, 6554  ;;  %vm3359_vm0 = vcmp.lt.s32.totalorder %v7234_v6, 6554  ;;  %vm3360_vm4 = vcmp.lt.s32.totalorder %v7236_v32, 6554 }
 0x338   :  { %vm3361_vm14 = vcmp.lt.s32.totalorder %v7238_v19, 6554  ;;  %vm3362_vm6 = vcmp.lt.s32.totalorder %v7242_v59, 6554  ;;  %vm3363_vm12 = vcmp.lt.s32.totalorder %v7244_v40, 6554  ;;  %vm3364_vm15 = vcmp.lt.s32.totalorder %v7246_v35, 6554 }
 0x339   :  { %vm3365_vm13 = vcmp.lt.s32.totalorder %v7250_v53, 6554  ;;  %vm3366_vm2 = vcmp.lt.s32.totalorder %v7252_v28, 6554  ;;  %v3370_v62 = vsub.f32 1.0, %v7181_v20  ;;  %v3371_v34 = vsub.f32 1.0, %v7256_v38 }
 0x33a   :  { %v3408_v13 = vperm.slane %v7181_v20, 0  ;;  %vm3367_vm5 = vcmp.lt.s32.totalorder %v7254_v16, 6554  ;;  %vm3368_vm11 = vcmp.lt.s32.totalorder %v7258_v11, 6554  ;;  %vm3369_vm1 = vcmp.lt.s32.totalorder %v7260_v22, 6554 }
 0x33b   :  { %v3409_v14 = vperm.slane %v7181_v20, 1  ;;  %v3410_v44 = vperm.slane %v7181_v20, 2  ;;  %v3411_v57 = vperm.slane %v7181_v20, 3  ;;  %v3412_v5 = vperm.slane %v7181_v20, 4 }
 0x33c   :  { %v3374_v29 = vperm.slane %v3370_v62, 0  ;;  %v3375_v50 = vperm.slane %v3370_v62, 1  ;;  %v3376_v25 = vperm.slane %v3370_v62, 2  ;;  %v3377_v60 = vperm.slane %v3370_v62, 3 }
 0x33d   :  { %v3378_v8 = vperm.slane %v3370_v62, 4  ;;  %v3379_v24 = vperm.slane %v3370_v62, 5  ;;  %v3380_v54 = vperm.slane %v3370_v62, 6  ;;  %v3381_v33 = vperm.slane %v3370_v62, 7 }
 0x33e   :  { %v3382_v21 = vperm.slane %v3371_v34, 0  ;;  %v3383_v58 = vperm.slane %v3371_v34, 1  ;;  %v3384_v4 = vperm.slane %v3371_v34, 2  ;;  %v3385_v41 = vperm.slane %v3371_v34, 3 }
 0x33f   :  { %v3386_v31 = vperm.slane %v3371_v34, 4  ;;  %v3387_v26 = vperm.slane %v3371_v34, 5  ;;  %v3388_v9 = vperm.slane %v3371_v34, 6  ;;  %v3389_v61 = vperm.slane %v3371_v34, 7 }
 0x340   :  { %v3413_v47 = vperm.slane %v7181_v20, 5  ;;  %v3414_v39 = vperm.slane %v7181_v20, 6  ;;  %v3415_v56 = vperm.slane %v7181_v20, 7  ;;  %v3416_v49 = vperm.slane %v7256_v38, 0 }
 0x341   :  { %v3417_v23 = vperm.slane %v7256_v38, 1  ;;  %v3418_v17 = vperm.slane %v7256_v38, 2  ;;  %v3419_v63 = vperm.slane %v7256_v38, 3  ;;  %v3420_v3 = vperm.slane %v7256_v38, 4 }
 0x342   :  { %v3421_v1 = vperm.slane %v7256_v38, 5  ;;  %v3422_v37 = vperm.slane %v7256_v38, 6  ;;  %v3423_v45 = vperm.slane %v7256_v38, 7  ;;  %v3440_v15 = vsel %vm3354_vm7, %v3374_v29, %v3408_v13 }
 0x343   :  { %v3441_v20 = vsel %vm3355_vm8, %v3375_v50, %v3409_v14  ;;  %v3442_v12 = vsel %vm3356_vm9, %v3376_v25, %v3410_v44  ;;  %v3443_v27 = vsel %vm3357_vm3, %v3377_v60, %v3411_v57  ;;  %v3444_v10 = vsel %vm3358_vm10, %v3378_v8, %v3412_v5 }
 0x344   :  { %v3445_v51 = vsel %vm3359_vm0, %v3379_v24, %v3413_v47  ;;  %v3446_v52 = vsel %vm3360_vm4, %v3380_v54, %v3414_v39  ;;  %v3447_v55 = vsel %vm3361_vm14, %v3381_v33, %v3415_v56  ;;  %v3448_v7 = vsel %vm3362_vm6, %v3382_v21, %v3416_v49 }
 0x345   :  { %v3449_v42 = vsel %vm3363_vm12, %v3383_v58, %v3417_v23  ;;  %v3450_v30 = vsel %vm3364_vm15, %v3384_v4, %v3418_v17  ;;  %v3451_v36 = vsel %vm3365_vm13, %v3385_v41, %v3419_v63  ;;  %v3452_v48 = vsel %vm3366_vm2, %v3386_v31, %v3420_v3 }
 0x346   :  { %v3453_v43 = vsel %vm3367_vm5, %v3387_v26, %v3421_v1  ;;  %v3454_v18 = vsel %vm3368_vm11, %v3388_v9, %v3422_v37  ;;  %v3455_v2 = vsel %vm3369_vm1, %v3389_v61, %v3423_v45  ;;  %v3456_v6 = vmax.f32 %v3440_v15, 0.0 }
 0x347   :  { %v3457_v32 = vmax.f32 %v3441_v20, 0.0  ;;  %v3458_v19 = vmax.f32 %v3442_v12, 0.0  ;;  %v3459_v46 = vmax.f32 %v3443_v27, 0.0  ;;  %v3460_v59 = vmax.f32 %v3444_v10, 0.0 }
 0x348   :  { %v3461_v40 = vmax.f32 %v3445_v51, 0.0  ;;  %v3462_v35 = vmax.f32 %v3446_v52, 0.0  ;;  %v3463_v0 = vmax.f32 %v3447_v55, 0.0  ;;  %v3464_v53 = vmax.f32 %v3448_v7, 0.0 }
 0x349   :  { %v3465_v28 = vmax.f32 %v3449_v42, 0.0  ;;  %v3466_v38 = vmax.f32 %v3450_v30, 0.0  ;;  %v3467_v62 = vmax.f32 %v3451_v36, 0.0  ;;  %v3468_v16 = vmax.f32 %v3452_v48, 0.0 }
 0x34a   :  { %v3469_v34 = vmax.f32 %v3453_v43, 0.0  ;;  %v3470_v13 = vmax.f32 %v3454_v18, 0.0  ;;  %v3471_v11 = vmax.f32 %v3455_v2, 0.0  ;;  %v3472_v14 = vmin.f32 %v3456_v6, 1.0 }
 0x34b   :  { %v3473_v44 = vmin.f32 %v3457_v32, 1.0  ;;  %v3474_v22 = vmin.f32 %v3458_v19, 1.0  ;;  %v3475_v57 = vmin.f32 %v3459_v46, 1.0  ;;  %v3476_v5 = vmin.f32 %v3460_v59, 1.0 }
 0x34c   :  { %v3477_v29 = vmin.f32 %v3461_v40, 1.0  ;;  %v3478_v50 = vmin.f32 %v3462_v35, 1.0  ;;  %v3479_v25 = vmin.f32 %v3463_v0, 1.0  ;;  %v3480_v60 = vmin.f32 %v3464_v53, 1.0 }
 0x34d   :  { %v3481_v8 = vmin.f32 %v3465_v28, 1.0  ;;  %v3482_v24 = vmin.f32 %v3466_v38, 1.0  ;;  %v3483_v54 = vmin.f32 %v3467_v62, 1.0  ;;  %v3484_v33 = vmin.f32 %v3468_v16, 1.0 }
 0x34e   :  { %v3485_v21 = vmin.f32 %v3469_v34, 1.0  ;;  %v3486_v58 = vmin.f32 %v3470_v13, 1.0  ;;  %v3487_v4 = vmin.f32 %v3471_v11, 1.0  ;;  %v3504_v41 = vrot.slane %v3473_v44, 7 }
 0x34f   :  { %v3505_v31 = vrot.slane %v3474_v22, 6  ;;  %v3506_v26 = vrot.slane %v3475_v57, 5  ;;  %v3507_v9 = vrot.slane %v3476_v5, 4  ;;  %v3508_v61 = vrot.slane %v3477_v29, 3 }
 0x350   :  { %v3509_v47 = vrot.slane %v3478_v50, 2  ;;  %v3510_v39 = vrot.slane %v3479_v25, 1  ;;  %v3511_v56 = vrot.slane %v3481_v8, 7  ;;  %v3512_v49 = vrot.slane %v3482_v24, 6 }
 0x351   :  { %v3513_v23 = vrot.slane %v3483_v54, 5  ;;  %v3514_v17 = vrot.slane %v3484_v33, 4  ;;  %v3515_v63 = vrot.slane %v3485_v21, 3  ;;  %v3516_v3 = vrot.slane %v3486_v58, 2 }
 0x352   :  { %v3517_v1 = vrot.slane %v3487_v4, 1  ;;  %vm7818_vm1 = vcmask 1040384   ;;  %vm7819_vm11 = vcmask 1042434   ;;  %vm7820_vm2 = vcmask 1044484  }
 0x353   :  { %v3518_v37 = vsel %vm7818_vm1, %v3472_v14, %v3504_v41  ;;  %v3519_v45 = vsel %vm7819_vm11, %v3505_v31, %v3506_v26  ;;  %v3521_v15 = vsel %vm7820_vm2, %v3507_v9, %v3508_v61  ;;  %vm7821_vm5 = vcmask 1041408   ;;  %vm7823_vm15 = vmmov %vm7818_vm1 }
 0x354   :  { %v3520_v20 = vsel %vm7821_vm5, %v3518_v37, %v3519_v45  ;;  %vm7822_vm13 = vcmask 1046534   ;;  %v3525_v27 = vsel %vm7823_vm15, %v3480_v60, %v3511_v56  ;;  %vm7824_vm12 = vmmov %vm7819_vm11  ;;  %vm7825_vm7 = vcmask 1045508  }
 0x355   :  { %v3522_v12 = vsel %vm7822_vm13, %v3509_v47, %v3510_v39  ;;  %v3526_v10 = vsel %vm7824_vm12, %v3512_v49, %v3513_v23  ;;  %vm7826_vm8 = vmmov %vm7821_vm5  ;;  %vm7829_vm10 = vcmask 1043456  }
 0x356   :  { %v3523_v51 = vsel %vm7825_vm7, %v3521_v15, %v3522_v12  ;;  %v3527_v52 = vsel %vm7826_vm8, %v3525_v27, %v3526_v10  ;;  %vm7827_vm9 = vmmov %vm7820_vm2 }
 0x357   :  { %v3528_v55 = vsel %vm7827_vm9, %v3514_v17, %v3515_v63  ;;  %vm7828_vm3 = vmmov %vm7822_vm13  ;;  %v3524_v42 = vsel %vm7829_vm10, %v3520_v20, %v3523_v51 }
 0x358   :  { %v3529_v7 = vsel %vm7828_vm3, %v3516_v3, %v3517_v1  ;;  %vm7830_vm0 = vmmov %vm7825_vm7  ;;  %3534 = vst [vmem:[#allocation7] sm:$0xff] %v3524_v42 }
 0x359   :  { %v3530_v30 = vsel %vm7830_vm0, %v3528_v55, %v3529_v7  ;;  %vm7831_vm4 = vmmov %vm7829_vm10 }
 0x35a   :  { %v3531_v36 = vsel %vm7831_vm4, %v3527_v52, %v3530_v30 }
 0x35b   :  { %3535 = vst [vmem:[#allocation7 + $0x8] sm:$0xff] %v3531_v36 }
 0x35c   :  { %3546 = dma.vmem_to_hbm [thread:$0]  %s3542_s15, 256, %s3544_s18, [#allocation6]  }
 0x35d   :  { %3724 = dma.done.wait [#allocation6], 256  }
 0x35e   :  { %3725 = vsyncadd [#allocation6], 4294967040 }
 0x35f   :  { %3551 = vsyncpa [#allocation5], 1 }
 0x360   :  { %3552 = vsyncpa [#allocation6], 1 }

</bundles_post_ra>
